<compile_context>
chip_gen: v6e
topology: v6e:2x2x1
jax: 0.10.0
libtpu: 0.0.40
codegen_flags: <defaults>
</compile_context>

<pallas_src>
import functools

import jax
import jax.numpy as jnp
from jax.experimental import pallas as pl
from jax.experimental.pallas import tpu as pltpu

BN_EPS = 1e-5
NEG_INF = -1e30  # finite "minus infinity" for max-reduction init / padded-lane logits


def _round_up(x, m):
    return (x + m - 1) // m * m


# ------------------------------------------------------------------
# Kernels
# ------------------------------------------------------------------
def _stn_point_kernel(x_ref, w1_ref, sh1_ref, w2_ref, sh2_ref, w3_ref, sh3_ref,
                      g_ref, *, n_valid, tn):
    """Fused STN point MLP (3->64->128->1024, ReLU) + max over the point axis."""
    j = pl.program_id(1)
    x = x_ref[0]                                    # (tn, 3) f32
    w1 = w1_ref[...]                                # (3, 64) f32 (K=3 stays on the VPU)
    h = (x[:, 0:1] * w1[0:1, :] + x[:, 1:2] * w1[1:2, :]
         + x[:, 2:3] * w1[2:3, :]) + sh1_ref[...]
    h = jnp.maximum(h, 0.0)                         # (tn, 64)
    h = jnp.dot(h.astype(jnp.bfloat16), w2_ref[...],
                preferred_element_type=jnp.float32) + sh2_ref[...]
    h = jnp.maximum(h, 0.0)                         # (tn, 128)
    h = jnp.dot(h.astype(jnp.bfloat16), w3_ref[...],
                preferred_element_type=jnp.float32) + sh3_ref[...]
    h = jnp.maximum(h, 0.0)                         # (tn, 1024)
    if n_valid % tn != 0:                           # mask padded points out of the max
        row = jax.lax.broadcasted_iota(jnp.int32, (tn, 1), 0)
        h = jnp.where((j * tn + row) < n_valid, h, NEG_INF)
    m = jnp.max(h, axis=0, keepdims=True)           # (1, 1024)

    @pl.when(j == 0)
    def _():
        g_ref[...] = jnp.full_like(g_ref, NEG_INF)

    g_ref[0] = jnp.maximum(g_ref[0], m)


def _stn_fc_kernel(g_ref, w1_ref, sh1_ref, w2_ref, sh2_ref, w3_ref, b3_ref, o_ref):
    """Tiny STN FC stack 1024->512->256->9 in one launch (B rows)."""
    h = jnp.dot(g_ref[...].astype(jnp.bfloat16), w1_ref[...],
                preferred_element_type=jnp.float32) + sh1_ref[...]
    h = jnp.maximum(h, 0.0)
    h = jnp.dot(h.astype(jnp.bfloat16), w2_ref[...],
                preferred_element_type=jnp.float32) + sh2_ref[...]
    h = jnp.maximum(h, 0.0)
    o_ref[...] = jnp.dot(h.astype(jnp.bfloat16), w3_ref[...],
                         preferred_element_type=jnp.float32) + b3_ref[...]


def _pointfeat_kernel(x_ref, t_ref, w1_ref, sh1_ref, w2_ref, sh2_ref,
                      w3_ref, sh3_ref, pf_ref, g_ref, *, n_valid, tn):
    """Fused: 3x3 transform (folded into the 3->64 conv), 64->128->1024, max over points."""
    j = pl.program_id(1)
    x = x_ref[0]                                    # (tn, 3) f32
    t = t_ref[0]                                    # (3, 3)  f32
    w1 = w1_ref[...]                                # (3, 64) f32
    # (x @ t) @ w1 == x @ (t @ w1): fold the per-batch 3x3 transform into the conv weight.
    tw = (t[:, 0:1] * w1[0:1, :] + t[:, 1:2] * w1[1:2, :] + t[:, 2:3] * w1[2:3, :])  # (3,64)
    h = (x[:, 0:1] * tw[0:1, :] + x[:, 1:2] * tw[1:2, :]
         + x[:, 2:3] * tw[2:3, :]) + sh1_ref[...]
    h = jnp.maximum(h, 0.0)                         # (tn, 64)  == pointfeat
    pf_ref[0] = h.astype(pf_ref.dtype)
    h2 = jnp.dot(h.astype(jnp.bfloat16), w2_ref[...],
                 preferred_element_type=jnp.float32) + sh2_ref[...]
    h2 = jnp.maximum(h2, 0.0)                       # (tn, 128)
    h3 = jnp.dot(h2.astype(jnp.bfloat16), w3_ref[...],
                 preferred_element_type=jnp.float32) + sh3_ref[...]   # BN3, no ReLU
    if n_valid % tn != 0:
        row = jax.lax.broadcasted_iota(jnp.int32, (tn, 1), 0)
        h3 = jnp.where((j * tn + row) < n_valid, h3, NEG_INF)
    m = jnp.max(h3, axis=0, keepdims=True)          # (1, 1024)

    @pl.when(j == 0)
    def _():
        g_ref[...] = jnp.full_like(g_ref, NEG_INF)

    g_ref[0] = jnp.maximum(g_ref[0], m)


def _head_kernel(pf_ref, gb_ref, w1p_ref, w2_ref, sh2_ref, w3_ref, sh3_ref,
                 w4_ref, b4_ref, o_ref):
    """Fused dense head: conv1(split) -> conv2 -> conv3 -> conv4 -> log_softmax."""
    pf = pf_ref[0]                                  # (tn, 64) bf16
    # conv1 (1088->512): per-point part (64->512) here + precomputed per-batch global bias.
    h = jnp.dot(pf, w1p_ref[...], preferred_element_type=jnp.float32) + gb_ref[0]
    h = jnp.maximum(h, 0.0)                         # (tn, 512)
    h = jnp.dot(h.astype(jnp.bfloat16), w2_ref[...],
                preferred_element_type=jnp.float32) + sh2_ref[...]
    h = jnp.maximum(h, 0.0)                         # (tn, 256)
    h = jnp.dot(h.astype(jnp.bfloat16), w3_ref[...],
                preferred_element_type=jnp.float32) + sh3_ref[...]
    h = jnp.maximum(h, 0.0)                         # (tn, 128)
    y = jnp.dot(h.astype(jnp.bfloat16), w4_ref[...],
                preferred_element_type=jnp.float32) + b4_ref[...]     # (tn, 128) lane-padded
    # Padded lanes carry a -1e30 bias -> exp() == 0, so the logsumexp is over real classes only.
    m = jnp.max(y, axis=-1, keepdims=True)
    lse = m + jnp.log(jnp.sum(jnp.exp(y - m), axis=-1, keepdims=True))
    o_ref[0] = y - lse


# ------------------------------------------------------------------
# Deterministic parameter construction (synthetic, no checkpoint)
# ------------------------------------------------------------------
def init_conv(key, cin, cout, std=0.1):
    kw, kb = jax.random.split(key)
    w = jax.random.normal(kw, (cin, cout), jnp.float32) * std  # stored transposed vs torch
    b = jax.random.normal(kb, (cout,), jnp.float32) * std
    return w, b


def init_bn(key, c):
    k1, k2, k3, k4 = jax.random.split(key, 4)
    gamma = 1.0 + 0.1 * jax.random.normal(k1, (c,), jnp.float32)
    beta = 0.1 * jax.random.normal(k2, (c,), jnp.float32)
    mean = 0.1 * jax.random.normal(k3, (c,), jnp.float32)
    var = jax.random.uniform(k4, (c,), jnp.float32, minval=0.5, maxval=1.5)
    return gamma, beta, mean, var


def make_params(key, k=2):
    keys = jax.random.split(key, 24)
    p = {}
    # STN3d
    p["stn_c1"] = init_conv(keys[0], 3, 64);      p["stn_bn1"] = init_bn(keys[1], 64)
    p["stn_c2"] = init_conv(keys[2], 64, 128);    p["stn_bn2"] = init_bn(keys[3], 128)
    p["stn_c3"] = init_conv(keys[4], 128, 1024);  p["stn_bn3"] = init_bn(keys[5], 1024)
    p["stn_f1"] = init_conv(keys[6], 1024, 512);  p["stn_bn4"] = init_bn(keys[7], 512)
    p["stn_f2"] = init_conv(keys[8], 512, 256);   p["stn_bn5"] = init_bn(keys[9], 256)
    p["stn_f3"] = init_conv(keys[10], 256, 9)
    # PointFeat
    p["ft_c1"] = init_conv(keys[11], 3, 64);      p["ft_bn1"] = init_bn(keys[12], 64)
    p["ft_c2"] = init_conv(keys[13], 64, 128);    p["ft_bn2"] = init_bn(keys[14], 128)
    p["ft_c3"] = init_conv(keys[15], 128, 1024);  p["ft_bn3"] = init_bn(keys[16], 1024)
    # Dense classification head
    p["h_c1"] = init_conv(keys[17], 1088, 512);   p["h_bn1"] = init_bn(keys[18], 512)
    p["h_c2"] = init_conv(keys[19], 512, 256);    p["h_bn2"] = init_bn(keys[20], 256)
    p["h_c3"] = init_conv(keys[21], 256, 128);    p["h_bn3"] = init_bn(keys[22], 128)
    p["h_c4"] = init_conv(keys[23], 128, k)
    return p


def _fold_bn_into_weight(wb, bn):
    """Eval-mode BN folded into the weight (scale) and a per-channel shift."""
    w, b = wb
    gamma, beta, mean, var = bn
    scale = gamma * jax.lax.rsqrt(var + BN_EPS)
    return w * scale[None, :], (b - mean) * scale + beta


def prepare_params(p, k=2):
    """Fold BN, cast matmul weights to bf16, split/pad the head weights for the kernels."""
    q = {}

    def conv(name, bn_name, dtype=jnp.bfloat16):
        w, sh = _fold_bn_into_weight(p[name], p[bn_name])
        return w.astype(dtype), sh.reshape(1, -1).astype(jnp.float32)

    # STN point chain (first layer stays f32: K=3 contraction runs on the VPU).
    q["stn_w1"], q["stn_sh1"] = conv("stn_c1", "stn_bn1", dtype=jnp.float32)
    q["stn_w2"], q["stn_sh2"] = conv("stn_c2", "stn_bn2")
    q["stn_w3"], q["stn_sh3"] = conv("stn_c3", "stn_bn3")
    # STN FC stack
    q["stn_f1"], q["stn_fsh1"] = conv("stn_f1", "stn_bn4")
    q["stn_f2"], q["stn_fsh2"] = conv("stn_f2", "stn_bn5")
    w3, b3 = p["stn_f3"]
    q["stn_f3"] = w3.astype(jnp.bfloat16)
    q["stn_fb3"] = b3.reshape(1, -1).astype(jnp.float32)
    # PointFeat chain
    q["ft_w1"], q["ft_sh1"] = conv("ft_c1", "ft_bn1", dtype=jnp.float32)
    q["ft_w2"], q["ft_sh2"] = conv("ft_c2", "ft_bn2")
    q["ft_w3"], q["ft_sh3"] = conv("ft_c3", "ft_bn3")
    # Dense head: split conv1 (1088->512) into global (1024) and per-point (64) parts.
    w1, sh1 = _fold_bn_into_weight(p["h_c1"], p["h_bn1"])
    q["h_w1g"] = w1[:1024].astype(jnp.float32)          # used in tiny per-batch precompute
    q["h_sh1"] = sh1.astype(jnp.float32)
    q["h_w1p"] = w1[1024:].astype(jnp.bfloat16)          # (64, 512)
    q["h_w2"], q["h_sh2"] = conv("h_c2", "h_bn2")
    q["h_w3"], q["h_sh3"] = conv("h_c3", "h_bn3")
    # conv4: pad k -> 128 lanes for dense stores; padded lanes get a -1e30 bias.
    w4, b4 = p["h_c4"]
    w4p = jnp.zeros((128, 128), jnp.float32).at[:, :k].set(w4)
    b4p = jnp.full((128,), NEG_INF, jnp.float32).at[:k].set(b4)
    q["h_w4"] = w4p.astype(jnp.bfloat16)
    q["h_b4"] = b4p.reshape(1, 128)
    return q


# ------------------------------------------------------------------
# Forward pass
# ------------------------------------------------------------------
def _stn3d_forward(q, x_bn3_pad, B, N, tn):
    n_chunks = x_bn3_pad.shape[1] // tn
    g = pl.pallas_call(
        functools.partial(_stn_point_kernel, n_valid=N, tn=tn),
        out_shape=jax.ShapeDtypeStruct((B, 1, 1024), jnp.float32),
        grid=(B, n_chunks),
        in_specs=[
            pl.BlockSpec((1, tn, 3), lambda b, j: (b, j, 0)),
            pl.BlockSpec((3, 64), lambda b, j: (0, 0)),
            pl.BlockSpec((1, 64), lambda b, j: (0, 0)),
            pl.BlockSpec((64, 128), lambda b, j: (0, 0)),
            pl.BlockSpec((1, 128), lambda b, j: (0, 0)),
            pl.BlockSpec((128, 1024), lambda b, j: (0, 0)),
            pl.BlockSpec((1, 1024), lambda b, j: (0, 0)),
        ],
        out_specs=pl.BlockSpec((1, 1, 1024), lambda b, j: (b, 0, 0)),
        compiler_params=pltpu.CompilerParams(
            dimension_semantics=("parallel", "arbitrary")),
    )(x_bn3_pad, q["stn_w1"], q["stn_sh1"], q["stn_w2"], q["stn_sh2"],
      q["stn_w3"], q["stn_sh3"])
    g = g.reshape(B, 1024)

    out9 = pl.pallas_call(
        _stn_fc_kernel,
        out_shape=jax.ShapeDtypeStruct((B, 9), jnp.float32),
        grid=(1,),
        in_specs=[
            pl.BlockSpec((B, 1024), lambda i: (0, 0)),
            pl.BlockSpec((1024, 512), lambda i: (0, 0)),
            pl.BlockSpec((1, 512), lambda i: (0, 0)),
            pl.BlockSpec((512, 256), lambda i: (0, 0)),
            pl.BlockSpec((1, 256), lambda i: (0, 0)),
            pl.BlockSpec((256, 9), lambda i: (0, 0)),
            pl.BlockSpec((1, 9), lambda i: (0, 0)),
        ],
        out_specs=pl.BlockSpec((B, 9), lambda i: (0, 0)),
    )(g, q["stn_f1"], q["stn_fsh1"], q["stn_f2"], q["stn_fsh2"],
      q["stn_f3"], q["stn_fb3"])

    iden = jnp.eye(3, dtype=jnp.float32).reshape(1, 9)
    return (out9 + iden).reshape(B, 3, 3)


def pointnet_densecls_forward(q, x, k=2, tn=512):
    B, _, N = x.shape
    x_bn3 = jnp.transpose(x, (0, 2, 1)).astype(jnp.float32)   # (B, N, 3)
    tn = min(tn, _round_up(N, 8))
    n_pad = _round_up(N, tn)
    if n_pad != N:
        x_bn3 = jnp.pad(x_bn3, ((0, 0), (0, n_pad - N), (0, 0)))
    n_chunks = n_pad // tn

    trans = _stn3d_forward(q, x_bn3, B, N, tn)                 # (B, 3, 3)

    pf, g = pl.pallas_call(
        functools.partial(_pointfeat_kernel, n_valid=N, tn=tn),
        out_shape=(jax.ShapeDtypeStruct((B, n_pad, 64), jnp.bfloat16),
                   jax.ShapeDtypeStruct((B, 1, 1024), jnp.float32)),
        grid=(B, n_chunks),
        in_specs=[
            pl.BlockSpec((1, tn, 3), lambda b, j: (b, j, 0)),
            pl.BlockSpec((1, 3, 3), lambda b, j: (b, 0, 0)),
            pl.BlockSpec((3, 64), lambda b, j: (0, 0)),
            pl.BlockSpec((1, 64), lambda b, j: (0, 0)),
            pl.BlockSpec((64, 128), lambda b, j: (0, 0)),
            pl.BlockSpec((1, 128), lambda b, j: (0, 0)),
            pl.BlockSpec((128, 1024), lambda b, j: (0, 0)),
            pl.BlockSpec((1, 1024), lambda b, j: (0, 0)),
        ],
        out_specs=(pl.BlockSpec((1, tn, 64), lambda b, j: (b, j, 0)),
                   pl.BlockSpec((1, 1, 1024), lambda b, j: (b, 0, 0))),
        compiler_params=pltpu.CompilerParams(
            dimension_semantics=("parallel", "arbitrary")),
    )(x_bn3, trans, q["ft_w1"], q["ft_sh1"], q["ft_w2"], q["ft_sh2"],
      q["ft_w3"], q["ft_sh3"])
    g = g.reshape(B, 1024)

    # Per-batch global-feature bias for conv1 of the head:
    #   relu(cat([g, pointfeat]) @ W1 + sh1) == relu(pointfeat @ W1_p + (g @ W1_g + sh1))
    # The (B,1024)@(1024,512) term is tiny; leave it to XLA.
    gb = (jnp.dot(g, q["h_w1g"]) + q["h_sh1"][None, :]).reshape(B, 1, 512)

    logp_pad = pl.pallas_call(
        _head_kernel,
        out_shape=jax.ShapeDtypeStruct((B, n_pad, 128), jnp.float32),
        grid=(B, n_chunks),
        in_specs=[
            pl.BlockSpec((1, tn, 64), lambda b, j: (b, j, 0)),
            pl.BlockSpec((1, 1, 512), lambda b, j: (b, 0, 0)),
            pl.BlockSpec((64, 512), lambda b, j: (0, 0)),
            pl.BlockSpec((512, 256), lambda b, j: (0, 0)),
            pl.BlockSpec((1, 256), lambda b, j: (0, 0)),
            pl.BlockSpec((256, 128), lambda b, j: (0, 0)),
            pl.BlockSpec((1, 128), lambda b, j: (0, 0)),
            pl.BlockSpec((128, 128), lambda b, j: (0, 0)),
            pl.BlockSpec((1, 128), lambda b, j: (0, 0)),
        ],
        out_specs=pl.BlockSpec((1, tn, 128), lambda b, j: (b, j, 0)),
        compiler_params=pltpu.CompilerParams(
            dimension_semantics=("parallel", "parallel")),
    )(pf, gb, q["h_w1p"], q["h_w2"], q["h_sh2"], q["h_w3"], q["h_sh3"],
      q["h_w4"], q["h_b4"])

    logp = logp_pad[:, :N, :k]                                  # drop padded points / lanes
    return logp, trans


if __name__ == "__main__":
    B, C, N, K = 2, 3, 64, 2
    key = jax.random.PRNGKey(0)
    k_param, k_data = jax.random.split(key)
    raw = make_params(k_param, k=K)
    params = prepare_params(raw, k=K)
    x = jax.random.normal(k_data, (B, C, N), dtype=jnp.float32)  # PyTorch NCW input

    fwd = jax.jit(functools.partial(pointnet_densecls_forward, k=K))
    logp, trans = fwd(params, x)
    jax.block_until_ready((logp, trans))

    assert logp.shape == (B, N, K) and trans.shape == (B, 3, 3)
    # log_softmax sanity: per-point probabilities sum to 1
    assert bool(jnp.allclose(jnp.sum(jnp.exp(logp), axis=-1), 1.0, atol=1e-3))
    print("KERNEL_OK")
</pallas_src>

<mosaic_0001>
module attributes {stable_mosaic.version = 11 : i64} {
  func.func @_stn_point_kernel(%arg0: i32, %arg1: i32, %arg2: memref<1x64x3xf32, #tpu.memory_space<vmem>>, %arg3: memref<3x64xf32, #tpu.memory_space<vmem>>, %arg4: memref<1x64xf32, #tpu.memory_space<vmem>>, %arg5: memref<64x128xbf16, #tpu.memory_space<vmem>>, %arg6: memref<1x128xf32, #tpu.memory_space<vmem>>, %arg7: memref<128x1024xbf16, #tpu.memory_space<vmem>>, %arg8: memref<1x1024xf32, #tpu.memory_space<vmem>>, %arg9: memref<1x1x1024xf32, #tpu.memory_space<vmem>>) attributes {dimension_semantics = [#tpu.dimension_semantics<parallel>, #tpu.dimension_semantics<arbitrary>], iteration_bounds = array<i64: 2, 1>, scalar_prefetch = 0 : i64, scratch_operands = 0 : i64, tpu.core_type = #tpu.core_type<tc>, window_params = [{transform_indices = @transform_0, window_bounds = array<i64: 1, 64, 3>}, {pipeline_mode = #tpu.pipeline_mode<synchronous>, transform_indices = @transform_1, window_bounds = array<i64: 3, 64>}, {pipeline_mode = #tpu.pipeline_mode<synchronous>, transform_indices = @transform_2, window_bounds = array<i64: 1, 64>}, {pipeline_mode = #tpu.pipeline_mode<synchronous>, transform_indices = @transform_3, window_bounds = array<i64: 64, 128>}, {pipeline_mode = #tpu.pipeline_mode<synchronous>, transform_indices = @transform_4, window_bounds = array<i64: 1, 128>}, {pipeline_mode = #tpu.pipeline_mode<synchronous>, transform_indices = @transform_5, window_bounds = array<i64: 128, 1024>}, {pipeline_mode = #tpu.pipeline_mode<synchronous>, transform_indices = @transform_6, window_bounds = array<i64: 1, 1024>}, {transform_indices = @transform_7, window_bounds = array<i64: 1, 1, 1024>}]} {
    %c0 = arith.constant 0 : index
    %c0_0 = arith.constant 0 : index
    %c0_1 = arith.constant 0 : index
    %0 = vector.load %arg2[%c0, %c0_0, %c0_1] : memref<1x64x3xf32, #tpu.memory_space<vmem>>, vector<1x64x3xf32>
    %1 = vector.shape_cast %0 : vector<1x64x3xf32> to vector<64x3xf32>
    %c0_2 = arith.constant 0 : index
    %c0_3 = arith.constant 0 : index
    %2 = vector.load %arg3[%c0_2, %c0_3] : memref<3x64xf32, #tpu.memory_space<vmem>>, vector<3x64xf32>
    %3 = vector.extract_strided_slice %1 {offsets = [0, 0], sizes = [64, 1], strides = [1, 1]} : vector<64x3xf32> to vector<64x1xf32>
    %4 = vector.extract_strided_slice %2 {offsets = [0, 0], sizes = [1, 64], strides = [1, 1]} : vector<3x64xf32> to vector<1x64xf32>
    %5 = vector.broadcast %3 : vector<64x1xf32> to vector<64x64xf32>
    %6 = vector.broadcast %4 : vector<1x64xf32> to vector<64x64xf32>
    %7 = arith.mulf %5, %6 : vector<64x64xf32>
    %8 = vector.extract_strided_slice %1 {offsets = [0, 1], sizes = [64, 1], strides = [1, 1]} : vector<64x3xf32> to vector<64x1xf32>
    %9 = vector.extract_strided_slice %2 {offsets = [1, 0], sizes = [1, 64], strides = [1, 1]} : vector<3x64xf32> to vector<1x64xf32>
    %10 = vector.broadcast %8 : vector<64x1xf32> to vector<64x64xf32>
    %11 = vector.broadcast %9 : vector<1x64xf32> to vector<64x64xf32>
    %12 = arith.mulf %10, %11 : vector<64x64xf32>
    %13 = arith.addf %7, %12 : vector<64x64xf32>
    %14 = vector.extract_strided_slice %1 {offsets = [0, 2], sizes = [64, 1], strides = [1, 1]} : vector<64x3xf32> to vector<64x1xf32>
    %15 = vector.extract_strided_slice %2 {offsets = [2, 0], sizes = [1, 64], strides = [1, 1]} : vector<3x64xf32> to vector<1x64xf32>
    %16 = vector.broadcast %14 : vector<64x1xf32> to vector<64x64xf32>
    %17 = vector.broadcast %15 : vector<1x64xf32> to vector<64x64xf32>
    %18 = arith.mulf %16, %17 : vector<64x64xf32>
    %19 = arith.addf %13, %18 : vector<64x64xf32>
    %c0_4 = arith.constant 0 : index
    %c0_5 = arith.constant 0 : index
    %20 = vector.load %arg4[%c0_4, %c0_5] : memref<1x64xf32, #tpu.memory_space<vmem>>, vector<1x64xf32>
    %21 = vector.broadcast %20 : vector<1x64xf32> to vector<64x64xf32>
    %22 = arith.addf %19, %21 : vector<64x64xf32>
    %cst = arith.constant 0.000000e+00 : f32
    %23 = vector.broadcast %cst : f32 to vector<64x64xf32>
    %24 = arith.maximumf %22, %23 : vector<64x64xf32>
    %25 = arith.truncf %24 : vector<64x64xf32> to vector<64x64xbf16>
    %c0_6 = arith.constant 0 : index
    %c0_7 = arith.constant 0 : index
    %26 = vector.load %arg5[%c0_6, %c0_7] : memref<64x128xbf16, #tpu.memory_space<vmem>>, vector<64x128xbf16>
    %cst_8 = arith.constant dense<0.000000e+00> : vector<64x128xf32>
    %27 = tpu.matmul %25, %26, %cst_8 {dimension_numbers = #tpu.dot_dimension_numbers<[1], [0], [0], [1], [0, 0, 1, 1], [], []>} : vector<64x64xbf16>, vector<64x128xbf16>, vector<64x128xf32> -> vector<64x128xf32>
    %c0_9 = arith.constant 0 : index
    %c0_10 = arith.constant 0 : index
    %28 = vector.load %arg6[%c0_9, %c0_10] : memref<1x128xf32, #tpu.memory_space<vmem>>, vector<1x128xf32>
    %29 = vector.broadcast %28 : vector<1x128xf32> to vector<64x128xf32>
    %30 = arith.addf %27, %29 : vector<64x128xf32>
    %cst_11 = arith.constant 0.000000e+00 : f32
    %31 = vector.broadcast %cst_11 : f32 to vector<64x128xf32>
    %32 = arith.maximumf %30, %31 : vector<64x128xf32>
    %33 = arith.truncf %32 : vector<64x128xf32> to vector<64x128xbf16>
    %c0_12 = arith.constant 0 : index
    %c0_13 = arith.constant 0 : index
    %34 = vector.load %arg7[%c0_12, %c0_13] : memref<128x1024xbf16, #tpu.memory_space<vmem>>, vector<128x1024xbf16>
    %cst_14 = arith.constant dense<0.000000e+00> : vector<64x1024xf32>
    %35 = tpu.matmul %33, %34, %cst_14 {dimension_numbers = #tpu.dot_dimension_numbers<[1], [0], [0], [1], [0, 0, 1, 1], [], []>} : vector<64x128xbf16>, vector<128x1024xbf16>, vector<64x1024xf32> -> vector<64x1024xf32>
    %c0_15 = arith.constant 0 : index
    %c0_16 = arith.constant 0 : index
    %36 = vector.load %arg8[%c0_15, %c0_16] : memref<1x1024xf32, #tpu.memory_space<vmem>>, vector<1x1024xf32>
    %37 = vector.broadcast %36 : vector<1x1024xf32> to vector<64x1024xf32>
    %38 = arith.addf %35, %37 : vector<64x1024xf32>
    %cst_17 = arith.constant 0.000000e+00 : f32
    %39 = vector.broadcast %cst_17 : f32 to vector<64x1024xf32>
    %40 = arith.maximumf %38, %39 : vector<64x1024xf32>
    %cst_18 = arith.constant dense<0xFF800000> : vector<1024xf32>
    %41 = vector.multi_reduction <maximumf>, %40, %cst_18 [0] : vector<64x1024xf32> to vector<1024xf32>
    %42 = vector.shape_cast %41 : vector<1024xf32> to vector<1x1024xf32>
    %c0_i32 = arith.constant 0 : i32
    %43 = arith.cmpi eq, %arg1, %c0_i32 : i32
    %44 = arith.extui %43 : i1 to i32
    %c0_i32_19 = arith.constant 0 : i32
    %45 = arith.cmpi ne, %44, %c0_i32_19 : i32
    scf.if %45 {
      %cst_26 = arith.constant -1.000000e+30 : f32
      %52 = vector.broadcast %cst_26 : f32 to vector<1x1x1024xf32>
      %c0_27 = arith.constant 0 : index
      %c0_28 = arith.constant 0 : index
      %c0_29 = arith.constant 0 : index
      %53 = vector.load %arg9[%c0_27, %c0_28, %c0_29] : memref<1x1x1024xf32, #tpu.memory_space<vmem>>, vector<1x1x1024xf32>
      tpu.vector_store %arg9[%c0_27, %c0_28, %c0_29], %52 {strides = array<i32>} : memref<1x1x1024xf32, #tpu.memory_space<vmem>>, vector<1x1x1024xf32>,
    } else {
    }
    %c0_20 = arith.constant 0 : index
    %c0_21 = arith.constant 0 : index
    %c0_22 = arith.constant 0 : index
    %46 = vector.load %arg9[%c0_20, %c0_21, %c0_22] : memref<1x1x1024xf32, #tpu.memory_space<vmem>>, vector<1x1x1024xf32>
    %47 = vector.shape_cast %46 : vector<1x1x1024xf32> to vector<1x1024xf32>
    %48 = arith.maximumf %47, %42 : vector<1x1024xf32>
    %c0_23 = arith.constant 0 : index
    %c0_24 = arith.constant 0 : index
    %c0_25 = arith.constant 0 : index
    %49 = vector.load %arg9[%c0_23, %c0_24, %c0_25] : memref<1x1x1024xf32, #tpu.memory_space<vmem>>, vector<1x1x1024xf32>
    %50 = vector.shape_cast %49 : vector<1x1x1024xf32> to vector<1x1024xf32>
    %51 = vector.shape_cast %48 : vector<1x1024xf32> to vector<1x1x1024xf32>
    tpu.vector_store %arg9[%c0_23, %c0_24, %c0_25], %51 {strides = array<i32>} : memref<1x1x1024xf32, #tpu.memory_space<vmem>>, vector<1x1x1024xf32>,
    return
  }
  func.func @transform_0(%arg0: i32, %arg1: i32) -> (i32, i32, i32) {
    %c0_i32 = arith.constant 0 : i32
    %c0_i32_0 = arith.constant 0 : i32
    return %arg0, %arg1, %c0_i32 : i32, i32, i32
  }
  func.func @transform_1(%arg0: i32, %arg1: i32) -> (i32, i32) {
    %c0_i32 = arith.constant 0 : i32
    %c0_i32_0 = arith.constant 0 : i32
    %c0_i32_1 = arith.constant 0 : i32
    return %c0_i32, %c0_i32_0 : i32, i32
  }
  func.func @transform_2(%arg0: i32, %arg1: i32) -> (i32, i32) {
    %c0_i32 = arith.constant 0 : i32
    %c0_i32_0 = arith.constant 0 : i32
    %c0_i32_1 = arith.constant 0 : i32
    return %c0_i32, %c0_i32_0 : i32, i32
  }
  func.func @transform_3(%arg0: i32, %arg1: i32) -> (i32, i32) {
    %c0_i32 = arith.constant 0 : i32
    %c0_i32_0 = arith.constant 0 : i32
    %c0_i32_1 = arith.constant 0 : i32
    return %c0_i32, %c0_i32_0 : i32, i32
  }
  func.func @transform_4(%arg0: i32, %arg1: i32) -> (i32, i32) {
    %c0_i32 = arith.constant 0 : i32
    %c0_i32_0 = arith.constant 0 : i32
    %c0_i32_1 = arith.constant 0 : i32
    return %c0_i32, %c0_i32_0 : i32, i32
  }
  func.func @transform_5(%arg0: i32, %arg1: i32) -> (i32, i32) {
    %c0_i32 = arith.constant 0 : i32
    %c0_i32_0 = arith.constant 0 : i32
    %c0_i32_1 = arith.constant 0 : i32
    return %c0_i32, %c0_i32_0 : i32, i32
  }
  func.func @transform_6(%arg0: i32, %arg1: i32) -> (i32, i32) {
    %c0_i32 = arith.constant 0 : i32
    %c0_i32_0 = arith.constant 0 : i32
    %c0_i32_1 = arith.constant 0 : i32
    return %c0_i32, %c0_i32_0 : i32, i32
  }
  func.func @transform_7(%arg0: i32, %arg1: i32) -> (i32, i32, i32) {
    %c0_i32 = arith.constant 0 : i32
    %c0_i32_0 = arith.constant 0 : i32
    %c0_i32_1 = arith.constant 0 : i32
    return %arg0, %c0_i32, %c0_i32_0 : i32, i32, i32
  }
}

module attributes {stable_mosaic.version = 11 : i64} {
  func.func @_stn_fc_kernel(%arg0: i32, %arg1: memref<2x1024xf32, #tpu.memory_space<vmem>>, %arg2: memref<1024x512xbf16, #tpu.memory_space<vmem>>, %arg3: memref<1x512xf32, #tpu.memory_space<vmem>>, %arg4: memref<512x256xbf16, #tpu.memory_space<vmem>>, %arg5: memref<1x256xf32, #tpu.memory_space<vmem>>, %arg6: memref<256x9xbf16, #tpu.memory_space<vmem>>, %arg7: memref<1x9xf32, #tpu.memory_space<vmem>>, %arg8: memref<2x9xf32, #tpu.memory_space<vmem>>) attributes {dimension_semantics = [#tpu.dimension_semantics<arbitrary>], iteration_bounds = array<i64: 1>, scalar_prefetch = 0 : i64, scratch_operands = 0 : i64, tpu.core_type = #tpu.core_type<tc>, window_params = [{pipeline_mode = #tpu.pipeline_mode<synchronous>, transform_indices = @transform_0, window_bounds = array<i64: 2, 1024>}, {pipeline_mode = #tpu.pipeline_mode<synchronous>, transform_indices = @transform_1, window_bounds = array<i64: 1024, 512>}, {pipeline_mode = #tpu.pipeline_mode<synchronous>, transform_indices = @transform_2, window_bounds = array<i64: 1, 512>}, {pipeline_mode = #tpu.pipeline_mode<synchronous>, transform_indices = @transform_3, window_bounds = array<i64: 512, 256>}, {pipeline_mode = #tpu.pipeline_mode<synchronous>, transform_indices = @transform_4, window_bounds = array<i64: 1, 256>}, {pipeline_mode = #tpu.pipeline_mode<synchronous>, transform_indices = @transform_5, window_bounds = array<i64: 256, 9>}, {pipeline_mode = #tpu.pipeline_mode<synchronous>, transform_indices = @transform_6, window_bounds = array<i64: 1, 9>}, {pipeline_mode = #tpu.pipeline_mode<synchronous>, transform_indices = @transform_7, window_bounds = array<i64: 2, 9>}]} {
    %c0 = arith.constant 0 : index
    %c0_0 = arith.constant 0 : index
    %0 = vector.load %arg1[%c0, %c0_0] : memref<2x1024xf32, #tpu.memory_space<vmem>>, vector<2x1024xf32>
    %1 = arith.truncf %0 : vector<2x1024xf32> to vector<2x1024xbf16>
    %c0_1 = arith.constant 0 : index
    %c0_2 = arith.constant 0 : index
    %2 = vector.load %arg2[%c0_1, %c0_2] : memref<1024x512xbf16, #tpu.memory_space<vmem>>, vector<1024x512xbf16>
    %cst = arith.constant dense<0.000000e+00> : vector<2x512xf32>
    %3 = tpu.matmul %1, %2, %cst {dimension_numbers = #tpu.dot_dimension_numbers<[1], [0], [0], [1], [0, 0, 1, 1], [], []>} : vector<2x1024xbf16>, vector<1024x512xbf16>, vector<2x512xf32> -> vector<2x512xf32>
    %c0_3 = arith.constant 0 : index
    %c0_4 = arith.constant 0 : index
    %4 = vector.load %arg3[%c0_3, %c0_4] : memref<1x512xf32, #tpu.memory_space<vmem>>, vector<1x512xf32>
    %5 = vector.broadcast %4 : vector<1x512xf32> to vector<2x512xf32>
    %6 = arith.addf %3, %5 : vector<2x512xf32>
    %cst_5 = arith.constant 0.000000e+00 : f32
    %7 = vector.broadcast %cst_5 : f32 to vector<2x512xf32>
    %8 = arith.maximumf %6, %7 : vector<2x512xf32>
    %9 = arith.truncf %8 : vector<2x512xf32> to vector<2x512xbf16>
    %c0_6 = arith.constant 0 : index
    %c0_7 = arith.constant 0 : index
    %10 = vector.load %arg4[%c0_6, %c0_7] : memref<512x256xbf16, #tpu.memory_space<vmem>>, vector<512x256xbf16>
    %cst_8 = arith.constant dense<0.000000e+00> : vector<2x256xf32>
    %11 = tpu.matmul %9, %10, %cst_8 {dimension_numbers = #tpu.dot_dimension_numbers<[1], [0], [0], [1], [0, 0, 1, 1], [], []>} : vector<2x512xbf16>, vector<512x256xbf16>, vector<2x256xf32> -> vector<2x256xf32>
    %c0_9 = arith.constant 0 : index
    %c0_10 = arith.constant 0 : index
    %12 = vector.load %arg5[%c0_9, %c0_10] : memref<1x256xf32, #tpu.memory_space<vmem>>, vector<1x256xf32>
    %13 = vector.broadcast %12 : vector<1x256xf32> to vector<2x256xf32>
    %14 = arith.addf %11, %13 : vector<2x256xf32>
    %cst_11 = arith.constant 0.000000e+00 : f32
    %15 = vector.broadcast %cst_11 : f32 to vector<2x256xf32>
    %16 = arith.maximumf %14, %15 : vector<2x256xf32>
    %17 = arith.truncf %16 : vector<2x256xf32> to vector<2x256xbf16>
    %c0_12 = arith.constant 0 : index
    %c0_13 = arith.constant 0 : index
    %18 = vector.load %arg6[%c0_12, %c0_13] : memref<256x9xbf16, #tpu.memory_space<vmem>>, vector<256x9xbf16>
    %cst_14 = arith.constant dense<0.000000e+00> : vector<2x9xf32>
    %19 = tpu.matmul %17, %18, %cst_14 {dimension_numbers = #tpu.dot_dimension_numbers<[1], [0], [0], [1], [0, 0, 1, 1], [], []>} : vector<2x256xbf16>, vector<256x9xbf16>, vector<2x9xf32> -> vector<2x9xf32>
    %c0_15 = arith.constant 0 : index
    %c0_16 = arith.constant 0 : index
    %20 = vector.load %arg7[%c0_15, %c0_16] : memref<1x9xf32, #tpu.memory_space<vmem>>, vector<1x9xf32>
    %21 = vector.broadcast %20 : vector<1x9xf32> to vector<2x9xf32>
    %22 = arith.addf %19, %21 : vector<2x9xf32>
    %c0_17 = arith.constant 0 : index
    %c0_18 = arith.constant 0 : index
    %23 = vector.load %arg8[%c0_17, %c0_18] : memref<2x9xf32, #tpu.memory_space<vmem>>, vector<2x9xf32>
    tpu.vector_store %arg8[%c0_17, %c0_18], %22 {strides = array<i32>} : memref<2x9xf32, #tpu.memory_space<vmem>>, vector<2x9xf32>,
    return
  }
  func.func @transform_0(%arg0: i32) -> (i32, i32) {
    %c0_i32 = arith.constant 0 : i32
    %c0_i32_0 = arith.constant 0 : i32
    %c0_i32_1 = arith.constant 0 : i32
    return %c0_i32, %c0_i32_0 : i32, i32
  }
  func.func @transform_1(%arg0: i32) -> (i32, i32) {
    %c0_i32 = arith.constant 0 : i32
    %c0_i32_0 = arith.constant 0 : i32
    %c0_i32_1 = arith.constant 0 : i32
    return %c0_i32, %c0_i32_0 : i32, i32
  }
  func.func @transform_2(%arg0: i32) -> (i32, i32) {
    %c0_i32 = arith.constant 0 : i32
    %c0_i32_0 = arith.constant 0 : i32
    %c0_i32_1 = arith.constant 0 : i32
    return %c0_i32, %c0_i32_0 : i32, i32
  }
  func.func @transform_3(%arg0: i32) -> (i32, i32) {
    %c0_i32 = arith.constant 0 : i32
    %c0_i32_0 = arith.constant 0 : i32
    %c0_i32_1 = arith.constant 0 : i32
    return %c0_i32, %c0_i32_0 : i32, i32
  }
  func.func @transform_4(%arg0: i32) -> (i32, i32) {
    %c0_i32 = arith.constant 0 : i32
    %c0_i32_0 = arith.constant 0 : i32
    %c0_i32_1 = arith.constant 0 : i32
    return %c0_i32, %c0_i32_0 : i32, i32
  }
  func.func @transform_5(%arg0: i32) -> (i32, i32) {
    %c0_i32 = arith.constant 0 : i32
    %c0_i32_0 = arith.constant 0 : i32
    %c0_i32_1 = arith.constant 0 : i32
    return %c0_i32, %c0_i32_0 : i32, i32
  }
  func.func @transform_6(%arg0: i32) -> (i32, i32) {
    %c0_i32 = arith.constant 0 : i32
    %c0_i32_0 = arith.constant 0 : i32
    %c0_i32_1 = arith.constant 0 : i32
    return %c0_i32, %c0_i32_0 : i32, i32
  }
  func.func @transform_7(%arg0: i32) -> (i32, i32) {
    %c0_i32 = arith.constant 0 : i32
    %c0_i32_0 = arith.constant 0 : i32
    %c0_i32_1 = arith.constant 0 : i32
    return %c0_i32, %c0_i32_0 : i32, i32
  }
}

module attributes {stable_mosaic.version = 11 : i64} {
  func.func @_pointfeat_kernel(%arg0: i32, %arg1: i32, %arg2: memref<1x64x3xf32, #tpu.memory_space<vmem>>, %arg3: memref<1x3x3xf32, #tpu.memory_space<vmem>>, %arg4: memref<3x64xf32, #tpu.memory_space<vmem>>, %arg5: memref<1x64xf32, #tpu.memory_space<vmem>>, %arg6: memref<64x128xbf16, #tpu.memory_space<vmem>>, %arg7: memref<1x128xf32, #tpu.memory_space<vmem>>, %arg8: memref<128x1024xbf16, #tpu.memory_space<vmem>>, %arg9: memref<1x1024xf32, #tpu.memory_space<vmem>>, %arg10: memref<1x64x64xbf16, #tpu.memory_space<vmem>>, %arg11: memref<1x1x1024xf32, #tpu.memory_space<vmem>>) attributes {dimension_semantics = [#tpu.dimension_semantics<parallel>, #tpu.dimension_semantics<arbitrary>], iteration_bounds = array<i64: 2, 1>, scalar_prefetch = 0 : i64, scratch_operands = 0 : i64, tpu.core_type = #tpu.core_type<tc>, window_params = [{transform_indices = @transform_0, window_bounds = array<i64: 1, 64, 3>}, {transform_indices = @transform_1, window_bounds = array<i64: 1, 3, 3>}, {pipeline_mode = #tpu.pipeline_mode<synchronous>, transform_indices = @transform_2, window_bounds = array<i64: 3, 64>}, {pipeline_mode = #tpu.pipeline_mode<synchronous>, transform_indices = @transform_3, window_bounds = array<i64: 1, 64>}, {pipeline_mode = #tpu.pipeline_mode<synchronous>, transform_indices = @transform_4, window_bounds = array<i64: 64, 128>}, {pipeline_mode = #tpu.pipeline_mode<synchronous>, transform_indices = @transform_5, window_bounds = array<i64: 1, 128>}, {pipeline_mode = #tpu.pipeline_mode<synchronous>, transform_indices = @transform_6, window_bounds = array<i64: 128, 1024>}, {pipeline_mode = #tpu.pipeline_mode<synchronous>, transform_indices = @transform_7, window_bounds = array<i64: 1, 1024>}, {transform_indices = @transform_8, window_bounds = array<i64: 1, 64, 64>}, {transform_indices = @transform_9, window_bounds = array<i64: 1, 1, 1024>}]} {
    %c0 = arith.constant 0 : index
    %c0_0 = arith.constant 0 : index
    %c0_1 = arith.constant 0 : index
    %0 = vector.load %arg2[%c0, %c0_0, %c0_1] : memref<1x64x3xf32, #tpu.memory_space<vmem>>, vector<1x64x3xf32>
    %1 = vector.shape_cast %0 : vector<1x64x3xf32> to vector<64x3xf32>
    %c0_2 = arith.constant 0 : index
    %c0_3 = arith.constant 0 : index
    %c0_4 = arith.constant 0 : index
    %2 = vector.load %arg3[%c0_2, %c0_3, %c0_4] : memref<1x3x3xf32, #tpu.memory_space<vmem>>, vector<1x3x3xf32>
    %3 = vector.shape_cast %2 : vector<1x3x3xf32> to vector<3x3xf32>
    %c0_5 = arith.constant 0 : index
    %c0_6 = arith.constant 0 : index
    %4 = vector.load %arg4[%c0_5, %c0_6] : memref<3x64xf32, #tpu.memory_space<vmem>>, vector<3x64xf32>
    %5 = vector.extract_strided_slice %3 {offsets = [0, 0], sizes = [3, 1], strides = [1, 1]} : vector<3x3xf32> to vector<3x1xf32>
    %6 = vector.extract_strided_slice %4 {offsets = [0, 0], sizes = [1, 64], strides = [1, 1]} : vector<3x64xf32> to vector<1x64xf32>
    %7 = vector.broadcast %5 : vector<3x1xf32> to vector<3x64xf32>
    %8 = vector.broadcast %6 : vector<1x64xf32> to vector<3x64xf32>
    %9 = arith.mulf %7, %8 : vector<3x64xf32>
    %10 = vector.extract_strided_slice %3 {offsets = [0, 1], sizes = [3, 1], strides = [1, 1]} : vector<3x3xf32> to vector<3x1xf32>
    %11 = vector.extract_strided_slice %4 {offsets = [1, 0], sizes = [1, 64], strides = [1, 1]} : vector<3x64xf32> to vector<1x64xf32>
    %12 = vector.broadcast %10 : vector<3x1xf32> to vector<3x64xf32>
    %13 = vector.broadcast %11 : vector<1x64xf32> to vector<3x64xf32>
    %14 = arith.mulf %12, %13 : vector<3x64xf32>
    %15 = arith.addf %9, %14 : vector<3x64xf32>
    %16 = vector.extract_strided_slice %3 {offsets = [0, 2], sizes = [3, 1], strides = [1, 1]} : vector<3x3xf32> to vector<3x1xf32>
    %17 = vector.extract_strided_slice %4 {offsets = [2, 0], sizes = [1, 64], strides = [1, 1]} : vector<3x64xf32> to vector<1x64xf32>
    %18 = vector.broadcast %16 : vector<3x1xf32> to vector<3x64xf32>
    %19 = vector.broadcast %17 : vector<1x64xf32> to vector<3x64xf32>
    %20 = arith.mulf %18, %19 : vector<3x64xf32>
    %21 = arith.addf %15, %20 : vector<3x64xf32>
    %22 = vector.extract_strided_slice %1 {offsets = [0, 0], sizes = [64, 1], strides = [1, 1]} : vector<64x3xf32> to vector<64x1xf32>
    %23 = vector.extract_strided_slice %21 {offsets = [0, 0], sizes = [1, 64], strides = [1, 1]} : vector<3x64xf32> to vector<1x64xf32>
    %24 = vector.broadcast %22 : vector<64x1xf32> to vector<64x64xf32>
    %25 = vector.broadcast %23 : vector<1x64xf32> to vector<64x64xf32>
    %26 = arith.mulf %24, %25 : vector<64x64xf32>
    %27 = vector.extract_strided_slice %1 {offsets = [0, 1], sizes = [64, 1], strides = [1, 1]} : vector<64x3xf32> to vector<64x1xf32>
    %28 = vector.extract_strided_slice %21 {offsets = [1, 0], sizes = [1, 64], strides = [1, 1]} : vector<3x64xf32> to vector<1x64xf32>
    %29 = vector.broadcast %27 : vector<64x1xf32> to vector<64x64xf32>
    %30 = vector.broadcast %28 : vector<1x64xf32> to vector<64x64xf32>
    %31 = arith.mulf %29, %30 : vector<64x64xf32>
    %32 = arith.addf %26, %31 : vector<64x64xf32>
    %33 = vector.extract_strided_slice %1 {offsets = [0, 2], sizes = [64, 1], strides = [1, 1]} : vector<64x3xf32> to vector<64x1xf32>
    %34 = vector.extract_strided_slice %21 {offsets = [2, 0], sizes = [1, 64], strides = [1, 1]} : vector<3x64xf32> to vector<1x64xf32>
    %35 = vector.broadcast %33 : vector<64x1xf32> to vector<64x64xf32>
    %36 = vector.broadcast %34 : vector<1x64xf32> to vector<64x64xf32>
    %37 = arith.mulf %35, %36 : vector<64x64xf32>
    %38 = arith.addf %32, %37 : vector<64x64xf32>
    %c0_7 = arith.constant 0 : index
    %c0_8 = arith.constant 0 : index
    %39 = vector.load %arg5[%c0_7, %c0_8] : memref<1x64xf32, #tpu.memory_space<vmem>>, vector<1x64xf32>
    %40 = vector.broadcast %39 : vector<1x64xf32> to vector<64x64xf32>
    %41 = arith.addf %38, %40 : vector<64x64xf32>
    %cst = arith.constant 0.000000e+00 : f32
    %42 = vector.broadcast %cst : f32 to vector<64x64xf32>
    %43 = arith.maximumf %41, %42 : vector<64x64xf32>
    %44 = arith.truncf %43 : vector<64x64xf32> to vector<64x64xbf16>
    %c0_9 = arith.constant 0 : index
    %c0_10 = arith.constant 0 : index
    %c0_11 = arith.constant 0 : index
    %45 = vector.load %arg10[%c0_9, %c0_10, %c0_11] : memref<1x64x64xbf16, #tpu.memory_space<vmem>>, vector<1x64x64xbf16>
    %46 = vector.shape_cast %45 : vector<1x64x64xbf16> to vector<64x64xbf16>
    %47 = vector.shape_cast %44 : vector<64x64xbf16> to vector<1x64x64xbf16>
    tpu.vector_store %arg10[%c0_9, %c0_10, %c0_11], %47 {strides = array<i32>} : memref<1x64x64xbf16, #tpu.memory_space<vmem>>, vector<1x64x64xbf16>,
    %48 = arith.truncf %43 : vector<64x64xf32> to vector<64x64xbf16>
    %c0_12 = arith.constant 0 : index
    %c0_13 = arith.constant 0 : index
    %49 = vector.load %arg6[%c0_12, %c0_13] : memref<64x128xbf16, #tpu.memory_space<vmem>>, vector<64x128xbf16>
    %cst_14 = arith.constant dense<0.000000e+00> : vector<64x128xf32>
    %50 = tpu.matmul %48, %49, %cst_14 {dimension_numbers = #tpu.dot_dimension_numbers<[1], [0], [0], [1], [0, 0, 1, 1], [], []>} : vector<64x64xbf16>, vector<64x128xbf16>, vector<64x128xf32> -> vector<64x128xf32>
    %c0_15 = arith.constant 0 : index
    %c0_16 = arith.constant 0 : index
    %51 = vector.load %arg7[%c0_15, %c0_16] : memref<1x128xf32, #tpu.memory_space<vmem>>, vector<1x128xf32>
    %52 = vector.broadcast %51 : vector<1x128xf32> to vector<64x128xf32>
    %53 = arith.addf %50, %52 : vector<64x128xf32>
    %cst_17 = arith.constant 0.000000e+00 : f32
    %54 = vector.broadcast %cst_17 : f32 to vector<64x128xf32>
    %55 = arith.maximumf %53, %54 : vector<64x128xf32>
    %56 = arith.truncf %55 : vector<64x128xf32> to vector<64x128xbf16>
    %c0_18 = arith.constant 0 : index
    %c0_19 = arith.constant 0 : index
    %57 = vector.load %arg8[%c0_18, %c0_19] : memref<128x1024xbf16, #tpu.memory_space<vmem>>, vector<128x1024xbf16>
    %cst_20 = arith.constant dense<0.000000e+00> : vector<64x1024xf32>
    %58 = tpu.matmul %56, %57, %cst_20 {dimension_numbers = #tpu.dot_dimension_numbers<[1], [0], [0], [1], [0, 0, 1, 1], [], []>} : vector<64x128xbf16>, vector<128x1024xbf16>, vector<64x1024xf32> -> vector<64x1024xf32>
    %c0_21 = arith.constant 0 : index
    %c0_22 = arith.constant 0 : index
    %59 = vector.load %arg9[%c0_21, %c0_22] : memref<1x1024xf32, #tpu.memory_space<vmem>>, vector<1x1024xf32>
    %60 = vector.broadcast %59 : vector<1x1024xf32> to vector<64x1024xf32>
    %61 = arith.addf %58, %60 : vector<64x1024xf32>
    %cst_23 = arith.constant dense<0xFF800000> : vector<1024xf32>
    %62 = vector.multi_reduction <maximumf>, %61, %cst_23 [0] : vector<64x1024xf32> to vector<1024xf32>
    %63 = vector.shape_cast %62 : vector<1024xf32> to vector<1x1024xf32>
    %c0_i32 = arith.constant 0 : i32
    %64 = arith.cmpi eq, %arg1, %c0_i32 : i32
    %65 = arith.extui %64 : i1 to i32
    %c0_i32_24 = arith.constant 0 : i32
    %66 = arith.cmpi ne, %65, %c0_i32_24 : i32
    scf.if %66 {
      %cst_31 = arith.constant -1.000000e+30 : f32
      %73 = vector.broadcast %cst_31 : f32 to vector<1x1x1024xf32>
      %c0_32 = arith.constant 0 : index
      %c0_33 = arith.constant 0 : index
      %c0_34 = arith.constant 0 : index
      %74 = vector.load %arg11[%c0_32, %c0_33, %c0_34] : memref<1x1x1024xf32, #tpu.memory_space<vmem>>, vector<1x1x1024xf32>
      tpu.vector_store %arg11[%c0_32, %c0_33, %c0_34], %73 {strides = array<i32>} : memref<1x1x1024xf32, #tpu.memory_space<vmem>>, vector<1x1x1024xf32>,
    } else {
    }
    %c0_25 = arith.constant 0 : index
    %c0_26 = arith.constant 0 : index
    %c0_27 = arith.constant 0 : index
    %67 = vector.load %arg11[%c0_25, %c0_26, %c0_27] : memref<1x1x1024xf32, #tpu.memory_space<vmem>>, vector<1x1x1024xf32>
    %68 = vector.shape_cast %67 : vector<1x1x1024xf32> to vector<1x1024xf32>
    %69 = arith.maximumf %68, %63 : vector<1x1024xf32>
    %c0_28 = arith.constant 0 : index
    %c0_29 = arith.constant 0 : index
    %c0_30 = arith.constant 0 : index
    %70 = vector.load %arg11[%c0_28, %c0_29, %c0_30] : memref<1x1x1024xf32, #tpu.memory_space<vmem>>, vector<1x1x1024xf32>
    %71 = vector.shape_cast %70 : vector<1x1x1024xf32> to vector<1x1024xf32>
    %72 = vector.shape_cast %69 : vector<1x1024xf32> to vector<1x1x1024xf32>
    tpu.vector_store %arg11[%c0_28, %c0_29, %c0_30], %72 {strides = array<i32>} : memref<1x1x1024xf32, #tpu.memory_space<vmem>>, vector<1x1x1024xf32>,
    return
  }
  func.func @transform_0(%arg0: i32, %arg1: i32) -> (i32, i32, i32) {
    %c0_i32 = arith.constant 0 : i32
    %c0_i32_0 = arith.constant 0 : i32
    return %arg0, %arg1, %c0_i32 : i32, i32, i32
  }
  func.func @transform_1(%arg0: i32, %arg1: i32) -> (i32, i32, i32) {
    %c0_i32 = arith.constant 0 : i32
    %c0_i32_0 = arith.constant 0 : i32
    %c0_i32_1 = arith.constant 0 : i32
    return %arg0, %c0_i32, %c0_i32_0 : i32, i32, i32
  }
  func.func @transform_2(%arg0: i32, %arg1: i32) -> (i32, i32) {
    %c0_i32 = arith.constant 0 : i32
    %c0_i32_0 = arith.constant 0 : i32
    %c0_i32_1 = arith.constant 0 : i32
    return %c0_i32, %c0_i32_0 : i32, i32
  }
  func.func @transform_3(%arg0: i32, %arg1: i32) -> (i32, i32) {
    %c0_i32 = arith.constant 0 : i32
    %c0_i32_0 = arith.constant 0 : i32
    %c0_i32_1 = arith.constant 0 : i32
    return %c0_i32, %c0_i32_0 : i32, i32
  }
  func.func @transform_4(%arg0: i32, %arg1: i32) -> (i32, i32) {
    %c0_i32 = arith.constant 0 : i32
    %c0_i32_0 = arith.constant 0 : i32
    %c0_i32_1 = arith.constant 0 : i32
    return %c0_i32, %c0_i32_0 : i32, i32
  }
  func.func @transform_5(%arg0: i32, %arg1: i32) -> (i32, i32) {
    %c0_i32 = arith.constant 0 : i32
    %c0_i32_0 = arith.constant 0 : i32
    %c0_i32_1 = arith.constant 0 : i32
    return %c0_i32, %c0_i32_0 : i32, i32
  }
  func.func @transform_6(%arg0: i32, %arg1: i32) -> (i32, i32) {
    %c0_i32 = arith.constant 0 : i32
    %c0_i32_0 = arith.constant 0 : i32
    %c0_i32_1 = arith.constant 0 : i32
    return %c0_i32, %c0_i32_0 : i32, i32
  }
  func.func @transform_7(%arg0: i32, %arg1: i32) -> (i32, i32) {
    %c0_i32 = arith.constant 0 : i32
    %c0_i32_0 = arith.constant 0 : i32
    %c0_i32_1 = arith.constant 0 : i32
    return %c0_i32, %c0_i32_0 : i32, i32
  }
  func.func @transform_8(%arg0: i32, %arg1: i32) -> (i32, i32, i32) {
    %c0_i32 = arith.constant 0 : i32
    %c0_i32_0 = arith.constant 0 : i32
    return %arg0, %arg1, %c0_i32 : i32, i32, i32
  }
  func.func @transform_9(%arg0: i32, %arg1: i32) -> (i32, i32, i32) {
    %c0_i32 = arith.constant 0 : i32
    %c0_i32_0 = arith.constant 0 : i32
    %c0_i32_1 = arith.constant 0 : i32
    return %arg0, %c0_i32, %c0_i32_0 : i32, i32, i32
  }
}

module attributes {stable_mosaic.version = 11 : i64} {
  func.func @_head_kernel(%arg0: i32, %arg1: i32, %arg2: memref<1x64x64xbf16, #tpu.memory_space<vmem>>, %arg3: memref<1x1x512xf32, #tpu.memory_space<vmem>>, %arg4: memref<64x512xbf16, #tpu.memory_space<vmem>>, %arg5: memref<512x256xbf16, #tpu.memory_space<vmem>>, %arg6: memref<1x256xf32, #tpu.memory_space<vmem>>, %arg7: memref<256x128xbf16, #tpu.memory_space<vmem>>, %arg8: memref<1x128xf32, #tpu.memory_space<vmem>>, %arg9: memref<128x128xbf16, #tpu.memory_space<vmem>>, %arg10: memref<1x128xf32, #tpu.memory_space<vmem>>, %arg11: memref<1x64x128xf32, #tpu.memory_space<vmem>>) attributes {dimension_semantics = [#tpu.dimension_semantics<parallel>, #tpu.dimension_semantics<parallel>], iteration_bounds = array<i64: 2, 1>, scalar_prefetch = 0 : i64, scratch_operands = 0 : i64, tpu.core_type = #tpu.core_type<tc>, window_params = [{transform_indices = @transform_0, window_bounds = array<i64: 1, 64, 64>}, {transform_indices = @transform_1, window_bounds = array<i64: 1, 1, 512>}, {pipeline_mode = #tpu.pipeline_mode<synchronous>, transform_indices = @transform_2, window_bounds = array<i64: 64, 512>}, {pipeline_mode = #tpu.pipeline_mode<synchronous>, transform_indices = @transform_3, window_bounds = array<i64: 512, 256>}, {pipeline_mode = #tpu.pipeline_mode<synchronous>, transform_indices = @transform_4, window_bounds = array<i64: 1, 256>}, {pipeline_mode = #tpu.pipeline_mode<synchronous>, transform_indices = @transform_5, window_bounds = array<i64: 256, 128>}, {pipeline_mode = #tpu.pipeline_mode<synchronous>, transform_indices = @transform_6, window_bounds = array<i64: 1, 128>}, {pipeline_mode = #tpu.pipeline_mode<synchronous>, transform_indices = @transform_7, window_bounds = array<i64: 128, 128>}, {pipeline_mode = #tpu.pipeline_mode<synchronous>, transform_indices = @transform_8, window_bounds = array<i64: 1, 128>}, {transform_indices = @transform_9, window_bounds = array<i64: 1, 64, 128>}]} {
    %c0 = arith.constant 0 : index
    %c0_0 = arith.constant 0 : index
    %c0_1 = arith.constant 0 : index
    %0 = vector.load %arg2[%c0, %c0_0, %c0_1] : memref<1x64x64xbf16, #tpu.memory_space<vmem>>, vector<1x64x64xbf16>
    %1 = vector.shape_cast %0 : vector<1x64x64xbf16> to vector<64x64xbf16>
    %c0_2 = arith.constant 0 : index
    %c0_3 = arith.constant 0 : index
    %2 = vector.load %arg4[%c0_2, %c0_3] : memref<64x512xbf16, #tpu.memory_space<vmem>>, vector<64x512xbf16>
    %cst = arith.constant dense<0.000000e+00> : vector<64x512xf32>
    %3 = tpu.matmul %1, %2, %cst {dimension_numbers = #tpu.dot_dimension_numbers<[1], [0], [0], [1], [0, 0, 1, 1], [], []>} : vector<64x64xbf16>, vector<64x512xbf16>, vector<64x512xf32> -> vector<64x512xf32>
    %c0_4 = arith.constant 0 : index
    %c0_5 = arith.constant 0 : index
    %c0_6 = arith.constant 0 : index
    %4 = vector.load %arg3[%c0_4, %c0_5, %c0_6] : memref<1x1x512xf32, #tpu.memory_space<vmem>>, vector<1x1x512xf32>
    %5 = vector.shape_cast %4 : vector<1x1x512xf32> to vector<1x512xf32>
    %6 = vector.broadcast %5 : vector<1x512xf32> to vector<64x512xf32>
    %7 = arith.addf %3, %6 : vector<64x512xf32>
    %cst_7 = arith.constant 0.000000e+00 : f32
    %8 = vector.broadcast %cst_7 : f32 to vector<64x512xf32>
    %9 = arith.maximumf %7, %8 : vector<64x512xf32>
    %10 = arith.truncf %9 : vector<64x512xf32> to vector<64x512xbf16>
    %c0_8 = arith.constant 0 : index
    %c0_9 = arith.constant 0 : index
    %11 = vector.load %arg5[%c0_8, %c0_9] : memref<512x256xbf16, #tpu.memory_space<vmem>>, vector<512x256xbf16>
    %cst_10 = arith.constant dense<0.000000e+00> : vector<64x256xf32>
    %12 = tpu.matmul %10, %11, %cst_10 {dimension_numbers = #tpu.dot_dimension_numbers<[1], [0], [0], [1], [0, 0, 1, 1], [], []>} : vector<64x512xbf16>, vector<512x256xbf16>, vector<64x256xf32> -> vector<64x256xf32>
    %c0_11 = arith.constant 0 : index
    %c0_12 = arith.constant 0 : index
    %13 = vector.load %arg6[%c0_11, %c0_12] : memref<1x256xf32, #tpu.memory_space<vmem>>, vector<1x256xf32>
    %14 = vector.broadcast %13 : vector<1x256xf32> to vector<64x256xf32>
    %15 = arith.addf %12, %14 : vector<64x256xf32>
    %cst_13 = arith.constant 0.000000e+00 : f32
    %16 = vector.broadcast %cst_13 : f32 to vector<64x256xf32>
    %17 = arith.maximumf %15, %16 : vector<64x256xf32>
    %18 = arith.truncf %17 : vector<64x256xf32> to vector<64x256xbf16>
    %c0_14 = arith.constant 0 : index
    %c0_15 = arith.constant 0 : index
    %19 = vector.load %arg7[%c0_14, %c0_15] : memref<256x128xbf16, #tpu.memory_space<vmem>>, vector<256x128xbf16>
    %cst_16 = arith.constant dense<0.000000e+00> : vector<64x128xf32>
    %20 = tpu.matmul %18, %19, %cst_16 {dimension_numbers = #tpu.dot_dimension_numbers<[1], [0], [0], [1], [0, 0, 1, 1], [], []>} : vector<64x256xbf16>, vector<256x128xbf16>, vector<64x128xf32> -> vector<64x128xf32>
    %c0_17 = arith.constant 0 : index
    %c0_18 = arith.constant 0 : index
    %21 = vector.load %arg8[%c0_17, %c0_18] : memref<1x128xf32, #tpu.memory_space<vmem>>, vector<1x128xf32>
    %22 = vector.broadcast %21 : vector<1x128xf32> to vector<64x128xf32>
    %23 = arith.addf %20, %22 : vector<64x128xf32>
    %cst_19 = arith.constant 0.000000e+00 : f32
    %24 = vector.broadcast %cst_19 : f32 to vector<64x128xf32>
    %25 = arith.maximumf %23, %24 : vector<64x128xf32>
    %26 = arith.truncf %25 : vector<64x128xf32> to vector<64x128xbf16>
    %c0_20 = arith.constant 0 : index
    %c0_21 = arith.constant 0 : index
    %27 = vector.load %arg9[%c0_20, %c0_21] : memref<128x128xbf16, #tpu.memory_space<vmem>>, vector<128x128xbf16>
    %cst_22 = arith.constant dense<0.000000e+00> : vector<64x128xf32>
    %28 = tpu.matmul %26, %27, %cst_22 {dimension_numbers = #tpu.dot_dimension_numbers<[1], [0], [0], [1], [0, 0, 1, 1], [], []>} : vector<64x128xbf16>, vector<128x128xbf16>, vector<64x128xf32> -> vector<64x128xf32>
    %c0_23 = arith.constant 0 : index
    %c0_24 = arith.constant 0 : index
    %29 = vector.load %arg10[%c0_23, %c0_24] : memref<1x128xf32, #tpu.memory_space<vmem>>, vector<1x128xf32>
    %30 = vector.broadcast %29 : vector<1x128xf32> to vector<64x128xf32>
    %31 = arith.addf %28, %30 : vector<64x128xf32>
    %cst_25 = arith.constant dense<0xFF800000> : vector<64xf32>
    %32 = vector.multi_reduction <maximumf>, %31, %cst_25 [1] : vector<64x128xf32> to vector<64xf32>
    %33 = vector.shape_cast %32 : vector<64xf32> to vector<64x1xf32>
    %34 = vector.broadcast %33 : vector<64x1xf32> to vector<64x128xf32>
    %35 = arith.subf %31, %34 : vector<64x128xf32>
    %36 = math.exp %35 : vector<64x128xf32>
    %cst_26 = arith.constant dense<0.000000e+00> : vector<64xf32>
    %37 = vector.multi_reduction <add>, %36, %cst_26 [1] : vector<64x128xf32> to vector<64xf32>
    %38 = vector.shape_cast %37 : vector<64xf32> to vector<64x1xf32>
    %39 = math.log %38 : vector<64x1xf32>
    %40 = arith.addf %33, %39 : vector<64x1xf32>
    %41 = vector.broadcast %40 : vector<64x1xf32> to vector<64x128xf32>
    %42 = arith.subf %31, %41 : vector<64x128xf32>
    %c0_27 = arith.constant 0 : index
    %c0_28 = arith.constant 0 : index
    %c0_29 = arith.constant 0 : index
    %43 = vector.load %arg11[%c0_27, %c0_28, %c0_29] : memref<1x64x128xf32, #tpu.memory_space<vmem>>, vector<1x64x128xf32>
    %44 = vector.shape_cast %43 : vector<1x64x128xf32> to vector<64x128xf32>
    %45 = vector.shape_cast %42 : vector<64x128xf32> to vector<1x64x128xf32>
    tpu.vector_store %arg11[%c0_27, %c0_28, %c0_29], %45 {strides = array<i32>} : memref<1x64x128xf32, #tpu.memory_space<vmem>>, vector<1x64x128xf32>,
    return
  }
  func.func @transform_0(%arg0: i32, %arg1: i32) -> (i32, i32, i32) {
    %c0_i32 = arith.constant 0 : i32
    %c0_i32_0 = arith.constant 0 : i32
    return %arg0, %arg1, %c0_i32 : i32, i32, i32
  }
  func.func @transform_1(%arg0: i32, %arg1: i32) -> (i32, i32, i32) {
    %c0_i32 = arith.constant 0 : i32
    %c0_i32_0 = arith.constant 0 : i32
    %c0_i32_1 = arith.constant 0 : i32
    return %arg0, %c0_i32, %c0_i32_0 : i32, i32, i32
  }
  func.func @transform_2(%arg0: i32, %arg1: i32) -> (i32, i32) {
    %c0_i32 = arith.constant 0 : i32
    %c0_i32_0 = arith.constant 0 : i32
    %c0_i32_1 = arith.constant 0 : i32
    return %c0_i32, %c0_i32_0 : i32, i32
  }
  func.func @transform_3(%arg0: i32, %arg1: i32) -> (i32, i32) {
    %c0_i32 = arith.constant 0 : i32
    %c0_i32_0 = arith.constant 0 : i32
    %c0_i32_1 = arith.constant 0 : i32
    return %c0_i32, %c0_i32_0 : i32, i32
  }
  func.func @transform_4(%arg0: i32, %arg1: i32) -> (i32, i32) {
    %c0_i32 = arith.constant 0 : i32
    %c0_i32_0 = arith.constant 0 : i32
    %c0_i32_1 = arith.constant 0 : i32
    return %c0_i32, %c0_i32_0 : i32, i32
  }
  func.func @transform_5(%arg0: i32, %arg1: i32) -> (i32, i32) {
    %c0_i32 = arith.constant 0 : i32
    %c0_i32_0 = arith.constant 0 : i32
    %c0_i32_1 = arith.constant 0 : i32
    return %c0_i32, %c0_i32_0 : i32, i32
  }
  func.func @transform_6(%arg0: i32, %arg1: i32) -> (i32, i32) {
    %c0_i32 = arith.constant 0 : i32
    %c0_i32_0 = arith.constant 0 : i32
    %c0_i32_1 = arith.constant 0 : i32
    return %c0_i32, %c0_i32_0 : i32, i32
  }
  func.func @transform_7(%arg0: i32, %arg1: i32) -> (i32, i32) {
    %c0_i32 = arith.constant 0 : i32
    %c0_i32_0 = arith.constant 0 : i32
    %c0_i32_1 = arith.constant 0 : i32
    return %c0_i32, %c0_i32_0 : i32, i32
  }
  func.func @transform_8(%arg0: i32, %arg1: i32) -> (i32, i32) {
    %c0_i32 = arith.constant 0 : i32
    %c0_i32_0 = arith.constant 0 : i32
    %c0_i32_1 = arith.constant 0 : i32
    return %c0_i32, %c0_i32_0 : i32, i32
  }
  func.func @transform_9(%arg0: i32, %arg1: i32) -> (i32, i32, i32) {
    %c0_i32 = arith.constant 0 : i32
    %c0_i32_0 = arith.constant 0 : i32
    return %arg0, %arg1, %c0_i32 : i32, i32, i32
  }
}

</mosaic_0001>

<bundles_post_ra>
// kernel: pointnet_densecls_forward.4
= control target key start
LH: loop header
LB: loop body
LE: loop exit
PB: predicated region body
PF: predicated region fallthrough
CT: control target
= control target key end

     0   :  { %12 = vsyncpa [#allocation3], 0  ;;  %s2715_s0 = inlined_call_operand.vmem [shape: f32[2,64,3], index: 0, kind: input, shape index: {}]   ;;  %s2716_s1 = inlined_call_operand.hbm [shape: f32[3,64], index: 1, kind: input, shape index: {}]   ;;  %s2717_s2 = inlined_call_operand.hbm [shape: f32[1,64], index: 2, kind: input, shape index: {}]   ;;  %s2718_s3 = inlined_call_operand.hbm [shape: bf16[64,128], index: 3, kind: input, shape index: {}]   ;;  %s2719_s4 = inlined_call_operand.hbm [shape: f32[1,128], index: 4, kind: input, shape index: {}]   ;;  %s2720_s5 = inlined_call_operand.hbm [shape: bf16[128,1024], index: 5, kind: input, shape index: {}]   ;;  %s2721_s6 = inlined_call_operand.hbm [shape: f32[1,1024], index: 6, kind: input, shape index: {}]   ;;  %s2722_s7 = inlined_call_operand.vmem [shape: f32[2,1,1024], index: 7, kind: output, shape index: {}]  }
   0x1   :  { %13 = vsyncpa [#allocation5], 0 }
   0x2   :  { %14 = vsyncpa [#allocation8], 0 }
   0x3   :  { %15 = vsyncpa [#allocation11], 0  ;;  %s2286_s24 = smov 0   ;;  %s2288_s25 = smov 0  }
   0x4   :  { %s2290_s26 = smov 0  }
   0x5 LB: > { %s2232_s27 = smov [#allocation4]   ;;  %s1787_s29 = sadd.s32 4294967295, %s2230_s26   ;;  %s2230_s26 = sphi %s2290_s26, %s21_s26   ;;  %s2226_s25 = sphi %s2288_s25, %s2735_s25   ;;  %s2222_s24 = sphi %s2286_s24, %s2734_s24  }
   0x6   : > { %s242_s28 = sshll.u32 %s2232_s27, 4  ;;  %p1789_p0 = scmp.ge.s32.totalorder %s2230_s26, 1  ;;  %s243_s28 = int_to_ptr.vmem [resolvable:$true] %s242_s28 }
   0x7   : > { %p218_p1 = scmp.lt.s32.totalorder %s2230_s26, 3  ;;  %p2304_p2 = scmp.eq.s32.totalorder %s1787_s29, 0 }
   0x8   : > { %s2233_s9 = smov [#allocation7]   ;;  %s33_s12 = sadd.s32 1, %s2226_s25 }
   0x9   : > { %s2726_s30 = scalar_select %p2304_p2, 1, 0 }
   0xa   : > { %p2308_p3 = pnand %p1789_p0, %p218_p1  ;;  %s266_s10 = sshll.u32 %s2233_s9, 4  ;;  %s267_s10 = int_to_ptr.vmem [resolvable:$true] %s266_s10 }
   0xb   : > { %p2321_p6 = scmp.ge.s32.totalorder %s33_s12, 2  ;;  %s2047_s15 = scalar_lea.vmem %s243_s28, 16 }
   0xc   : > { %s2727_s8 = scalar_select %p2308_p3, 1, 0 }
   0xd   : > { %p1948_p4 = pneg %p2308_p3  ;;  %p2048_p8 = scmp.ne.s32.totalorder %s243_s28, %s2047_s15 }
   0xe   : > { %s2729_s13 = scalar_select %p2321_p6, 1, 0 }
   0xf   : > { %p2316_p5 = pnand %p2304_p2, %p1948_p4  ;;  %s2054_s16 = scalar_lea.vmem %s243_s28, 32 }
  0x10   : > { %p2055_p11 = scmp.lt.s32.totalorder %s243_s28, %s243_s28  ;;  %p2056_p12 = scmp.lt.s32.totalorder %s2054_s16, %s2047_s15 }
  0x11   : > { %p2327_p7 = pneg %p2316_p5 }
  0x12   : > { %p2057_p13 = por %p2056_p12, %p2055_p11 }
  0x13   : > { %p2050_p9 = pnand %p2048_p8, %p2327_p7 }
  0x15   : > { %p2051_p10 = pneg %p2050_p9 }
  0x17   : > { %p2058_p0 = pnand %p2057_p13, %p2051_p10 }
  0x19   : > { %2061 = shalt.err (!%p2058_p0)
}
  0x1a   : > { %1954 = dma.hbm_to_vmem [thread:$0]  (!%p2316_p5), %s2717_s2, 16, %s243_s28, [#allocation5]  }
  0x1b   : > { %s2073_s19 = scalar_lea.vmem %s267_s10, 16  ;;  %s2080_s20 = scalar_lea.vmem %s267_s10, 32 }
  0x1c   : > { %p2074_p1 = scmp.ne.s32.totalorder %s267_s10, %s2073_s19  ;;  %p2081_p8 = scmp.lt.s32.totalorder %s267_s10, %s267_s10 }
  0x1d   : > { %p2082_p9 = scmp.lt.s32.totalorder %s2080_s20, %s2073_s19 }
  0x1e   : > { %p2076_p4 = pnand %p2074_p1, %p2327_p7 }
  0x1f   : > { %p2083_p3 = por %p2082_p9, %p2081_p8 }
  0x20   : > { %p2077_p2 = pneg %p2076_p4 }
  0x22   : > { %p2084_p6 = pnand %p2083_p3, %p2077_p2 }
  0x24   : > { %2087 = shalt.err (!%p2084_p6)
}
  0x25   : > { %1960 = dma.hbm_to_vmem [thread:$0]  (!%p2316_p5), %s2719_s4, 16, %s267_s10, [#allocation8]  }
  0x26   : > { %p2731_p10 = scmp.ne.s32.totalorder %s2729_s13, 0  ;;  %s2234_s23 = smov [#allocation2]  }
  0x27   : > { %s231_s27 = sshll.u32 %s2234_s23, 4  ;;  %s2235_s28 = smov [#allocation6]   ;;  %s232_s27 = int_to_ptr.vmem [resolvable:$true] %s231_s27 }
  0x28   : > { %s2737_s12 = smov (%p2731_p10, %s33_s12), 0  ;;  %s252_s29 = sshll.u32 %s2235_s28, 4  ;;  %s253_s29 = int_to_ptr.vmem [resolvable:$true] %s252_s29 }
  0x29   : > { %s2099_s9 = scalar_lea.vmem %s232_s27, 64  ;;  %p2107_p6 = scmp.lt.s32.totalorder %s232_s27, %s232_s27 }
  0x2a   : > { %p2100_p11 = scmp.ne.s32.totalorder %s232_s27, %s2099_s9  ;;  %p2108_p12 = scmp.lt.s32.totalorder %s2099_s9, %s2099_s9 }
  0x2c   : > { %p2102_p2 = pnand %p2100_p11, %p2327_p7  ;;  %p2109_p13 = por %p2108_p12, %p2107_p6 }
  0x2e   : > { %p2103_p3 = pneg %p2102_p2 }
  0x30   : > { %p2110_p0 = pnand %p2109_p13, %p2103_p3 }
  0x32   : > { %2113 = shalt.err (!%p2110_p0)
}
  0x33   : > { %1951 = dma.hbm_to_vmem [thread:$0]  (!%p2316_p5), %s2716_s1, 64, %s232_s27, [#allocation3]  }
  0x34   : > { %s2125_s15 = scalar_lea.vmem %s253_s29, 512  ;;  %p2133_p9 = scmp.lt.s32.totalorder %s253_s29, %s253_s29 }
  0x35   : > { %p2126_p1 = scmp.ne.s32.totalorder %s253_s29, %s2125_s15  ;;  %p2134_p10 = scmp.lt.s32.totalorder %s2125_s15, %s2125_s15 }
  0x37   : > { %p2128_p4 = pnand %p2126_p1, %p2327_p7  ;;  %p2135_p11 = por %p2134_p10, %p2133_p9 }
  0x39   : > { %p2129_p8 = pneg %p2128_p4 }
  0x3b   : > { %p2136_p2 = pnand %p2135_p11, %p2129_p8 }
  0x3d   : > { %2139 = shalt.err (!%p2136_p2)
}
  0x3e   : > { %s2236_s16 = smov 64   ;;  %s2237_s17 = smov 4  }
  0x3f   : > { %1957 = dma.hbm_to_vmem [thread:$0]  (!%p2316_p5), %s2718_s3, 512, %s253_s29, [#allocation5], %s2236_s16, %s2236_s16, %s2237_s17  }
  0x40   : > { %s2238_s20 = smov [#allocation9]  }
  0x41   : > { %s276_s21 = sshll.u32 %s2238_s20, 4  ;;  %s277_s21 = int_to_ptr.vmem [resolvable:$true] %s276_s21 }
  0x42   : > { %s2151_s22 = scalar_lea.vmem %s277_s21, 8192  ;;  %p2159_p13 = scmp.lt.s32.totalorder %s277_s21, %s277_s21 }
  0x43   : > { %p2152_p3 = scmp.ne.s32.totalorder %s277_s21, %s2151_s22  ;;  %p2160_p0 = scmp.lt.s32.totalorder %s2151_s22, %s2151_s22 }
  0x45   : > { %p2154_p6 = pnand %p2152_p3, %p2327_p7  ;;  %p2161_p1 = por %p2160_p0, %p2159_p13 }
  0x47   : > { %p2155_p12 = pneg %p2154_p6 }
  0x49   : > { %p2162_p4 = pnand %p2161_p1, %p2155_p12 }
  0x4b   : > { %2165 = shalt.err (!%p2162_p4)
}
  0x4c   : > { %s2239_s23 = smov 512   ;;  %s2240_s27 = smov 32  }
  0x4d   : > { %1963 = dma.hbm_to_vmem [thread:$0]  (!%p2316_p5), %s2720_s5, 8192, %s277_s21, [#allocation8], %s2239_s23, %s2239_s23, %s2240_s27  }
  0x4e   : > { %s2241_s9 = smov [#allocation10]  }
  0x4f   : > { %s290_s10 = sshll.u32 %s2241_s9, 4  ;;  %s291_s10 = int_to_ptr.vmem [resolvable:$true] %s290_s10 }
  0x50   : > { %s2177_s13 = scalar_lea.vmem %s291_s10, 128  ;;  %p2185_p11 = scmp.lt.s32.totalorder %s291_s10, %s291_s10 }
  0x51   : > { %p2178_p8 = scmp.ne.s32.totalorder %s291_s10, %s2177_s13  ;;  %p2186_p2 = scmp.lt.s32.totalorder %s2177_s13, %s2177_s13 }
  0x53   : > { %p2180_p9 = pnand %p2178_p8, %p2327_p7  ;;  %p2187_p3 = por %p2186_p2, %p2185_p11 }
  0x55   : > { %p2181_p10 = pneg %p2180_p9 }
  0x57   : > { %p2188_p6 = pnand %p2187_p3, %p2181_p10 }
  0x59   : > { %2191 = shalt.err (!%p2188_p6)
}
  0x5a   : > { %1966 = dma.hbm_to_vmem [thread:$0]  (!%p2316_p5), %s2721_s6, 128, %s291_s10, [#allocation11]  }
  0x5b   : > { %p2732_p12 = scmp.ne.s32.totalorder %s2727_s8, 0 }
  0x5c   : > { %p2733_p13 = scmp.ne.s32.totalorder (!%p2732_p12), %s2726_s30, 0 }
  0x5d   : > { %316 = sbr.rel (%p2732_p12) target bundleno = 788 (0x314), region = 48 }
  0x62   : > { %2205 = dma.done.wait (%p2733_p13), [#allocation3], 64  }
  0x63   : > { %2207 = vsyncadd (%p2733_p13), [#allocation3], 4294967232 }
  0x64   : > { %2209 = dma.done.wait (%p2733_p13), [#allocation5], 528  }
  0x65   : > { %2211 = vsyncadd (%p2733_p13), [#allocation5], 4294966768 }
  0x66   : > { %2213 = dma.done.wait (%p2733_p13), [#allocation8], 8208  }
  0x67   : > { %2215 = vsyncadd (%p2733_p13), [#allocation8], 4294959088 }
  0x68   : > { %2217 = dma.done.wait (%p2733_p13), [#allocation11], 128  }
  0x69   : > { %2219 = vsyncadd (%p2733_p13), [#allocation11], 4294967168  ;;  %p372_p5 = scmp.lt.s32.totalorder %s2222_s24, 1  ;;  %v2242_v0 = vmov 1   ;;  %v2243_v1 = vmov 0   ;;  %v2244_v4 = vmov 2   ;;  %v435_v39 = vlaneseq }
  0x6a   : > { %2019 = vset.pattern.permute.xlu1 %v2242_v0  ;;  %2018 = vset.pattern.permute.xlu0 %v2243_v1  ;;  %v2032_v8 = vld [vmem:[#allocation6 + $0x18] sm:$0xff]   ;;  %v2033_v9 = vld [vmem:[#allocation6 + $0x10] sm:$0xff]   ;;  %v2034_v10 = vld [vmem:[#allocation6 + $0x8] sm:$0xff]   ;;  %vm617_vm0 = vcmask 523264  }
  0x6b   : > { %s2739_s24 = smov (!%p372_p5, %s2222_s24), 1  ;;  %1165 = vmatprep.mubr.bf16.mxu1 %v2243_v1  ;;  %1892 = vmatprep.subr.bf16.mxu0 %v2032_v8  ;;  %v2035_v12 = vld [vmem:[#allocation6] sm:$0xff]   ;;  %v2419_v17 = vld [vmem:[#allocation9 + $0x1c8] sm:$0xff]  ;;  %v2427_v41 = vshrl.u32 %v435_v39, 7  ;;  %v394_v46 = vld [vmem:[#allocation2] sm:$0x7] }
  0x6c   : > { %s1883_s8 = sshll.u32 %s2739_s24, 6  ;;  %1893 = vmatpush3.bf16.msra.mxu0 %v2032_v8  ;;  %v763_v15 = vld [vmem:[#allocation9 + $0x1c0] sm:$0xff]  ;;  %v2421_v19 = vld [vmem:[#allocation9 + $0x1e8] sm:$0xff]  ;;  %s1806_s30 = sshll.u32 %s2739_s24, 3 }
  0x6d   : > { %s2405_s17 = scalar_lea.vmem %s2715_s0, %s1883_s8  ;;  %1894 = vmatprep.subr.bf16.mxu0 %v2033_v9  ;;  %v767_v16 = vld [vmem:[#allocation9 + $0x1e0] sm:$0xff]  ;;  %v1875_v23 = vcombine.low %v2419_v17, %v2421_v19  ;;  %v1876_v24 = vcombine.high %v2419_v17, %v2421_v19  ;;  %v437_v44 = vsub.s32 0, %v2427_v41  ;;  %v481_v47 = vsub.s32 1, %v2427_v41  ;;  %v752_v39 = vld [vmem:[#allocation9 + $0x168] sm:$0xff]  ;;  %s384_s20 = scalar_lea.vmem %s2722_s7, %s1806_s30 }
  0x6e   : > { %v386_v2 = vld [vmem:[%s2405_s17] sm:$0xff]  ;;  %v387_v3 = vld [vmem:[%s2405_s17 + $0x8] sm:$0xff]  ;;  %v389_v5 = vld [vmem:[%s2405_s17 + $0x18] sm:$0xff]  ;;  %v1874_v18 = vcombine.high %v763_v15, %v767_v16  ;;  %v1873_v20 = vcombine.low %v763_v15, %v767_v16  ;;  %v533_v48 = vsub.s32 2, %v2427_v41 }
  0x6f   : > { %448 = vperm.xlu1 %2019, %v386_v2   ;;  %397 = vperm.xlu0 %2018, %v386_v2   ;;  %v388_v6 = vld [vmem:[%s2405_s17 + $0x10] sm:$0xff]  ;;  %v390_v7 = vld [vmem:[%s2405_s17 + $0x20] sm:$0xff]  ;;  %v391_v11 = vld [vmem:[%s2405_s17 + $0x28] sm:$0xff]  ;;  %v2434_v49 = vrot.slane %v394_v46, %v437_v44  ;;  %v2438_v51 = vrot.slane %v394_v46, %v481_v47 }
  0x70   : > { %1895 = vmatpush3.bf16.msra.mxu0 %v2033_v9  ;;  %v392_v13 = vld [vmem:[%s2405_s17 + $0x30] sm:$0xff]  ;;  %v393_v14 = vld [vmem:[%s2405_s17 + $0x38] sm:$0xff]  ;;  %v755_v21 = vld [vmem:[#allocation9 + $0x180] sm:$0xff]  ;;  %1133 = vmatprep.subr.bf16.mxu1 %v1874_v18  ;;  %v2442_v52 = vrot.slane %v394_v46, %v533_v48 }
  0x71   : > { %1896 = vmatprep.subr.bf16.mxu0 %v2034_v10  ;;  %v759_v22 = vld [vmem:[#allocation9 + $0x1a0] sm:$0xff]  ;;  %1134 = vmatpush1.bf16.msra.mxu1 %v1873_v20 }
  0x72   : > { %v1866_v25 = vcombine.high %v755_v21, %v759_v22  ;;  %v747_v26 = vld [vmem:[#allocation9 + $0x140] sm:$0xff]  ;;  %v1865_v28 = vcombine.low %v755_v21, %v759_v22 }
  0x73   : > { %452 = vperm.xlu1 %2019, %v387_v3   ;;  %2023 = vset.pattern.permute.xlu0 %v2244_v4  ;;  %v751_v27 = vld [vmem:[#allocation9 + $0x160] sm:$0xff] }
  0x74   : > { %504 = vperm.xlu0 %2023, %v387_v3   ;;  %1897 = vmatpush3.bf16.msra.mxu0 %v2034_v10  ;;  %v1858_v29 = vcombine.high %v747_v26, %v751_v27  ;;  %v739_v30 = vld [vmem:[#allocation9 + $0x100] sm:$0xff]  ;;  %v1857_v32 = vcombine.low %v747_v26, %v751_v27 }
  0x75   : > { %1898 = vmatprep.subr.bf16.mxu0 %v2035_v12  ;;  %1135 = vmatprep.subr.bf16.mxu1 %v1866_v25  ;;  %v743_v31 = vld [vmem:[#allocation9 + $0x120] sm:$0xff] }
  0x76   : > { %1136 = vmatpush1.bf16.msra.mxu1 %v1865_v28  ;;  %v1850_v33 = vcombine.high %v739_v30, %v743_v31  ;;  %v731_v34 = vld [vmem:[#allocation9 + $0xc0] sm:$0xff]  ;;  %v1849_v36 = vcombine.low %v739_v30, %v743_v31  ;;  %v756_v30 = vld [vmem:[#allocation9 + $0x188] sm:$0xff] }
  0x77   : > { %2020 = vset.pattern.permute.xlu1 %v2243_v1  ;;  %1137 = vmatprep.subr.bf16.mxu1 %v1858_v29  ;;  %v735_v35 = vld [vmem:[#allocation9 + $0xe0] sm:$0xff]  ;;  %v760_v31 = vld [vmem:[#allocation9 + $0x1a8] sm:$0xff] }
  0x78   : > { %412 = vperm.xlu1 %2020, %v389_v5   ;;  %2024 = vset.pattern.permute.xlu0 %v2243_v1  ;;  %v1842_v37 = vcombine.high %v731_v34, %v735_v35  ;;  %v1841_v38 = vcombine.low %v731_v34, %v735_v35 }
  0x79   : > { %402 = vperm.xlu0 %2024, %v387_v3   ;;  %1899 = vmatpush3.bf16.msra.mxu0 %v2035_v12 }
  0x7a   : > { %1206 = vmatprep.subr.bf16.mxu0 %v1876_v24  ;;  %1138 = vmatpush1.bf16.msra.mxu1 %v1857_v32 }
  0x7b   : > { %1139 = vmatprep.subr.bf16.mxu1 %v1850_v33 }
  0x7c   : > { %2021 = vset.pattern.permute.xlu1 %v2242_v0 }
  0x7d   : > { %460 = vperm.xlu1 %2021, %v389_v5   ;;  %407 = vperm.xlu0 %2024, %v388_v6  }
  0x7e   : > { %1140 = vmatpush1.bf16.msra.mxu1 %v1849_v36  ;;  %v1868_v36 = vcombine.high %v756_v30, %v760_v31 }
  0x7f   : > { %1141 = vmatprep.subr.bf16.mxu1 %v1842_v37 }
  0x81   : > { %2022 = vset.pattern.permute.xlu1 %v2244_v4  ;;  %417 = vperm.xlu0 %2024, %v390_v7  }
  0x82   : > { %500 = vperm.xlu1 %2022, %v386_v2   ;;  %1142 = vmatpush1.bf16.msra.mxu1 %v1841_v38  ;;  %v2449_v2 = vld [vmem:[#allocation4] ss:$0 sm:$0xff]  ;;  %v748_v38 = vld [vmem:[#allocation9 + $0x148] sm:$0xff] }
  0x85   : > { %2025 = vset.pattern.permute.xlu0 %v2242_v0 }
  0x86   : > { %508 = vperm.xlu1 %2022, %v388_v6   ;;  %456 = vperm.xlu0 %2025, %v388_v6  }
  0x8a   : > { %512 = vperm.xlu1 %2022, %v389_v5   ;;  %468 = vperm.xlu0 %2025, %v391_v11  }
  0x8e   : > { %2026 = vset.pattern.permute.xlu1 %v2243_v1  ;;  %472 = vperm.xlu0 %2025, %v392_v13  }
  0x8f   : > { %422 = vperm.xlu1 %2026, %v391_v11  }
  0x92   : > { %2030 = vset.pattern.permute.xlu0 %v2244_v4 }
  0x93   : > { %2027 = vset.pattern.permute.xlu1 %v2242_v0  ;;  %516 = vperm.xlu0 %2030, %v390_v7  }
  0x94   : > { %464 = vperm.xlu1 %2027, %v390_v7  }
  0x97   : > { %528 = vperm.xlu0 %2030, %v393_v14  }
  0x98   : > { %2028 = vset.pattern.permute.xlu1 %v2243_v1 }
  0x99   : > { %427 = vperm.xlu1 %2028, %v392_v13  }
  0x9d   : > { %432 = vperm.xlu1 %2028, %v393_v14  }
  0xa1   : > { %2029 = vset.pattern.permute.xlu1 %v2242_v0 }
  0xa2   : > { %476 = vperm.xlu1 %2029, %v393_v14  }
  0xa6   : > { %2031 = vset.pattern.permute.xlu1 %v2244_v4 }
  0xa7   : > { %520 = vperm.xlu1 %2031, %v391_v11  }
  0xab   : > { %524 = vperm.xlu1 %2031, %v392_v13  }
  0xea   : > { %v449_v40 = vpop.permute.xlu1 %448  ;;  %v398_v42 = vpop.permute.xlu0 %397 }
  0xeb   : > { %v483_v60 = vmul.f32 %v2438_v51, %v449_v40  ;;  %v439_v61 = vmul.f32 %v2434_v49, %v398_v42  ;;  %v1867_v40 = vcombine.low %v756_v30, %v760_v31  ;;  %v1860_v42 = vcombine.high %v748_v38, %v752_v39 }
  0xed   : > { %v491_v3 = vadd.f32 %v483_v60, %v439_v61 }
  0xee   : > { %v453_v43 = vpop.permute.xlu1 %452 }
  0xef   : > { %v505_v45 = vpop.permute.xlu0 %504  ;;  %v484_v55 = vmul.f32 %v2438_v51, %v453_v43  ;;  %v740_v43 = vld [vmem:[#allocation9 + $0x108] sm:$0xff] }
  0xf0   : > { %v536_v56 = vmul.f32 %v2442_v52, %v505_v45  ;;  %v744_v45 = vld [vmem:[#allocation9 + $0x128] sm:$0xff] }
  0xf3   : > { %v413_v50 = vpop.permute.xlu1 %412 }
  0xf4   : > { %v403_v53 = vpop.permute.xlu0 %402  ;;  %v442_v13 = vmul.f32 %v2434_v49, %v413_v50 }
  0xf5   : > { %v440_v54 = vmul.f32 %v2434_v49, %v403_v53  ;;  %v1859_v53 = vcombine.low %v748_v38, %v752_v39  ;;  %v719_v39 = vld [vmem:[#allocation9 + $0x60] sm:$0xff] }
  0xf7   : > { %v492_v57 = vadd.f32 %v484_v55, %v440_v54  ;;  %v1852_v54 = vcombine.high %v740_v43, %v744_v45  ;;  %v732_v55 = vld [vmem:[#allocation9 + $0xc8] sm:$0xff] }
  0xf8   : > { %v461_v58 = vpop.permute.xlu1 %460  ;;  %v408_v59 = vpop.permute.xlu0 %407 }
  0xf9   : > { %v544_v62 = vadd.f32 %v536_v56, %v492_v57  ;;  %v441_v5 = vmul.f32 %v2434_v49, %v408_v59  ;;  %v486_v10 = vmul.f32 %v2438_v51, %v461_v58  ;;  %v736_v56 = vld [vmem:[#allocation9 + $0xe8] sm:$0xff]  ;;  %v1851_v59 = vcombine.low %v740_v43, %v744_v45 }
  0xfa   : > { %v1844_v19 = vcombine.high %v732_v55, %v736_v56  ;;  %v720_v43 = vld [vmem:[#allocation9 + $0x68] sm:$0xff] }
  0xfb   : > { %v559_v7 = vadd.f32 %v2449_v2, %v544_v62  ;;  %v494_v21 = vadd.f32 %v486_v10, %v442_v13 }
  0xfc   : > { %v418_v63 = vpop.permute.xlu0 %417 }
  0xfd   : > { %v501_v0 = vpop.permute.xlu1 %500  ;;  %v567_v18 = vmax.f32 %v559_v7, 0.0 }
  0xfe   : > { %v535_v4 = vmul.f32 %v2442_v52, %v501_v0  ;;  %v1843_v0 = vcombine.low %v732_v55, %v736_v56  ;;  %v708_v55 = vld [vmem:[#allocation9 + $0x8] sm:$0xff] }
 0x100   : > { %v543_v6 = vadd.f32 %v535_v4, %v491_v3 }
 0x101   : > { %v509_v8 = vpop.permute.xlu1 %508  ;;  %v457_v9 = vpop.permute.xlu0 %456 }
 0x102   : > { %v485_v11 = vmul.f32 %v2438_v51, %v457_v9  ;;  %v558_v12 = vadd.f32 %v2449_v2, %v543_v6  ;;  %v537_v14 = vmul.f32 %v2442_v52, %v509_v8 }
 0x104   : > { %v493_v15 = vadd.f32 %v485_v11, %v441_v5  ;;  %v566_v16 = vmax.f32 %v558_v12, 0.0 }
 0x105   : > { %v513_v20 = vpop.permute.xlu1 %512  ;;  %v469_v35 = vpop.permute.xlu0 %468 }
 0x106   : > { %v545_v22 = vadd.f32 %v537_v14, %v493_v15  ;;  %v538_v24 = vmul.f32 %v2442_v52, %v513_v20  ;;  %v574_v25 = vpack.c.bf16 %v567_v18, %v566_v16  ;;  %v488_v5 = vmul.f32 %v2438_v51, %v469_v35  ;;  %v728_v35 = vld [vmem:[#allocation9 + $0xa8] sm:$0xff] }
 0x108   : > { %v560_v26 = vadd.f32 %v2449_v2, %v545_v22  ;;  %v546_v27 = vadd.f32 %v538_v24, %v494_v21  ;;  %1900 = vmatprep.mubr.msk.bf16.mxu0 %vm617_vm0, %v574_v25 }
 0x109   : > { %v473_v46 = vpop.permute.xlu0 %472 }
 0x10a   : > { %v561_v28 = vadd.f32 %v2449_v2, %v546_v27  ;;  %v423_v29 = vpop.permute.xlu1 %422  ;;  %v568_v32 = vmax.f32 %v560_v26, 0.0  ;;  %v489_v12 = vmul.f32 %v2438_v51, %v473_v46 }
 0x10b   : > { %v444_v6 = vmul.f32 %v2434_v49, %v423_v29 }
 0x10c   : > { %v569_v33 = vmax.f32 %v561_v28, 0.0 }
 0x10d   : > { %v496_v11 = vadd.f32 %v488_v5, %v444_v6 }
 0x10e   : > { %v575_v34 = vpack.c.bf16 %v569_v33, %v568_v32  ;;  %v517_v17 = vpop.permute.xlu0 %516  ;;  %v723_v32 = vld [vmem:[#allocation9 + $0x80] sm:$0xff] }
 0x10f   : > { %v465_v37 = vpop.permute.xlu1 %464  ;;  %v539_v61 = vmul.f32 %v2442_v52, %v517_v17  ;;  %v727_v33 = vld [vmem:[#allocation9 + $0xa0] sm:$0xff] }
 0x110   : > { %1901 = vmatmul.mubr.msk.bf16.vlgmr.msra.gmra.mxu0 %vm617_vm0, %v575_v34  ;;  %v487_v58 = vmul.f32 %v2438_v51, %v465_v37  ;;  %v1834_v34 = vcombine.high %v723_v32, %v727_v33  ;;  %v1833_v38 = vcombine.low %v723_v32, %v727_v33  ;;  %v741_v32 = vld [vmem:[#allocation9 + $0x110] sm:$0xff] }
 0x111   : > { %1207 = vmatpush1.bf16.msra.mxu0 %v1875_v23  ;;  %v443_v23 = vmul.f32 %v2434_v49, %v418_v63 }
 0x112   : > { %1208 = vmatprep.subr.bf16.mxu0 %v1868_v36  ;;  %v529_v4 = vpop.permute.xlu0 %528  ;;  %1143 = vmatprep.subr.bf16.mxu1 %v1834_v34  ;;  %v742_v34 = vld [vmem:[#allocation9 + $0x118] sm:$0xff] }
 0x113   : > { %v495_v60 = vadd.f32 %v487_v58, %v443_v23  ;;  %v542_v63 = vmul.f32 %v2442_v52, %v529_v4  ;;  %1144 = vmatpush1.bf16.msra.mxu1 %v1833_v38  ;;  %v769_v23 = vld [vmem:[#allocation9 + $0x1f0] sm:$0xff] }
 0x114   : > { %v428_v50 = vpop.permute.xlu1 %427 }
 0x115   : > { %1209 = vmatpush1.bf16.msra.mxu0 %v1867_v40  ;;  %v547_v8 = vadd.f32 %v539_v61, %v495_v60  ;;  %v445_v13 = vmul.f32 %v2434_v49, %v428_v50  ;;  %v716_v40 = vld [vmem:[#allocation9 + $0x48] sm:$0xff]  ;;  %v766_v60 = vld [vmem:[#allocation9 + $0x1d8] sm:$0xff] }
 0x116   : > { %1210 = vmatprep.subr.bf16.mxu0 %v1860_v42  ;;  %v1827_v45 = vcombine.low %v716_v40, %v720_v43  ;;  %v1828_v46 = vcombine.high %v716_v40, %v720_v43  ;;  %v733_v40 = vld [vmem:[#allocation9 + $0xd0] sm:$0xff]  ;;  %v734_v43 = vld [vmem:[#allocation9 + $0xd8] sm:$0xff] }
 0x117   : > { %v562_v15 = vadd.f32 %v2449_v2, %v547_v8  ;;  %v497_v21 = vadd.f32 %v489_v12, %v445_v13 }
 0x118   : > { %v433_v57 = vpop.permute.xlu1 %432 }
 0x119   : > { %1211 = vmatpush1.bf16.msra.mxu0 %v1859_v53  ;;  %v446_v7 = vmul.f32 %v2434_v49, %v433_v57  ;;  %v570_v25 = vmax.f32 %v562_v15, 0.0  ;;  %v707_v53 = vld [vmem:[#allocation9] sm:$0xff]  ;;  %v712_v57 = vld [vmem:[#allocation9 + $0x28] sm:$0xff]  ;;  %v758_v15 = vld [vmem:[#allocation9 + $0x198] sm:$0xff] }
 0x11a   : > { %1212 = vmatprep.subr.bf16.mxu0 %v1852_v54  ;;  %v711_v54 = vld [vmem:[#allocation9 + $0x20] sm:$0xff]  ;;  %v1819_v58 = vcombine.low %v708_v55, %v712_v57 }
 0x11b   : > { %v1818_v56 = vcombine.high %v707_v53, %v711_v54  ;;  %v1817_v17 = vcombine.low %v707_v53, %v711_v54 }
 0x11d   : > { %v477_v62 = vpop.permute.xlu1 %476  ;;  %1213 = vmatpush1.bf16.msra.mxu0 %v1851_v59  ;;  %v1820_v59 = vcombine.high %v708_v55, %v712_v57  ;;  %v725_v55 = vld [vmem:[#allocation9 + $0x90] sm:$0xff]  ;;  %v726_v57 = vld [vmem:[#allocation9 + $0x98] sm:$0xff] }
 0x11e   : > { %v490_v3 = vmul.f32 %v2438_v51, %v477_v62  ;;  %1214 = vmatprep.subr.bf16.mxu0 %v1844_v19  ;;  %v765_v19 = vld [vmem:[#allocation9 + $0x1d0] sm:$0xff] }
 0x11f   : > { %v1877_v61 = vcombine.low %v765_v19, %v769_v23  ;;  %v1878_v62 = vcombine.high %v765_v19, %v769_v23 }
 0x120   : > { %v498_v9 = vadd.f32 %v490_v3, %v446_v7  ;;  %v2491_v7 = vld [vmem:[#allocation7] ss:$0 sm:$0xff] }
 0x121   : > { %1215 = vmatpush1.bf16.msra.mxu0 %v1843_v0  ;;  %v770_v0 = vld [vmem:[#allocation9 + $0x1f8] sm:$0xff] }
 0x122   : > { %v521_v10 = vpop.permute.xlu1 %520  ;;  %v550_v16 = vadd.f32 %v542_v63, %v498_v9  ;;  %v2486_v3 = vcombine.low %v766_v60, %v770_v0  ;;  %v2488_v4 = vcombine.high %v766_v60, %v770_v0  ;;  %v717_v60 = vld [vmem:[#allocation9 + $0x50] sm:$0xff]  ;;  %v722_v0 = vld [vmem:[#allocation9 + $0x78] sm:$0xff] }
 0x123   : > { %v540_v14 = vmul.f32 %v2442_v52, %v521_v10 }
 0x124   : > { %v565_v26 = vadd.f32 %v2449_v2, %v550_v16  ;;  %v762_v16 = vld [vmem:[#allocation9 + $0x1b8] sm:$0xff] }
 0x125   : > { %v548_v18 = vadd.f32 %v540_v14, %v496_v11  ;;  %v757_v11 = vld [vmem:[#allocation9 + $0x190] sm:$0xff] }
 0x126   : > { %v525_v20 = vpop.permute.xlu1 %524  ;;  %v573_v29 = vmax.f32 %v565_v26, 0.0  ;;  %v761_v14 = vld [vmem:[#allocation9 + $0x1b0] sm:$0xff] }
 0x127   : > { %v563_v22 = vadd.f32 %v2449_v2, %v548_v18  ;;  %v541_v24 = vmul.f32 %v2442_v52, %v525_v20  ;;  %v724_v52 = vld [vmem:[#allocation9 + $0x88] sm:$0xff]  ;;  %v753_v26 = vld [vmem:[#allocation9 + $0x170] sm:$0xff] }
 0x128   : > { %v1835_v36 = vcombine.low %v724_v52, %v728_v35  ;;  %v1836_v37 = vcombine.high %v724_v52, %v728_v35  ;;  %v745_v52 = vld [vmem:[#allocation9 + $0x130] sm:$0xff]  ;;  %v746_v35 = vld [vmem:[#allocation9 + $0x138] sm:$0xff] }
 0x129   : > { %v571_v27 = vmax.f32 %v563_v22, 0.0  ;;  %v549_v28 = vadd.f32 %v541_v24, %v497_v21  ;;  %v1870_v21 = vcombine.high %v757_v11, %v761_v14  ;;  %v2498_v22 = vcombine.high %v758_v15, %v762_v16  ;;  %v749_v24 = vld [vmem:[#allocation9 + $0x150] sm:$0xff] }
 0x12a   : > { %1216 = vmatprep.subr.bf16.mxu0 %v1836_v37  ;;  %v1861_v37 = vcombine.low %v749_v24, %v753_v26 }
 0x12b   : > { %v576_v51 = vpack.c.bf16 %v571_v27, %v570_v25  ;;  %v564_v49 = vadd.f32 %v2449_v2, %v549_v28  ;;  %v715_v2 = vld [vmem:[#allocation9 + $0x40] sm:$0xff]  ;;  %1217 = vmatpush1.bf16.msra.mxu0 %v1835_v36  ;;  %v750_v27 = vld [vmem:[#allocation9 + $0x158] sm:$0xff] }
 0x12c   : > { %v1826_v42 = vcombine.high %v715_v2, %v719_v39  ;;  %v1825_v50 = vcombine.low %v715_v2, %v719_v39  ;;  %1218 = vmatprep.subr.bf16.mxu0 %v1828_v46  ;;  %v754_v28 = vld [vmem:[#allocation9 + $0x178] sm:$0xff]  ;;  %v1854_v2 = vcombine.high %v741_v32, %v745_v52  ;;  %v2517_v39 = vcombine.high %v742_v34, %v746_v35 }
 0x12d   : > { %v572_v30 = vmax.f32 %v564_v49, 0.0  ;;  %1904 = vmatprep.mubr.msk.bf16.mxu0 %vm617_vm0, %v576_v51  ;;  %v1869_v49 = vcombine.low %v757_v11, %v761_v14  ;;  %v2514_v38 = vcombine.low %v750_v27, %v754_v28  ;;  %v1853_v46 = vcombine.low %v741_v32, %v745_v52  ;;  %v713_v11 = vld [vmem:[#allocation9 + $0x30] sm:$0xff] }
 0x12e   : > { %1145 = vmatprep.subr.bf16.mxu1 %v1826_v42  ;;  %v737_v42 = vld [vmem:[#allocation9 + $0xf0] sm:$0xff] }
 0x12f   : > { %v577_v31 = vpack.c.bf16 %v573_v29, %v572_v30  ;;  %1146 = vmatpush1.bf16.msra.mxu1 %v1825_v50  ;;  %1219 = vmatpush1.bf16.msra.mxu0 %v1827_v45  ;;  %v2506_v29 = vcombine.low %v758_v15, %v762_v16  ;;  %v1862_v30 = vcombine.high %v749_v24, %v753_v26  ;;  %v738_v45 = vld [vmem:[#allocation9 + $0xf8] sm:$0xff] }
 0x130   : > { %1147 = vmatprep.subr.bf16.mxu1 %v1818_v56  ;;  %1220 = vmatprep.subr.bf16.mxu0 %v1820_v59  ;;  %v2524_v50 = vcombine.low %v742_v34, %v746_v35  ;;  %v1846_v53 = vcombine.high %v733_v40, %v737_v42  ;;  %v2527_v54 = vcombine.high %v734_v43, %v738_v45  ;;  %v729_v56 = vld [vmem:[#allocation9 + $0xb0] sm:$0xff] }
 0x131   : > { %1905 = vmatmul.mubr.msk.bf16.gmra.mxu0 %vm617_vm0, %v577_v31  ;;  %v2509_v31 = vcombine.high %v750_v27, %v754_v28  ;;  %v1845_v59 = vcombine.low %v733_v40, %v737_v42  ;;  %v1838_v19 = vcombine.high %v725_v55, %v729_v56 }
 0x132   : > { %1238 = vmatprep.mubr.bf16.mxu0 %v2243_v1 }
 0x133   : > { %1148 = vmatpush1.bf16.msra.mxu1 %v1817_v17  ;;  %1221 = vmatpush1.bf16.msra.mxu0 %v1819_v58  ;;  %v730_v58 = vld [vmem:[#allocation9 + $0xb8] sm:$0xff]  ;;  %v2530_v17 = vcombine.low %v734_v43, %v738_v45  ;;  %v2574_v45 = vld [vmem:[#allocation10] sm:$0xff] }
 0x134   : > { %1279 = vmatprep.subr.bf16.mxu1 %v1878_v62  ;;  %1352 = vmatprep.subr.bf16.mxu0 %v2488_v4  ;;  %v2533_v23 = vcombine.high %v726_v57, %v730_v58  ;;  %v718_v62 = vld [vmem:[#allocation9 + $0x58] sm:$0xff] }
 0x135   : > { %v1831_v16 = vcombine.low %v718_v62, %v722_v0 }
 0x1d0   : > { %v1902_v5 = vpop.f32.mrf.mxu0 }
 0x1d1   : > { %v673_v25 = vadd.f32 %v1902_v5, %v2491_v7  ;;  %v1837_v5 = vcombine.low %v725_v55, %v729_v56  ;;  %v2590_v55 = vrot.slane %v2574_v45, %v481_v47 }
 0x1d2   : > { %v664_v6 = vpop.f32.mrf.mxu0 }
 0x1d3   : > { %v665_v9 = vadd.f32 %v2491_v7, %v664_v6  ;;  %v697_v33 = vmax.f32 %v673_v25, 0.0  ;;  %v2536_v6 = vcombine.low %v726_v57, %v730_v58 }
 0x1d4   : > { %v1903_v8 = vpop.f32.mrf.mxu0 }
 0x1d5   : > { %v695_v12 = vmax.f32 %v665_v9, 0.0  ;;  %v676_v18 = vadd.f32 %v1903_v8, %v2491_v7  ;;  %v2539_v9 = vcombine.high %v718_v62, %v722_v0 }
 0x1d6   : > { %v667_v63 = vpop.f32.mrf.mxu0 }
 0x1d7   : > { %v668_v10 = vadd.f32 %v2491_v7, %v667_v63  ;;  %v698_v51 = vmax.f32 %v676_v18, 0.0  ;;  %v709_v63 = vld [vmem:[#allocation9 + $0x10] sm:$0xff] }
 0x1d8   : > { %v1822_v18 = vcombine.high %v709_v63, %v713_v11  ;;  %v1821_v27 = vcombine.low %v709_v63, %v713_v11 }
 0x1d9   : > { %v696_v13 = vmax.f32 %v668_v10, 0.0  ;;  %v2511_v36 = vpack.c.bf16 %v698_v51, %v697_v33 }
 0x1db   : > { %v2496_v20 = vpack.c.bf16 %v696_v13, %v695_v12  ;;  %v710_v12 = vld [vmem:[#allocation9 + $0x18] sm:$0xff] }
 0x1dc   : > { %v714_v13 = vld [vmem:[#allocation9 + $0x38] sm:$0xff] }
 0x1dd   : > { %1166 = vmatmul.mubr.bf16.vlgmr.msra.gmra.mxu1 %v2496_v20  ;;  %1239 = vmatmul.mubr.bf16.vlgmr.msra.gmra.mxu0 %v2496_v20  ;;  %v1823_v28 = vcombine.low %v710_v12, %v714_v13 }
 0x1de   : > { %1175 = vmatprep.mubr.bf16.mxu1 %v2243_v1  ;;  %1248 = vmatprep.mubr.bf16.mxu0 %v2243_v1 }
 0x1df   : > { %1280 = vmatpush1.bf16.msra.mxu1 %v1877_v61  ;;  %1353 = vmatpush1.bf16.msra.mxu0 %v2486_v3  ;;  %v721_v61 = vld [vmem:[#allocation9 + $0x70] sm:$0xff] }
 0x1e0   : > { %1281 = vmatprep.subr.bf16.mxu1 %v1870_v21  ;;  %1354 = vmatprep.subr.bf16.mxu0 %v2498_v22  ;;  %v1830_v8 = vcombine.high %v717_v60, %v721_v61  ;;  %v1829_v15 = vcombine.low %v717_v60, %v721_v61  ;;  %v1824_v21 = vcombine.high %v710_v12, %v714_v13 }
 0x1e3   : > { %1282 = vmatpush1.bf16.msra.mxu1 %v1869_v49  ;;  %1355 = vmatpush1.bf16.msra.mxu0 %v2506_v29 }
 0x1e4   : > { %1283 = vmatprep.subr.bf16.mxu1 %v1862_v30  ;;  %1356 = vmatprep.subr.bf16.mxu0 %v2509_v31 }
 0x1e5   : > { %1176 = vmatmul.mubr.bf16.gmra.mxu1 %v2511_v36  ;;  %1249 = vmatmul.mubr.bf16.gmra.mxu0 %v2511_v36 }
 0x1e6   : > { %1185 = vmatprep.mubr.bf16.mxu1 %v2243_v1  ;;  %1258 = vmatprep.mubr.bf16.mxu0 %v2243_v1 }
 0x1e7   : > { %1284 = vmatpush1.bf16.msra.mxu1 %v1861_v37  ;;  %1357 = vmatpush1.bf16.msra.mxu0 %v2514_v38 }
 0x1e8   : > { %1285 = vmatprep.subr.bf16.mxu1 %v1854_v2  ;;  %1358 = vmatprep.subr.bf16.mxu0 %v2517_v39 }
 0x1eb   : > { %1286 = vmatpush1.bf16.msra.mxu1 %v1853_v46  ;;  %1359 = vmatpush1.bf16.msra.mxu0 %v2524_v50 }
 0x1ec   : > { %1287 = vmatprep.subr.bf16.mxu1 %v1846_v53  ;;  %1360 = vmatprep.subr.bf16.mxu0 %v2527_v54  ;;  %v2580_v53 = vrot.slane %v2574_v45, %v437_v44 }
 0x1ef   : > { %1288 = vmatpush1.bf16.msra.mxu1 %v1845_v59  ;;  %1361 = vmatpush1.bf16.msra.mxu0 %v2530_v17 }
 0x1f0   : > { %1289 = vmatprep.subr.bf16.mxu1 %v1838_v19  ;;  %1362 = vmatprep.subr.bf16.mxu0 %v2533_v23  ;;  %v791_v19 = vsub.s32 4, %v2427_v41 }
 0x1f1   : > { %v1906_v10 = vpop.f32.mrf.mxu0 }
 0x1f2   : > { %v689_v52 = vadd.f32 %v1906_v10, %v2491_v7 }
 0x1f3   : > { %v680_v14 = vpop.f32.mrf.mxu0  ;;  %1290 = vmatpush1.bf16.msra.mxu1 %v1837_v5  ;;  %1363 = vmatpush1.bf16.msra.mxu0 %v2536_v6 }
 0x1f4   : > { %1291 = vmatprep.subr.bf16.mxu1 %v1830_v8  ;;  %1364 = vmatprep.subr.bf16.mxu0 %v2539_v9  ;;  %v681_v25 = vadd.f32 %v2491_v7, %v680_v14  ;;  %v701_v35 = vmax.f32 %v689_v52, 0.0  ;;  %v2611_v14 = vrot.slane %v2574_v45, %v791_v19 }
 0x1f5   : > { %v1907_v24 = vpop.f32.mrf.mxu0 }
 0x1f6   : > { %v699_v49 = vmax.f32 %v681_v25, 0.0  ;;  %v692_v32 = vadd.f32 %v1907_v24, %v2491_v7 }
 0x1f7   : > { %v683_v26 = vpop.f32.mrf.mxu0  ;;  %1292 = vmatpush1.bf16.msra.mxu1 %v1829_v15  ;;  %1365 = vmatpush1.bf16.msra.mxu0 %v1831_v16  ;;  %v799_v15 = vsub.s32 6, %v2427_v41 }
 0x1f8   : > { %v684_v51 = vadd.f32 %v2491_v7, %v683_v26  ;;  %1293 = vmatprep.subr.bf16.mxu1 %v1822_v18  ;;  %1366 = vmatprep.subr.bf16.mxu0 %v1824_v21  ;;  %v702_v34 = vmax.f32 %v692_v32, 0.0 }
 0x1fa   : > { %v700_v30 = vmax.f32 %v684_v51, 0.0  ;;  %v706_v37 = vpack.c.bf16 %v702_v34, %v701_v35 }
 0x1fb   : > { %1294 = vmatpush1.bf16.msra.mxu1 %v1821_v27  ;;  %1367 = vmatpush1.bf16.msra.mxu0 %v1823_v28 }
 0x1fc   : > { %v705_v33 = vpack.c.bf16 %v700_v30, %v699_v49  ;;  %1908 = vmatprep.subr.bf16.mxu1 %v2488_v4 }
 0x1fe   : > { %1186 = vmatmul.mubr.bf16.gmra.mxu1 %v705_v33  ;;  %1259 = vmatmul.mubr.bf16.gmra.mxu0 %v705_v33 }
 0x1ff   : > { %1195 = vmatprep.mubr.bf16.mxu1 %v2243_v1  ;;  %1268 = vmatprep.mubr.bf16.mxu0 %v2243_v1 }
 0x206   : > { %1196 = vmatmul.mubr.bf16.gmra.mxu1 %v706_v37  ;;  %1269 = vmatmul.mubr.bf16.gmra.mxu0 %v706_v37 }
 0x207   : > { %1311 = vmatprep.mubr.bf16.mxu1 %v2243_v1  ;;  %1384 = vmatprep.mubr.bf16.mxu0 %v2243_v1 }
 0x20e   : > { %1312 = vmatmul.mubr.bf16.vlgmr.msra.gmra.mxu1 %v2496_v20  ;;  %1385 = vmatmul.mubr.bf16.vlgmr.msra.gmra.mxu0 %v2496_v20 }
 0x20f   : > { %1916 = vmatpush1.bf16.msra.mxu1 %v2486_v3  ;;  %1321 = vmatprep.mubr.bf16.mxu1 %v2243_v1 }
 0x210   : > { %1909 = vmatprep.subr.bf16.mxu1 %v2498_v22  ;;  %1394 = vmatprep.mubr.bf16.mxu0 %v2243_v1 }
 0x213   : > { %1917 = vmatpush1.bf16.msra.mxu1 %v2506_v29 }
 0x214   : > { %1910 = vmatprep.subr.bf16.mxu1 %v2509_v31 }
 0x216   : > { %1322 = vmatmul.mubr.bf16.gmra.mxu1 %v2511_v36  ;;  %1395 = vmatmul.mubr.bf16.gmra.mxu0 %v2511_v36 }
 0x217   : > { %1918 = vmatpush1.bf16.msra.mxu1 %v2514_v38  ;;  %1331 = vmatprep.mubr.bf16.mxu1 %v2243_v1 }
 0x218   : > { %1911 = vmatprep.subr.bf16.mxu1 %v2517_v39  ;;  %1404 = vmatprep.mubr.bf16.mxu0 %v2243_v1 }
 0x21b   : > { %1919 = vmatpush1.bf16.msra.mxu1 %v2524_v50 }
 0x21c   : > { %1912 = vmatprep.subr.bf16.mxu1 %v2527_v54  ;;  %v2585_v54 = vrot.slane %v2574_v45, %v533_v48 }
 0x21e   : > { %1332 = vmatmul.mubr.bf16.gmra.mxu1 %v705_v33  ;;  %1405 = vmatmul.mubr.bf16.gmra.mxu0 %v705_v33 }
 0x21f   : > { %1920 = vmatpush1.bf16.msra.mxu1 %v2530_v17  ;;  %1341 = vmatprep.mubr.bf16.mxu1 %v2243_v1 }
 0x220   : > { %1913 = vmatprep.subr.bf16.mxu1 %v2533_v23 }
 0x223   : > { %1921 = vmatpush1.bf16.msra.mxu1 %v2536_v6 }
 0x224   : > { %1914 = vmatprep.subr.bf16.mxu1 %v2539_v9 }
 0x226   : > { %1342 = vmatmul.mubr.bf16.gmra.mxu1 %v706_v37 }
 0x227   : > { %1922 = vmatpush1.bf16.msra.mxu1 %v1831_v16  ;;  %1414 = vmatprep.mubr.bf16.mxu1 %v2243_v1  ;;  %v787_v1 = vsub.s32 3, %v2427_v41 }
 0x228   : > { %1915 = vmatprep.subr.bf16.mxu1 %v1824_v21 }
 0x229   : > { %v2593_v58 = vrot.slane %v2574_v45, %v787_v1 }
 0x22b   : > { %1923 = vmatpush1.bf16.msra.mxu1 %v1823_v28 }
 0x22e   : > { %1415 = vmatmul.mubr.bf16.vlgmr.msra.gmra.mxu1 %v706_v37 }
 0x29d   : > { %v1167_v3 = vpop.f32.mrf.mxu1  ;;  %v1240_v4 = vpop.f32.mrf.mxu0 }
 0x29e   : > { %v1168_v60 = vadd.f32 %v1167_v3, %v2580_v53  ;;  %v1241_v47 = vadd.f32 %v1240_v4, %v2585_v54 }
 0x29f   : > { %v1169_v7 = vpop.f32.mrf.mxu1  ;;  %v1242_v20 = vpop.f32.mrf.mxu0 }
 0x2a0   : > { %v1170_v61 = vadd.f32 %v1169_v7, %v2590_v55  ;;  %v1243_v6 = vadd.f32 %v1242_v20, %v2593_v58  ;;  %v1425_v25 = vmax.f32 %v1168_v60, 0.0  ;;  %v1427_v26 = vmax.f32 %v1241_v47, 0.0 }
 0x2a1   : > { %v1171_v22 = vpop.f32.mrf.mxu1  ;;  %v1244_v29 = vpop.f32.mrf.mxu0 }
 0x2a2   : > { %v1172_v59 = vadd.f32 %v1171_v22, %v2580_v53  ;;  %v1245_v48 = vadd.f32 %v1244_v29, %v2585_v54  ;;  %v1426_v27 = vmax.f32 %v1170_v61, 0.0  ;;  %v1428_v30 = vmax.f32 %v1243_v6, 0.0 }
 0x2a3   : > { %v1173_v31 = vpop.f32.mrf.mxu1  ;;  %v1246_v36 = vpop.f32.mrf.mxu0 }
 0x2a4   : > { %v1174_v23 = vadd.f32 %v1173_v31, %v2590_v55  ;;  %v1247_v62 = vadd.f32 %v1246_v36, %v2593_v58  ;;  %v1433_v10 = vmax.f32 %v1172_v59, 0.0  ;;  %v1435_v16 = vmax.f32 %v1245_v48, 0.0 }
 0x2a5   : > { %v1177_v38 = vpop.f32.mrf.mxu1  ;;  %v1250_v2 = vpop.f32.mrf.mxu0 }
 0x2a6   : > { %v1178_v8 = vadd.f32 %v1177_v38, %v2580_v53  ;;  %v1251_v9 = vadd.f32 %v1250_v2, %v2585_v54  ;;  %v1434_v18 = vmax.f32 %v1174_v23, 0.0  ;;  %v1436_v28 = vmax.f32 %v1247_v62, 0.0 }
 0x2a7   : > { %v1179_v39 = vpop.f32.mrf.mxu1  ;;  %v1252_v40 = vpop.f32.mrf.mxu0  ;;  %v1489_v34 = vmax.f32 %v1425_v25, %v1433_v10  ;;  %v1515_v20 = vmax.f32 %v1427_v26, %v1435_v16 }
 0x2a8   : > { %v1180_v63 = vadd.f32 %v1179_v39, %v2590_v55  ;;  %v1253_v11 = vadd.f32 %v1252_v40, %v2593_v58  ;;  %v1441_v32 = vmax.f32 %v1178_v8, 0.0  ;;  %v1443_v33 = vmax.f32 %v1251_v9, 0.0 }
 0x2a9   : > { %v1181_v42 = vpop.f32.mrf.mxu1  ;;  %v1254_v43 = vpop.f32.mrf.mxu0  ;;  %v1502_v22 = vmax.f32 %v1426_v27, %v1434_v18  ;;  %v1528_v36 = vmax.f32 %v1428_v30, %v1436_v28 }
 0x2aa   : > { %v1182_v21 = vadd.f32 %v1181_v42, %v2580_v53  ;;  %v1255_v24 = vadd.f32 %v1254_v43, %v2585_v54  ;;  %v1442_v52 = vmax.f32 %v1180_v63, 0.0  ;;  %v1444_v35 = vmax.f32 %v1253_v11, 0.0 }
 0x2ab   : > { %v1183_v46 = vpop.f32.mrf.mxu1  ;;  %v1256_v50 = vpop.f32.mrf.mxu0  ;;  %v1490_v43 = vmax.f32 %v1489_v34, %v1441_v32  ;;  %v1516_v1 = vmax.f32 %v1515_v20, %v1443_v33 }
 0x2ac   : > { %v1184_v37 = vadd.f32 %v1183_v46, %v2590_v55  ;;  %v1449_v29 = vmax.f32 %v1182_v21, 0.0  ;;  %v1451_v31 = vmax.f32 %v1255_v24, 0.0  ;;  %v1257_v38 = vadd.f32 %v1256_v50, %v2593_v58 }
 0x2ad   : > { %v1503_v46 = vmax.f32 %v1502_v22, %v1442_v52  ;;  %v1529_v59 = vmax.f32 %v1528_v36, %v1444_v35 }
 0x2ae   : > { %v1450_v19 = vmax.f32 %v1184_v37, 0.0  ;;  %v1491_v61 = vmax.f32 %v1490_v43, %v1449_v29  ;;  %v1517_v50 = vmax.f32 %v1516_v1, %v1451_v31  ;;  %v1452_v62 = vmax.f32 %v1257_v38, 0.0 }
 0x2b0   : > { %v1504_v18 = vmax.f32 %v1503_v46, %v1450_v19 }
 0x2be   : > { %v1187_v56 = vpop.f32.mrf.mxu1  ;;  %v1260_v57 = vpop.f32.mrf.mxu0 }
 0x2bf   : > { %v1188_v3 = vadd.f32 %v1187_v56, %v2580_v53  ;;  %v1261_v2 = vadd.f32 %v1260_v57, %v2585_v54 }
 0x2c0   : > { %v1189_v17 = vpop.f32.mrf.mxu1  ;;  %v2596_v44 = vpop.f32.mrf.mxu0 }
 0x2c1   : > { %v1190_v39 = vadd.f32 %v1189_v17, %v2590_v55  ;;  %v1457_v48 = vmax.f32 %v1188_v3, 0.0  ;;  %v1459_v6 = vmax.f32 %v1261_v2, 0.0  ;;  %v1263_v9 = vadd.f32 %v2596_v44, %v2593_v58 }
 0x2c2   : > { %v1191_v0 = vpop.f32.mrf.mxu1  ;;  %v1264_v5 = vpop.f32.mrf.mxu0 }
 0x2c3   : > { %v1192_v56 = vadd.f32 %v1191_v0, %v2580_v53  ;;  %v1265_v23 = vadd.f32 %v1264_v5, %v2585_v54  ;;  %v1458_v8 = vmax.f32 %v1190_v39, 0.0  ;;  %v1492_v21 = vmax.f32 %v1491_v61, %v1457_v48 }
 0x2c4   : > { %v1193_v12 = vpop.f32.mrf.mxu1  ;;  %v1266_v13 = vpop.f32.mrf.mxu0  ;;  %v1518_v30 = vmax.f32 %v1517_v50, %v1459_v6 }
 0x2c5   : > { %v1194_v57 = vadd.f32 %v1193_v12, %v2590_v55  ;;  %v1465_v10 = vmax.f32 %v1192_v56, 0.0  ;;  %v1467_v12 = vmax.f32 %v1265_v23, 0.0  ;;  %v1267_v24 = vadd.f32 %v1266_v13, %v2593_v58 }
 0x2c6   : > { %v1197_v51 = vpop.f32.mrf.mxu1  ;;  %v1270_v49 = vpop.f32.mrf.mxu0  ;;  %v1505_v32 = vmax.f32 %v1504_v18, %v1458_v8  ;;  %v1530_v13 = vmax.f32 %v1529_v59, %v1452_v62 }
 0x2c7   : > { %v1198_v17 = vadd.f32 %v1197_v51, %v2580_v53  ;;  %v1271_v11 = vadd.f32 %v1270_v49, %v2585_v54  ;;  %v1466_v27 = vmax.f32 %v1194_v57, 0.0  ;;  %v1460_v49 = vmax.f32 %v1263_v9, 0.0 }
 0x2c8   : > { %v1199_v4 = vpop.f32.mrf.mxu1  ;;  %v1272_v7 = vpop.f32.mrf.mxu0  ;;  %v1493_v34 = vmax.f32 %v1492_v21, %v1465_v10  ;;  %v1468_v20 = vmax.f32 %v1267_v24, 0.0 }
 0x2c9   : > { %v1200_v5 = vadd.f32 %v1199_v4, %v2590_v55  ;;  %v1473_v28 = vmax.f32 %v1198_v17, 0.0  ;;  %v1273_v33 = vadd.f32 %v1272_v7, %v2593_v58  ;;  %v1475_v35 = vmax.f32 %v1271_v11, 0.0 }
 0x2ca   : > { %v1201_v40 = vpop.f32.mrf.mxu1  ;;  %v1274_v42 = vpop.f32.mrf.mxu0  ;;  %v1519_v4 = vmax.f32 %v1518_v30, %v1467_v12  ;;  %v1506_v31 = vmax.f32 %v1505_v32, %v1466_v27  ;;  %v1531_v2 = vmax.f32 %v1530_v13, %v1460_v49  ;;  %v795_v7 = vsub.s32 5, %v2427_v41 }
 0x2cb   : > { %v1202_v16 = vadd.f32 %v1201_v40, %v2580_v53  ;;  %v1275_v44 = vadd.f32 %v1274_v42, %v2585_v54  ;;  %v1474_v37 = vmax.f32 %v1200_v5, 0.0  ;;  %v1476_v39 = vmax.f32 %v1273_v33, 0.0 }
 0x2cc   : > { %v1203_v60 = vpop.f32.mrf.mxu1  ;;  %v1276_v47 = vpop.f32.mrf.mxu0  ;;  %v803_v40 = vsub.s32 7, %v2427_v41  ;;  %v1520_v1 = vmax.f32 %v1519_v4, %v1475_v35  ;;  %v1532_v59 = vmax.f32 %v1531_v2, %v1468_v20  ;;  %v2646_v57 = vrot.slane %v2574_v45, %v795_v7 }
 0x2cd   : > { %v1204_v51 = vadd.f32 %v1203_v60, %v2590_v55  ;;  %v1481_v3 = vmax.f32 %v1202_v16, 0.0  ;;  %v1277_v22 = vadd.f32 %v1276_v47, %v2593_v58  ;;  %v1494_v55 = vmax.f32 %v1493_v34, %v1473_v28 }
 0x2ce   : > { %v1313_v0 = vpop.f32.mrf.mxu1  ;;  %v1386_v63 = vpop.f32.mrf.mxu0  ;;  %v1483_v36 = vmax.f32 %v1275_v44, 0.0  ;;  %v1507_v46 = vmax.f32 %v1506_v31, %v1474_v37  ;;  %v2642_v58 = vrot.slane %v2574_v45, %v799_v15  ;;  %v1533_v61 = vmax.f32 %v1532_v59, %v1476_v39 }
 0x2cf   : > { %v1482_v38 = vmax.f32 %v1204_v51, 0.0  ;;  %v1495_v56 = vmax.f32 %v1494_v55, %v1481_v3  ;;  %v1484_v19 = vmax.f32 %v1277_v22, 0.0  ;;  %v1314_v50 = vadd.f32 %v1313_v0, %v2611_v14 }
 0x2d0   : > { %v1315_v25 = vpop.f32.mrf.mxu1  ;;  %v1388_v26 = vpop.f32.mrf.mxu0  ;;  %v1521_v60 = vmax.f32 %v1520_v1, %v1483_v36  ;;  %v2649_v17 = vrot.slane %v2574_v45, %v803_v40  ;;  %v1387_v15 = vadd.f32 %v1386_v63, %v2642_v58 }
 0x2d1   : > { %v1508_v47 = vmax.f32 %v1507_v46, %v1482_v38  ;;  %v1496_v8 = vrot.slane %v1495_v56, 4  ;;  %v1534_v10 = vmax.f32 %v1533_v61, %v1484_v19  ;;  %v1429_v45 = vmax.f32 %v1314_v50, 0.0 }
 0x2d2   : > { %v1317_v52 = vpop.f32.mrf.mxu1  ;;  %v1390_v53 = vpop.f32.mrf.mxu0  ;;  %v1522_v18 = vrot.slane %v1521_v60, 4  ;;  %v1316_v24 = vadd.f32 %v1315_v25, %v2646_v57  ;;  %v1389_v27 = vadd.f32 %v1388_v26, %v2649_v17  ;;  %v1431_v30 = vmax.f32 %v1387_v15, 0.0 }
 0x2d3   : > { %v1318_v9 = vadd.f32 %v1317_v52, %v2611_v14  ;;  %v1509_v0 = vrot.slane %v1508_v47, 4  ;;  %v1391_v21 = vadd.f32 %v1390_v53, %v2642_v58  ;;  %v2659_v51 = vmax.f32 %v1495_v56, %v1496_v8 }
 0x2d4   : > { %v1319_v29 = vpop.f32.mrf.mxu1  ;;  %v1392_v54 = vpop.f32.mrf.mxu0  ;;  %v1535_v33 = vrot.slane %v1534_v10, 4  ;;  %v2664_v25 = vmax.f32 %v1521_v60, %v1522_v18  ;;  %v1430_v4 = vmax.f32 %v1316_v24, 0.0  ;;  %v1432_v20 = vmax.f32 %v1389_v27, 0.0 }
 0x2d5   : > { %v1320_v11 = vadd.f32 %v1319_v29, %v2646_v57  ;;  %v1437_v32 = vmax.f32 %v1318_v9, 0.0  ;;  %v1393_v53 = vadd.f32 %v1392_v54, %v2649_v17  ;;  %v2666_v26 = vmax.f32 %v1508_v47, %v1509_v0 }
 0x2d6   : > { %v1323_v42 = vpop.f32.mrf.mxu1  ;;  %v2637_v43 = vpop.f32.mrf.mxu0  ;;  %v1439_v37 = vmax.f32 %v1391_v21, 0.0  ;;  %v2671_v2 = vmax.f32 %v1534_v10, %v1535_v33 }
 0x2d7   : > { %v1324_v12 = vadd.f32 %v1323_v42, %v2611_v14  ;;  %v1438_v52 = vmax.f32 %v1320_v11, 0.0  ;;  %v1541_v55 = vmax.f32 %v1429_v45, %v1437_v32  ;;  %v1440_v7 = vmax.f32 %v1393_v53, 0.0 }
 0x2d8   : > { %v1325_v48 = vpop.f32.mrf.mxu1  ;;  %v1398_v23 = vpop.f32.mrf.mxu0  ;;  %v1511_v1 = vrot.slane %v2666_v26, 2  ;;  %v1567_v46 = vmax.f32 %v1431_v30, %v1439_v37 }
 0x2d9   : > { %v1326_v63 = vadd.f32 %v1325_v48, %v2646_v57  ;;  %v1445_v3 = vmax.f32 %v1324_v12, 0.0  ;;  %v1554_v39 = vmax.f32 %v1430_v4, %v1438_v52  ;;  %v1397_v48 = vadd.f32 %v2637_v43, %v2642_v58 }
 0x2da   : > { %v1327_v62 = vpop.f32.mrf.mxu1  ;;  %v1400_v6 = vpop.f32.mrf.mxu0  ;;  %v1399_v47 = vadd.f32 %v1398_v23, %v2649_v17  ;;  %v1580_v10 = vmax.f32 %v1432_v20, %v1440_v7 }
 0x2db   : > { %v1328_v49 = vadd.f32 %v1327_v62, %v2611_v14  ;;  %v1446_v22 = vmax.f32 %v1326_v63, 0.0  ;;  %v1542_v56 = vmax.f32 %v1541_v55, %v1445_v3  ;;  %v1401_v11 = vadd.f32 %v1400_v6, %v2642_v58 }
 0x2dc   : > { %v1329_v5 = vpop.f32.mrf.mxu1  ;;  %v1402_v16 = vpop.f32.mrf.mxu0  ;;  %v1447_v24 = vmax.f32 %v1397_v48, 0.0  ;;  %v1448_v27 = vmax.f32 %v1399_v47, 0.0  ;;  %v1524_v48 = vrot.slane %v2664_v25, 2 }
 0x2dd   : > { %v1330_v34 = vadd.f32 %v1329_v5, %v2646_v57  ;;  %v1453_v36 = vmax.f32 %v1328_v49, 0.0  ;;  %v1555_v60 = vmax.f32 %v1554_v39, %v1446_v22  ;;  %v1403_v18 = vadd.f32 %v1402_v16, %v2649_v17 }
 0x2de   : > { %v1333_v28 = vpop.f32.mrf.mxu1  ;;  %v1406_v44 = vpop.f32.mrf.mxu0  ;;  %v1455_v16 = vmax.f32 %v1401_v11, 0.0  ;;  %v1568_v20 = vmax.f32 %v1567_v46, %v1447_v24  ;;  %v1498_v46 = vrot.slane %v2659_v51, 2 }
 0x2df   : > { %v1334_v29 = vadd.f32 %v1333_v28, %v2611_v14  ;;  %v1454_v40 = vmax.f32 %v1330_v34, 0.0  ;;  %v1543_v62 = vmax.f32 %v1542_v56, %v1453_v36  ;;  %v1407_v63 = vadd.f32 %v1406_v44, %v2642_v58 }
 0x2e0   : > { %v1335_v35 = vpop.f32.mrf.mxu1  ;;  %v1408_v13 = vpop.f32.mrf.mxu0  ;;  %v1456_v52 = vmax.f32 %v1403_v18, 0.0  ;;  %v1569_v39 = vmax.f32 %v1568_v20, %v1455_v16 }
 0x2e1   : > { %v1336_v54 = vadd.f32 %v1335_v35, %v2646_v57  ;;  %v1461_v59 = vmax.f32 %v1334_v29, 0.0  ;;  %v1556_v5 = vmax.f32 %v1555_v60, %v1454_v40  ;;  %v1409_v28 = vadd.f32 %v1408_v13, %v2649_v17 }
 0x2e2   : > { %v1337_v31 = vpop.f32.mrf.mxu1  ;;  %v1410_v19 = vpop.f32.mrf.mxu0  ;;  %v1581_v13 = vmax.f32 %v1580_v10, %v1448_v27  ;;  %v1463_v22 = vmax.f32 %v1407_v63, 0.0 }
 0x2e3   : > { %v1338_v38 = vadd.f32 %v1337_v31, %v2611_v14  ;;  %v1462_v8 = vmax.f32 %v1336_v54, 0.0  ;;  %v1544_v21 = vmax.f32 %v1543_v62, %v1461_v59  ;;  %v1411_v53 = vadd.f32 %v1410_v19, %v2642_v58 }
 0x2e4   : > { %v1339_v42 = vpop.f32.mrf.mxu1  ;;  %v1412_v12 = vpop.f32.mrf.mxu0  ;;  %v1464_v29 = vmax.f32 %v1409_v28, 0.0  ;;  %v1582_v7 = vmax.f32 %v1581_v13, %v1456_v52  ;;  %v1570_v60 = vmax.f32 %v1569_v39, %v1463_v22 }
 0x2e5   : > { %v1340_v61 = vadd.f32 %v1339_v42, %v2646_v57  ;;  %v1469_v15 = vmax.f32 %v1338_v38, 0.0  ;;  %v1557_v32 = vmax.f32 %v1556_v5, %v1462_v8  ;;  %v1413_v34 = vadd.f32 %v1412_v12, %v2649_v17 }
 0x2e6   : > { %v1343_v50 = vpop.f32.mrf.mxu1  ;;  %v1537_v38 = vrot.slane %v2671_v2, 2  ;;  %v1471_v40 = vmax.f32 %v1411_v53, 0.0  ;;  %v1499_v12 = vmax.f32 %v2659_v51, %v1498_v46 }
 0x2e7   : > { %v1344_v9 = vadd.f32 %v1343_v50, %v2611_v14  ;;  %v1470_v43 = vmax.f32 %v1340_v61, 0.0  ;;  %v1545_v49 = vmax.f32 %v1544_v21, %v1469_v15  ;;  %v1472_v56 = vmax.f32 %v1413_v34, 0.0 }
 0x2e8   : > { %v1345_v0 = vpop.f32.mrf.mxu1  ;;  %v1583_v50 = vmax.f32 %v1582_v7, %v1464_v29  ;;  %v1571_v10 = vmax.f32 %v1570_v60, %v1471_v40  ;;  %v1538_v18 = vmax.f32 %v2671_v2, %v1537_v38 }
 0x2e9   : > { %v1477_v45 = vmax.f32 %v1344_v9, 0.0  ;;  %v1346_v23 = vadd.f32 %v1345_v0, %v2646_v57  ;;  %v1558_v37 = vmax.f32 %v1557_v32, %v1470_v43  ;;  %v1512_v9 = vmax.f32 %v2666_v26, %v1511_v1 }
 0x2ea   : > { %v1347_v30 = vpop.f32.mrf.mxu1  ;;  %v1584_v0 = vmax.f32 %v1583_v50, %v1472_v56 }
 0x2eb   : > { %v1478_v6 = vmax.f32 %v1346_v23, 0.0  ;;  %v1348_v33 = vadd.f32 %v1347_v30, %v2611_v14  ;;  %v1546_v3 = vmax.f32 %v1545_v49, %v1477_v45  ;;  %v1525_v45 = vmax.f32 %v2664_v25, %v1524_v48 }
 0x2ec   : > { %v1349_v35 = vpop.f32.mrf.mxu1  ;;  %v1513_v1 = vrot.slane %v1512_v9, 1  ;;  %v2245_v30 = vmov 1966171168   ;;  %v1539_v49 = vrot.slane %v1538_v18, 1 }
 0x2ed   : > { %v1485_v4 = vmax.f32 %v1348_v33, 0.0  ;;  %v1350_v44 = vadd.f32 %v1349_v35, %v2646_v57  ;;  %v1559_v55 = vmax.f32 %v1558_v37, %v1478_v6  ;;  %v1500_v33 = vrot.slane %v1499_v12, 1 }
 0x2ee   : > { %v1416_v31 = vpop.f32.mrf.mxu1  ;;  %v1514_v53 = vmax.f32 %v1512_v9, %v1513_v1  ;;  %v1540_v35 = vmax.f32 %v1538_v18, %v1539_v49 }
 0x2ef   : > { %v1547_v36 = vmax.f32 %v1546_v3, %v1485_v4  ;;  %v1486_v14 = vmax.f32 %v1350_v44, 0.0  ;;  %v1417_v54 = vadd.f32 %v1416_v31, %v2642_v58  ;;  %v1501_v4 = vmax.f32 %v1499_v12, %v1500_v33 }
 0x2f0   : > { %v1418_v42 = vpop.f32.mrf.mxu1 }
 0x2f1   : > { %v1548_v59 = vrot.slane %v1547_v36, 4  ;;  %v1560_v19 = vmax.f32 %v1559_v55, %v1486_v14  ;;  %v1419_v57 = vadd.f32 %v1418_v42, %v2649_v17  ;;  %v1479_v47 = vmax.f32 %v1417_v54, 0.0 }
 0x2f2   : > { %v1420_v61 = vpop.f32.mrf.mxu1  ;;  %v1607_v29 = vcombine.low %v1501_v4, %v1514_v53 }
 0x2f3   : > { %v1549_v62 = vmax.f32 %v1547_v36, %v1548_v59  ;;  %v1561_v8 = vrot.slane %v1560_v19, 4  ;;  %v1480_v15 = vmax.f32 %v1419_v57, 0.0  ;;  %v1421_v11 = vadd.f32 %v1420_v61, %v2642_v58 }
 0x2f4   : > { %v1422_v5 = vpop.f32.mrf.mxu1  ;;  %v1572_v23 = vmax.f32 %v1571_v10, %v1479_v47  ;;  %v1612_v58 = vunpack.c.l.s4 %v2245_v30 }
 0x2f5   : > { %v1562_v21 = vmax.f32 %v1560_v19, %v1561_v8  ;;  %v1423_v43 = vadd.f32 %v1422_v5, %v2649_v17  ;;  %v1487_v24 = vmax.f32 %v1421_v11, 0.0  ;;  %v1550_v27 = vrot.slane %v1549_v62, 2 }
 0x2f6   : > { %v1585_v28 = vmax.f32 %v1584_v0, %v1480_v15  ;;  %v1526_v17 = vrot.slane %v1525_v45, 1  ;;  %v1613_v25 = vunpack.c.0.s8 %v1612_v58 }
 0x2f7   : > { %v1563_v63 = vrot.slane %v1562_v21, 2  ;;  %v1488_v26 = vmax.f32 %v1423_v43, 0.0  ;;  %v1573_v32 = vmax.f32 %v1572_v23, %v1487_v24  ;;  %v1551_v52 = vmax.f32 %v1549_v62, %v1550_v27 }
 0x2f8   : > { %v1527_v20 = vmax.f32 %v1525_v45, %v1526_v17  ;;  %v1616_v31 = vsub.s32 %v1613_v25, %v2427_v41 }
 0x2f9   : > { %v1564_v2 = vmax.f32 %v1562_v21, %v1563_v63  ;;  %v1586_v6 = vmax.f32 %v1585_v28, %v1488_v26  ;;  %v1574_v16 = vrot.slane %v1573_v32, 4  ;;  %v1552_v13 = vrot.slane %v1551_v52, 1 }
 0x2fa   : > { %v1608_v36 = vcombine.low %v1527_v20, %v1540_v35  ;;  %v1617_v40 = vrot.slane %v1607_v29, %v1616_v31 }
 0x2fb   : > { %v1587_v51 = vrot.slane %v1586_v6, 4  ;;  %v1575_v34 = vmax.f32 %v1573_v32, %v1574_v16  ;;  %v1565_v37 = vrot.slane %v1564_v2, 1  ;;  %v1553_v39 = vmax.f32 %v1551_v52, %v1552_v13 }
 0x2fc   : > { %v1624_v42 = vrot.slane %v1608_v36, %v1616_v31 }
 0x2fd   : > { %v1588_v3 = vmax.f32 %v1586_v6, %v1587_v51  ;;  %v1576_v44 = vrot.slane %v1575_v34, 2  ;;  %v1566_v14 = vmax.f32 %v1564_v2, %v1565_v37 }
 0x2fe   : > { %v1639_v46 = vcombine.low %v1617_v40, %v1624_v42 }
 0x2ff   : > { %v1589_v22 = vrot.slane %v1588_v3, 2  ;;  %v1577_v55 = vmax.f32 %v1575_v34, %v1576_v44  ;;  %v1609_v56 = vcombine.low %v1553_v39, %v1566_v14 }
 0x300   : > { %v1647_v41 = vrot.slane %v1639_v46, %v1616_v31 }
 0x301   : > { %v1590_v54 = vmax.f32 %v1588_v3, %v1589_v22  ;;  %v1578_v38 = vrot.slane %v1577_v55, 1  ;;  %v1631_v48 = vrot.slane %v1609_v56, %v1616_v31 }
 0x303   : > { %v1591_v7 = vrot.slane %v1590_v54, 1  ;;  %v1579_v59 = vmax.f32 %v1577_v55, %v1578_v38 }
 0x305   : > { %v1592_v19 = vmax.f32 %v1590_v54, %v1591_v7 }
 0x307   : > { %v1610_v57 = vcombine.low %v1579_v59, %v1592_v19 }
 0x309   : > { %v1638_v60 = vrot.slane %v1610_v57, %v1616_v31 }
 0x30b   : > { %v1640_v47 = vcombine.low %v1631_v48, %v1638_v60 }
 0x30d   : > { %v1654_v61 = vrot.slane %v1640_v47, %v1616_v31 }
 0x30f   : > { %v1655_v50 = vcombine.low %v1647_v41, %v1654_v61 }
 0x311   : > { %v1657_v62 = vmax.f32 %v1655_v50, -1e+30 }
 0x313   : > { %1658 = vst [vmem:[%s384_s20] sm:$0xff] %v1657_v62 }
 0x314 PF: > { %s21_s26 = sadd.s32 1, %s2230_s26   ;;  %s2734_s24 = smov %s2226_s25 }
 0x315   : > { %p18_p7 = scmp.ge.s32.totalorder %s21_s26, 4   ;;  %s2735_s25 = smov %s2737_s12 }
 0x317   :  { %20 = sbr.rel (!%p18_p7) target bundleno = 5 (0x5), region = 107 }
 0x31c   :  { %1678 = vsyncpa [#allocation3], 1 }
 0x31d   :  { %1680 = vsyncpa [#allocation3 + $0x1], 1 }
 0x31e   :  { %1681 = vsyncpa [#allocation5], 1 }
 0x31f   :  { %1682 = vsyncpa [#allocation8], 1 }
 0x320   :  { %1683 = vsyncpa [#allocation11], 1 }

// kernel: pointnet_densecls_forward.6
= control target key start
LH: loop header
LB: loop body
LE: loop exit
PB: predicated region body
PF: predicated region fallthrough
CT: control target
= control target key end

     0   :  { %15 = vsyncpa [#allocation3], 0  ;;  %s3079_s0 = inlined_call_operand.vmem [shape: f32[2,64,3], index: 0, kind: input, shape index: {}]   ;;  %s3080_s1 = inlined_call_operand.vmem [shape: f32[2,3,3], index: 1, kind: input, shape index: {}]   ;;  %s3081_s2 = inlined_call_operand.hbm [shape: f32[3,64], index: 2, kind: input, shape index: {}]   ;;  %s3082_s3 = inlined_call_operand.hbm [shape: f32[1,64], index: 3, kind: input, shape index: {}]   ;;  %s3083_s4 = inlined_call_operand.hbm [shape: bf16[64,128], index: 4, kind: input, shape index: {}]   ;;  %s3084_s5 = inlined_call_operand.hbm [shape: f32[1,128], index: 5, kind: input, shape index: {}]   ;;  %s3085_s6 = inlined_call_operand.vmem [shape: bf16[128,1024], index: 6, kind: input, shape index: {}]   ;;  %s3086_s7 = inlined_call_operand.hbm [shape: f32[1,1024], index: 7, kind: input, shape index: {}]   ;;  %s3087_s8 = inlined_call_operand.vmem [shape: bf16[2,64,64], index: 8, kind: output, shape index: {0}]   ;;  %s3088_s9 = inlined_call_operand.vmem [shape: f32[2,1,1024], index: 9, kind: output, shape index: {1}]  }
   0x1   :  { %16 = vsyncpa [#allocation5], 0 }
   0x2   :  { %17 = vsyncpa [#allocation8], 0  ;;  %s2407_s30 = smov 0   ;;  %s2409_s10 = smov 0  }
   0x3   :  { %s2411_s11 = smov 0  }
   0x4 LB: > { %s2346_s12 = smov [#allocation4]   ;;  %s1923_s14 = sadd.s32 4294967295, %s2344_s11   ;;  %s2344_s11 = sphi %s2411_s11, %s23_s11   ;;  %s2340_s10 = sphi %s2409_s10, %s3101_s10   ;;  %s2336_s30 = sphi %s2407_s30, %s3100_s30  }
   0x5   : > { %s298_s13 = sshll.u32 %s2346_s12, 4  ;;  %p1925_p0 = scmp.ge.s32.totalorder %s2344_s11, 1  ;;  %s299_s13 = int_to_ptr.vmem [resolvable:$true] %s298_s13 }
   0x6   : > { %p274_p1 = scmp.lt.s32.totalorder %s2344_s11, 3  ;;  %p2425_p2 = scmp.eq.s32.totalorder %s1923_s14, 0 }
   0x7   : > { %s2347_s17 = smov [#allocation7]   ;;  %s35_s20 = sadd.s32 1, %s2340_s10 }
   0x8   : > { %s3092_s15 = scalar_select %p2425_p2, 1, 0 }
   0x9   : > { %p2429_p3 = pnand %p1925_p0, %p274_p1  ;;  %s322_s18 = sshll.u32 %s2347_s17, 4  ;;  %s323_s18 = int_to_ptr.vmem [resolvable:$true] %s322_s18 }
   0xa   : > { %p2442_p6 = scmp.ge.s32.totalorder %s35_s20, 2  ;;  %s2191_s23 = scalar_lea.vmem %s299_s13, 16 }
   0xb   : > { %s3093_s16 = scalar_select %p2429_p3, 1, 0 }
   0xc   : > { %p2098_p4 = pneg %p2429_p3  ;;  %p2192_p8 = scmp.ne.s32.totalorder %s299_s13, %s2191_s23 }
   0xd   : > { %s3095_s21 = scalar_select %p2442_p6, 1, 0 }
   0xe   : > { %p2437_p5 = pnand %p2425_p2, %p2098_p4  ;;  %s2198_s24 = scalar_lea.vmem %s299_s13, 32 }
   0xf   : > { %p2199_p11 = scmp.lt.s32.totalorder %s299_s13, %s299_s13  ;;  %p2200_p12 = scmp.lt.s32.totalorder %s2198_s24, %s2191_s23 }
  0x10   : > { %p2448_p7 = pneg %p2437_p5 }
  0x11   : > { %p2201_p13 = por %p2200_p12, %p2199_p11 }
  0x12   : > { %p2194_p9 = pnand %p2192_p8, %p2448_p7 }
  0x14   : > { %p2195_p10 = pneg %p2194_p9 }
  0x16   : > { %p2202_p0 = pnand %p2201_p13, %p2195_p10 }
  0x18   : > { %2205 = shalt.err (!%p2202_p0)
}
  0x19   : > { %2104 = dma.hbm_to_vmem [thread:$0]  (!%p2437_p5), %s3082_s3, 16, %s299_s13, [#allocation5]  }
  0x1a   : > { %s2217_s27 = scalar_lea.vmem %s323_s18, 16  ;;  %s2224_s28 = scalar_lea.vmem %s323_s18, 32 }
  0x1b   : > { %p2218_p1 = scmp.ne.s32.totalorder %s323_s18, %s2217_s27  ;;  %p2225_p8 = scmp.lt.s32.totalorder %s323_s18, %s323_s18 }
  0x1c   : > { %p2226_p9 = scmp.lt.s32.totalorder %s2224_s28, %s2217_s27 }
  0x1d   : > { %p2220_p4 = pnand %p2218_p1, %p2448_p7 }
  0x1e   : > { %p2227_p3 = por %p2226_p9, %p2225_p8 }
  0x1f   : > { %p2221_p2 = pneg %p2220_p4 }
  0x21   : > { %p2228_p6 = pnand %p2227_p3, %p2221_p2 }
  0x23   : > { %2231 = shalt.err (!%p2228_p6)
}
  0x24   : > { %2110 = dma.hbm_to_vmem [thread:$0]  (!%p2437_p5), %s3084_s5, 16, %s323_s18, [#allocation8]  }
  0x25   : > { %p3097_p10 = scmp.ne.s32.totalorder %s3095_s21, 0  ;;  %s2348_s13 = smov [#allocation2]  }
  0x26   : > { %s287_s14 = sshll.u32 %s2348_s13, 4  ;;  %s2349_s17 = smov [#allocation6]   ;;  %s288_s14 = int_to_ptr.vmem [resolvable:$true] %s287_s14 }
  0x27   : > { %s3103_s20 = smov (%p3097_p10, %s35_s20), 0  ;;  %s308_s23 = sshll.u32 %s2349_s17, 4  ;;  %s309_s23 = int_to_ptr.vmem [resolvable:$true] %s308_s23 }
  0x28   : > { %s2243_s24 = scalar_lea.vmem %s288_s14, 64  ;;  %p2251_p6 = scmp.lt.s32.totalorder %s288_s14, %s288_s14 }
  0x29   : > { %p2244_p11 = scmp.ne.s32.totalorder %s288_s14, %s2243_s24  ;;  %p2252_p12 = scmp.lt.s32.totalorder %s2243_s24, %s2243_s24 }
  0x2b   : > { %p2246_p2 = pnand %p2244_p11, %p2448_p7  ;;  %p2253_p13 = por %p2252_p12, %p2251_p6 }
  0x2d   : > { %p2247_p3 = pneg %p2246_p2 }
  0x2f   : > { %p2254_p0 = pnand %p2253_p13, %p2247_p3 }
  0x31   : > { %2257 = shalt.err (!%p2254_p0)
}
  0x32   : > { %2101 = dma.hbm_to_vmem [thread:$0]  (!%p2437_p5), %s3081_s2, 64, %s288_s14, [#allocation3]  }
  0x33   : > { %s2269_s25 = scalar_lea.vmem %s309_s23, 512  ;;  %p2277_p9 = scmp.lt.s32.totalorder %s309_s23, %s309_s23 }
  0x34   : > { %p2270_p1 = scmp.ne.s32.totalorder %s309_s23, %s2269_s25  ;;  %p2278_p10 = scmp.lt.s32.totalorder %s2269_s25, %s2269_s25 }
  0x36   : > { %p2272_p4 = pnand %p2270_p1, %p2448_p7  ;;  %p2279_p11 = por %p2278_p10, %p2277_p9 }
  0x38   : > { %p2273_p8 = pneg %p2272_p4 }
  0x3a   : > { %p2280_p2 = pnand %p2279_p11, %p2273_p8 }
  0x3c   : > { %2283 = shalt.err (!%p2280_p2)
}
  0x3d   : > { %s2350_s26 = smov 64   ;;  %s2351_s27 = smov 4  }
  0x3e   : > { %2107 = dma.hbm_to_vmem [thread:$0]  (!%p2437_p5), %s3083_s4, 512, %s309_s23, [#allocation5], %s2350_s26, %s2350_s26, %s2351_s27  }
  0x3f   : > { %s2352_s12 = smov [#allocation9]  }
  0x40   : > { %s336_s13 = sshll.u32 %s2352_s12, 4  ;;  %s337_s13 = int_to_ptr.vmem [resolvable:$true] %s336_s13 }
  0x41   : > { %s2295_s14 = scalar_lea.vmem %s337_s13, 128  ;;  %p2303_p13 = scmp.lt.s32.totalorder %s337_s13, %s337_s13 }
  0x42   : > { %p2296_p3 = scmp.ne.s32.totalorder %s337_s13, %s2295_s14  ;;  %p2304_p0 = scmp.lt.s32.totalorder %s2295_s14, %s2295_s14 }
  0x44   : > { %p2298_p6 = pnand %p2296_p3, %p2448_p7  ;;  %p2305_p1 = por %p2304_p0, %p2303_p13 }
  0x46   : > { %p2299_p12 = pneg %p2298_p6 }
  0x48   : > { %p2306_p4 = pnand %p2305_p1, %p2299_p12 }
  0x4a   : > { %2309 = shalt.err (!%p2306_p4)
}
  0x4b   : > { %2113 = dma.hbm_to_vmem [thread:$0]  (!%p2437_p5), %s3086_s7, 128, %s337_s13, [#allocation8]  }
  0x4c   : > { %p3098_p8 = scmp.ne.s32.totalorder %s3093_s16, 0 }
  0x4d   : > { %p3099_p9 = scmp.ne.s32.totalorder (!%p3098_p8), %s3092_s15, 0 }
  0x4e   : > { %369 = sbr.rel (%p3098_p8) target bundleno = 783 (0x30f), region = 52 }
  0x53   : > { %2323 = dma.done.wait (%p3099_p9), [#allocation3], 64  }
  0x54   : > { %2325 = vsyncadd (%p3099_p9), [#allocation3], 4294967232 }
  0x55   : > { %2327 = dma.done.wait (%p3099_p9), [#allocation5], 528  }
  0x56   : > { %2329 = vsyncadd (%p3099_p9), [#allocation5], 4294966768 }
  0x57   : > { %2331 = dma.done.wait (%p3099_p9), [#allocation8], 144  }
  0x58   : > { %2333 = vsyncadd (%p3099_p9), [#allocation8], 4294967152  ;;  %p438_p5 = scmp.lt.s32.totalorder %s2336_s30, 1  ;;  %v2353_v0 = vmov 2   ;;  %v2354_v1 = vmov 1   ;;  %v2355_v2 = vmov 0   ;;  %v481_v42 = vlaneseq }
  0x59   : > { %2161 = vset.pattern.permute.xlu1 %v2353_v0  ;;  %2160 = vset.pattern.permute.xlu0 %v2354_v1  ;;  %v2176_v9 = vld [vmem:[#allocation6 + $0x18] sm:$0xff]   ;;  %v2177_v11 = vld [vmem:[#allocation6 + $0x10] sm:$0xff]   ;;  %v2178_v12 = vld [vmem:[#allocation6 + $0x8] sm:$0xff]   ;;  %vm717_vm0 = vcmask 519168   ;;  %vm765_vm1 = vcmask 523264  }
  0x5a   : > { %s3105_s30 = smov (!%p438_p5, %s2336_s30), 1  ;;  %1313 = vmatprep.mubr.bf16.mxu1 %v2355_v2  ;;  %2046 = vmatprep.subr.bf16.mxu0 %v2176_v9  ;;  %v2179_v14 = vld [vmem:[#allocation6] sm:$0xff]   ;;  %v2588_v45 = vshrl.u32 %v481_v42, 7  ;;  %v475_v50 = vld [vmem:[#allocation2] sm:$0x7] }
  0x5b   : > { %s1940_s16 = sshll.u32 %s3105_s30, 2  ;;  %s2028_s23 = sshll.u32 %s3105_s30, 6  ;;  %2047 = vmatpush3.bf16.msra.mxu0 %v2176_v9  ;;  %v911_v16 = vld [vmem:[%s3085_s6 + $0x1c0] sm:$0xff]  ;;  %v2553_v18 = vld [vmem:[%s3085_s6 + $0x1c8] sm:$0xff] }
  0x5c   : > { %s450_s22 = scalar_lea.vmem %s3080_s1, %s1940_s16  ;;  %s2520_s25 = scalar_lea.vmem %s3079_s0, %s2028_s23  ;;  %2048 = vmatprep.subr.bf16.mxu0 %v2177_v11  ;;  %v915_v17 = vld [vmem:[%s3085_s6 + $0x1e0] sm:$0xff]  ;;  %v2558_v20 = vld [vmem:[%s3085_s6 + $0x1e8] sm:$0xff]  ;;  %v2591_v47 = vsub.s32 1, %v2588_v45  ;;  %v2594_v49 = vsub.s32 0, %v2588_v45  ;;  %v2597_v51 = vsub.s32 2, %v2588_v45 }
  0x5d   : > { %v474_v3 = vld [vmem:[%s450_s22] sm:$0x7]  ;;  %v469_v5 = vld [vmem:[%s2520_s25 + $0x18] sm:$0xff]  ;;  %v467_v6 = vld [vmem:[%s2520_s25 + $0x8] sm:$0xff]  ;;  %v2019_v19 = vcombine.high %v911_v16, %v915_v17  ;;  %v2018_v21 = vcombine.low %v911_v16, %v915_v17  ;;  %v2020_v24 = vcombine.low %v2553_v18, %v2558_v20  ;;  %v2021_v25 = vcombine.high %v2553_v18, %v2558_v20  ;;  %s2029_s17 = sshll.u32 %s3105_s30, 5  ;;  %s1943_s18 = sshll.u32 %s3105_s30, 3 }
  0x5e   : > { %497 = vperm.xlu1 %2161, %v474_v3   ;;  %487 = vperm.xlu0 %2160, %v474_v3   ;;  %v466_v4 = vld [vmem:[%s2520_s25] sm:$0xff]  ;;  %v468_v7 = vld [vmem:[%s2520_s25 + $0x10] sm:$0xff]  ;;  %v471_v8 = vld [vmem:[%s2520_s25 + $0x28] sm:$0xff]  ;;  %v493_v52 = vrot.slane %v475_v50, %v2591_v47  ;;  %v484_v55 = vrot.slane %v475_v50, %v2594_v49  ;;  %v503_v56 = vrot.slane %v475_v50, %v2597_v51  ;;  %s2630_s19 = scalar_lea.vmem %s3087_s8, %s2029_s17  ;;  %s464_s26 = scalar_lea.vmem %s3088_s9, %s1943_s18 }
  0x5f   : > { %v472_v10 = vld [vmem:[%s2520_s25 + $0x30] sm:$0xff]  ;;  %2049 = vmatpush3.bf16.msra.mxu0 %v2177_v11  ;;  %v470_v13 = vld [vmem:[%s2520_s25 + $0x20] sm:$0xff]  ;;  %v473_v15 = vld [vmem:[%s2520_s25 + $0x38] sm:$0xff]  ;;  %1281 = vmatprep.subr.bf16.mxu1 %v2019_v19 }
  0x60   : > { %2050 = vmatprep.subr.bf16.mxu0 %v2178_v12  ;;  %v903_v22 = vld [vmem:[%s3085_s6 + $0x180] sm:$0xff]  ;;  %1282 = vmatpush1.bf16.msra.mxu1 %v2018_v21  ;;  %v904_v50 = vld [vmem:[%s3085_s6 + $0x188] sm:$0xff] }
  0x61   : > { %v907_v23 = vld [vmem:[%s3085_s6 + $0x1a0] sm:$0xff] }
  0x62   : > { %2162 = vset.pattern.permute.xlu1 %v2355_v2  ;;  %559 = vperm.xlu0 %2160, %v466_v4   ;;  %v2011_v26 = vcombine.high %v903_v22, %v907_v23  ;;  %v895_v27 = vld [vmem:[%s3085_s6 + $0x140] sm:$0xff]  ;;  %v2010_v29 = vcombine.low %v903_v22, %v907_v23 }
  0x63   : > { %508 = vperm.xlu1 %2162, %v466_v4   ;;  %2051 = vmatpush3.bf16.msra.mxu0 %v2178_v12  ;;  %v899_v28 = vld [vmem:[%s3085_s6 + $0x160] sm:$0xff] }
  0x64   : > { %2052 = vmatprep.subr.bf16.mxu0 %v2179_v14  ;;  %1283 = vmatprep.subr.bf16.mxu1 %v2011_v26  ;;  %v2003_v30 = vcombine.high %v895_v27, %v899_v28  ;;  %v887_v31 = vld [vmem:[%s3085_s6 + $0x100] sm:$0xff]  ;;  %v2002_v33 = vcombine.low %v895_v27, %v899_v28 }
  0x65   : > { %v891_v32 = vld [vmem:[%s3085_s6 + $0x120] sm:$0xff]  ;;  %1284 = vmatpush1.bf16.msra.mxu1 %v2010_v29 }
  0x66   : > { %571 = vperm.xlu0 %2160, %v469_v5   ;;  %1285 = vmatprep.subr.bf16.mxu1 %v2003_v30  ;;  %v1995_v34 = vcombine.high %v887_v31, %v891_v32  ;;  %v879_v35 = vld [vmem:[%s3085_s6 + $0xc0] sm:$0xff]  ;;  %v1994_v37 = vcombine.low %v887_v31, %v891_v32 }
  0x67   : > { %513 = vperm.xlu1 %2162, %v467_v6   ;;  %2053 = vmatpush3.bf16.msra.mxu0 %v2179_v14  ;;  %v883_v36 = vld [vmem:[%s3085_s6 + $0xe0] sm:$0xff] }
  0x68   : > { %1354 = vmatprep.subr.bf16.mxu0 %v2021_v25  ;;  %v1987_v38 = vcombine.high %v879_v35, %v883_v36  ;;  %v1986_v39 = vcombine.low %v879_v35, %v883_v36  ;;  %v2619_v17 = vld [vmem:[#allocation4] ss:$0 sm:$0xff] }
  0x69   : > { %1286 = vmatpush1.bf16.msra.mxu1 %v2002_v33 }
  0x6a   : > { %2167 = vset.pattern.permute.xlu0 %v2353_v0  ;;  %1287 = vmatprep.subr.bf16.mxu1 %v1995_v34 }
  0x6b   : > { %619 = vperm.xlu0 %2167, %v468_v7   ;;  %2163 = vset.pattern.permute.xlu1 %v2354_v1 }
  0x6c   : > { %563 = vperm.xlu1 %2163, %v467_v6  }
  0x6d   : > { %1288 = vmatpush1.bf16.msra.mxu1 %v1994_v37 }
  0x6e   : > { %1289 = vmatprep.subr.bf16.mxu1 %v1987_v38 }
  0x6f   : > { %2168 = vset.pattern.permute.xlu0 %v2355_v2 }
  0x70   : > { %478 = vperm.xlu0 %2168, %v474_v3   ;;  %2164 = vset.pattern.permute.xlu1 %v2355_v2 }
  0x71   : > { %523 = vperm.xlu1 %2164, %v469_v5   ;;  %1290 = vmatpush1.bf16.msra.mxu1 %v1986_v39 }
  0x74   : > { %518 = vperm.xlu0 %2168, %v468_v7  }
  0x75   : > { %2165 = vset.pattern.permute.xlu1 %v2354_v1 }
  0x76   : > { %567 = vperm.xlu1 %2165, %v468_v7  }
  0x78   : > { %533 = vperm.xlu0 %2168, %v471_v8  }
  0x7a   : > { %2166 = vset.pattern.permute.xlu1 %v2353_v0 }
  0x7b   : > { %611 = vperm.xlu1 %2166, %v466_v4  }
  0x7c   : > { %538 = vperm.xlu0 %2168, %v472_v10  }
  0x7f   : > { %615 = vperm.xlu1 %2166, %v467_v6  }
  0x80   : > { %2172 = vset.pattern.permute.xlu0 %v2354_v1 }
  0x81   : > { %583 = vperm.xlu0 %2172, %v472_v10  }
  0x83   : > { %623 = vperm.xlu1 %2166, %v469_v5  }
  0x85   : > { %2175 = vset.pattern.permute.xlu0 %v2353_v0 }
  0x86   : > { %631 = vperm.xlu0 %2175, %v471_v8  }
  0x87   : > { %2169 = vset.pattern.permute.xlu1 %v2355_v2 }
  0x88   : > { %528 = vperm.xlu1 %2169, %v470_v13  }
  0x8c   : > { %2170 = vset.pattern.permute.xlu1 %v2354_v1 }
  0x8d   : > { %575 = vperm.xlu1 %2170, %v470_v13  }
  0x91   : > { %579 = vperm.xlu1 %2170, %v471_v8  }
  0x95   : > { %2171 = vset.pattern.permute.xlu1 %v2355_v2 }
  0x96   : > { %543 = vperm.xlu1 %2171, %v473_v15  }
  0x9a   : > { %2173 = vset.pattern.permute.xlu1 %v2354_v1 }
  0x9b   : > { %587 = vperm.xlu1 %2173, %v473_v15  }
  0x9f   : > { %2174 = vset.pattern.permute.xlu1 %v2353_v0 }
  0xa0   : > { %627 = vperm.xlu1 %2174, %v470_v13  }
  0xa4   : > { %635 = vperm.xlu1 %2174, %v472_v10  }
  0xa8   : > { %639 = vperm.xlu1 %2174, %v473_v15  }
  0xd9   : > { %v498_v40 = vpop.permute.xlu1 %497  ;;  %v488_v41 = vpop.permute.xlu0 %487 }
  0xda   : > { %v494_v57 = vmul.f32 %v493_v52, %v488_v41  ;;  %v504_v61 = vmul.f32 %v503_v56, %v498_v40  ;;  %v908_v52 = vld [vmem:[%s3085_s6 + $0x1a8] sm:$0xff] }
  0xdd   : > { %v560_v43 = vpop.permute.xlu0 %559 }
  0xde   : > { %v509_v44 = vpop.permute.xlu1 %508 }
  0xe1   : > { %v572_v46 = vpop.permute.xlu0 %571 }
  0xe2   : > { %v514_v48 = vpop.permute.xlu1 %513 }
  0xe6   : > { %v620_v53 = vpop.permute.xlu0 %619 }
  0xe7   : > { %v564_v54 = vpop.permute.xlu1 %563 }
  0xeb   : > { %v479_v58 = vpop.permute.xlu0 %478 }
  0xec   : > { %v485_v59 = vmul.f32 %v484_v55, %v479_v58  ;;  %v524_v60 = vpop.permute.xlu1 %523 }
  0xee   : > { %v495_v62 = vadd.f32 %v494_v57, %v485_v59  ;;  %v2013_v57 = vcombine.high %v904_v50, %v908_v52  ;;  %v896_v59 = vld [vmem:[%s3085_s6 + $0x148] sm:$0xff] }
  0xef   : > { %v519_v5 = vpop.permute.xlu0 %518 }
  0xf0   : > { %v505_v63 = vadd.f32 %v504_v61, %v495_v62  ;;  %v2012_v61 = vcombine.low %v904_v50, %v908_v52 }
  0xf1   : > { %v568_v0 = vpop.permute.xlu1 %567 }
  0xf2   : > { %v2603_v1 = vrot.slane %v505_v63, %v2594_v49  ;;  %v2606_v3 = vrot.slane %v505_v63, %v2591_v47  ;;  %v2609_v4 = vrot.slane %v505_v63, %v2597_v51 }
  0xf3   : > { %v534_v25 = vpop.permute.xlu0 %533 }
  0xf4   : > { %v552_v6 = vmul.f32 %v2603_v1, %v519_v5  ;;  %v596_v7 = vmul.f32 %v2606_v3, %v568_v0  ;;  %v550_v8 = vmul.f32 %v2603_v1, %v509_v44  ;;  %v594_v9 = vmul.f32 %v2606_v3, %v560_v43  ;;  %v888_v5 = vld [vmem:[%s3085_s6 + $0x108] sm:$0xff] }
  0xf5   : > { %v648_v10 = vmul.f32 %v2609_v4, %v620_v53  ;;  %v551_v12 = vmul.f32 %v2603_v1, %v514_v48  ;;  %v595_v16 = vmul.f32 %v2606_v3, %v564_v54  ;;  %v597_v22 = vmul.f32 %v2606_v3, %v572_v46 }
  0xf6   : > { %v612_v11 = vpop.permute.xlu1 %611  ;;  %v604_v13 = vadd.f32 %v596_v7, %v552_v6  ;;  %v602_v14 = vadd.f32 %v594_v9, %v550_v8  ;;  %v553_v23 = vmul.f32 %v2603_v1, %v524_v60  ;;  %v900_v60 = vld [vmem:[%s3085_s6 + $0x168] sm:$0xff]  ;;  %v555_v7 = vmul.f32 %v2603_v1, %v534_v25 }
  0xf7   : > { %v646_v15 = vmul.f32 %v2609_v4, %v612_v11  ;;  %v603_v28 = vadd.f32 %v595_v16, %v551_v12  ;;  %v2634_v39 = vpop.permute.xlu0 %538  ;;  %v2005_v62 = vcombine.high %v896_v59, %v900_v60  ;;  %v892_v6 = vld [vmem:[%s3085_s6 + $0x128] sm:$0xff]  ;;  %v2004_v18 = vcombine.low %v896_v59, %v900_v60 }
  0xf8   : > { %v656_v19 = vadd.f32 %v648_v10, %v604_v13  ;;  %v605_v35 = vadd.f32 %v597_v22, %v553_v23  ;;  %v1997_v9 = vcombine.high %v888_v5, %v892_v6  ;;  %v880_v10 = vld [vmem:[%s3085_s6 + $0xc8] sm:$0xff] }
  0xf9   : > { %v654_v21 = vadd.f32 %v646_v15, %v602_v14  ;;  %v884_v11 = vld [vmem:[%s3085_s6 + $0xe8] sm:$0xff]  ;;  %v1996_v14 = vcombine.low %v888_v5, %v892_v6 }
  0xfa   : > { %v616_v26 = vpop.permute.xlu1 %615  ;;  %v671_v27 = vadd.f32 %v2619_v17, %v656_v19  ;;  %v1989_v16 = vcombine.high %v880_v10, %v884_v11  ;;  %v1988_v22 = vcombine.low %v880_v10, %v884_v11  ;;  %v868_v6 = vld [vmem:[%s3085_s6 + $0x68] sm:$0xff] }
  0xfb   : > { %v647_v29 = vmul.f32 %v2609_v4, %v616_v26  ;;  %v669_v30 = vadd.f32 %v2619_v17, %v654_v21  ;;  %v860_v11 = vld [vmem:[%s3085_s6 + $0x28] sm:$0xff] }
  0xfc   : > { %v679_v31 = vmax.f32 %v671_v27, 0.0  ;;  %v584_v54 = vpop.permute.xlu0 %583 }
  0xfd   : > { %v655_v32 = vadd.f32 %v647_v29, %v603_v28  ;;  %v677_v33 = vmax.f32 %v669_v30, 0.0  ;;  %v600_v28 = vmul.f32 %v2606_v3, %v584_v54 }
  0xfe   : > { %v624_v34 = vpop.permute.xlu1 %623  ;;  %v2032_v36 = vpack.c.bf16 %v679_v31, %v679_v31 }
  0xff   : > { %v649_v37 = vmul.f32 %v2609_v4, %v624_v34  ;;  %v670_v38 = vadd.f32 %v2619_v17, %v655_v32  ;;  %v2030_v40 = vpack.c.bf16 %v677_v33, %v677_v33 }
 0x100   : > { %720 = vst.msk [vmem:[%s2630_s19 + $0x8] sm:$0xf] %vm717_vm0, %v2032_v36 }
 0x101   : > { %v657_v41 = vadd.f32 %v649_v37, %v605_v35  ;;  %v678_v42 = vmax.f32 %v670_v38, 0.0  ;;  %718 = vst.msk [vmem:[%s2630_s19] sm:$0xf] %vm717_vm0, %v2030_v40  ;;  %v632_v63 = vpop.permute.xlu0 %631 }
 0x102   : > { %v651_v20 = vmul.f32 %v2609_v4, %v632_v63  ;;  %v867_v63 = vld [vmem:[%s3085_s6 + $0x60] sm:$0xff] }
 0x103   : > { %v672_v43 = vadd.f32 %v2619_v17, %v657_v41  ;;  %v529_v44 = vpop.permute.xlu1 %528  ;;  %v685_v46 = vpack.c.bf16 %v678_v42, %v677_v33  ;;  %v2031_v48 = vpack.c.bf16 %v678_v42, %v678_v42 }
 0x104   : > { %v554_v26 = vmul.f32 %v2603_v1, %v529_v44 }
 0x105   : > { %v680_v53 = vmax.f32 %v672_v43, 0.0  ;;  %719 = vst.msk [vmem:[%s2630_s19 + $0x4] sm:$0xf] %vm717_vm0, %v2031_v48  ;;  %2054 = vmatprep.mubr.msk.bf16.mxu0 %vm765_vm1, %v685_v46 }
 0x107   : > { %v686_v55 = vpack.c.bf16 %v680_v53, %v679_v31  ;;  %v2033_v56 = vpack.c.bf16 %v680_v53, %v680_v53  ;;  %v556_v31 = vmul.f32 %v2603_v1, %v2634_v39 }
 0x108   : > { %v576_v58 = vpop.permute.xlu1 %575 }
 0x109   : > { %721 = vst.msk [vmem:[%s2630_s19 + $0xc] sm:$0xf] %vm717_vm0, %v2033_v56  ;;  %2055 = vmatmul.mubr.msk.bf16.vlgmr.msra.gmra.mxu0 %vm765_vm1, %v686_v55  ;;  %v598_v25 = vmul.f32 %v2606_v3, %v576_v58  ;;  %v608_v35 = vadd.f32 %v600_v28, %v556_v31  ;;  %v875_v56 = vld [vmem:[%s3085_s6 + $0xa0] sm:$0xff]  ;;  %v876_v58 = vld [vmem:[%s3085_s6 + $0xa8] sm:$0xff] }
 0x10a   : > { %1355 = vmatpush1.bf16.msra.mxu0 %v2020_v24 }
 0x10b   : > { %1356 = vmatprep.subr.bf16.mxu0 %v2013_v57  ;;  %v606_v29 = vadd.f32 %v598_v25, %v554_v26  ;;  %v872_v57 = vld [vmem:[%s3085_s6 + $0x88] sm:$0xff] }
 0x10c   : > { %v580_v0 = vpop.permute.xlu1 %579  ;;  %v1980_v59 = vcombine.low %v872_v57, %v876_v58  ;;  %v1981_v60 = vcombine.high %v872_v57, %v876_v58  ;;  %v890_v57 = vld [vmem:[%s3085_s6 + $0x118] sm:$0xff] }
 0x10d   : > { %v599_v8 = vmul.f32 %v2606_v3, %v580_v0  ;;  %v864_v0 = vld [vmem:[%s3085_s6 + $0x48] sm:$0xff]  ;;  %v894_v58 = vld [vmem:[%s3085_s6 + $0x138] sm:$0xff] }
 0x10e   : > { %1357 = vmatpush1.bf16.msra.mxu0 %v2012_v61 }
 0x10f   : > { %v607_v24 = vadd.f32 %v599_v8, %v555_v7  ;;  %1358 = vmatprep.subr.bf16.mxu0 %v2005_v62  ;;  %v863_v62 = vld [vmem:[%s3085_s6 + $0x40] sm:$0xff]  ;;  %v1972_v7 = vcombine.low %v864_v0, %v868_v6  ;;  %v1973_v8 = vcombine.high %v864_v0, %v868_v6  ;;  %v881_v0 = vld [vmem:[%s3085_s6 + $0xd0] sm:$0xff]  ;;  %v882_v6 = vld [vmem:[%s3085_s6 + $0xd8] sm:$0xff] }
 0x110   : > { %v1971_v5 = vcombine.high %v863_v62, %v867_v63 }
 0x111   : > { %v659_v12 = vadd.f32 %v651_v20, %v607_v24  ;;  %v544_v13 = vpop.permute.xlu1 %543  ;;  %v855_v20 = vld [vmem:[%s3085_s6] sm:$0xff] }
 0x112   : > { %1359 = vmatpush1.bf16.msra.mxu0 %v2004_v18  ;;  %v557_v38 = vmul.f32 %v2603_v1, %v544_v13  ;;  %v1970_v18 = vcombine.low %v863_v62, %v867_v63  ;;  %v859_v24 = vld [vmem:[%s3085_s6 + $0x20] sm:$0xff]  ;;  %v2817_v63 = vcombine.high %v890_v57, %v894_v58 }
 0x113   : > { %v674_v15 = vadd.f32 %v2619_v17, %v659_v12  ;;  %1360 = vmatprep.subr.bf16.mxu0 %v1997_v9  ;;  %v856_v9 = vld [vmem:[%s3085_s6 + $0x8] sm:$0xff]  ;;  %v1963_v10 = vcombine.high %v855_v20, %v859_v24 }
 0x114   : > { %v1964_v12 = vcombine.low %v856_v9, %v860_v11  ;;  %v1965_v13 = vcombine.high %v856_v9, %v860_v11  ;;  %v873_v9 = vld [vmem:[%s3085_s6 + $0x90] sm:$0xff]  ;;  %v874_v11 = vld [vmem:[%s3085_s6 + $0x98] sm:$0xff] }
 0x115   : > { %v682_v19 = vmax.f32 %v674_v15, 0.0  ;;  %v913_v15 = vld [vmem:[%s3085_s6 + $0x1d0] sm:$0xff] }
 0x116   : > { %v588_v21 = vpop.permute.xlu1 %587  ;;  %1361 = vmatpush1.bf16.msra.mxu0 %v1996_v14  ;;  %v1962_v14 = vcombine.low %v855_v20, %v859_v24 }
 0x117   : > { %v2035_v23 = vpack.c.bf16 %v682_v19, %v682_v19  ;;  %1362 = vmatprep.subr.bf16.mxu0 %v1989_v16  ;;  %v601_v33 = vmul.f32 %v2606_v3, %v588_v21  ;;  %v917_v16 = vld [vmem:[%s3085_s6 + $0x1f0] sm:$0xff] }
 0x118   : > { %v2022_v21 = vcombine.low %v913_v15, %v917_v16 }
 0x119   : > { %723 = vst.msk [vmem:[%s2630_s19 + $0x14] sm:$0xf] %vm717_vm0, %v2035_v23  ;;  %v609_v42 = vadd.f32 %v601_v33, %v557_v38  ;;  %v918_v23 = vld [vmem:[%s3085_s6 + $0x1f8] sm:$0xff] }
 0x11a   : > { %1363 = vmatpush1.bf16.msra.mxu0 %v1988_v22  ;;  %v2023_v22 = vcombine.high %v913_v15, %v917_v16  ;;  %v906_v38 = vld [vmem:[%s3085_s6 + $0x198] sm:$0xff] }
 0x11b   : > { %v628_v27 = vpop.permute.xlu1 %627  ;;  %1364 = vmatprep.subr.bf16.mxu0 %v1981_v60 }
 0x11c   : > { %v650_v30 = vmul.f32 %v2609_v4, %v628_v27 }
 0x11e   : > { %v658_v32 = vadd.f32 %v650_v30, %v606_v29  ;;  %1365 = vmatpush1.bf16.msra.mxu0 %v1980_v59  ;;  %v2755_v29 = vld [vmem:[#allocation7] ss:$0 sm:$0xff] }
 0x11f   : > { %v636_v34 = vpop.permute.xlu1 %635  ;;  %1366 = vmatprep.subr.bf16.mxu0 %v1973_v8 }
 0x120   : > { %v673_v36 = vadd.f32 %v2619_v17, %v658_v32  ;;  %v652_v37 = vmul.f32 %v2609_v4, %v636_v34  ;;  %v905_v34 = vld [vmem:[%s3085_s6 + $0x190] sm:$0xff] }
 0x122   : > { %v681_v40 = vmax.f32 %v673_v36, 0.0  ;;  %v660_v41 = vadd.f32 %v652_v37, %v608_v35  ;;  %1367 = vmatpush1.bf16.msra.mxu0 %v1972_v7  ;;  %v909_v37 = vld [vmem:[%s3085_s6 + $0x1b0] sm:$0xff]  ;;  %v886_v7 = vld [vmem:[%s3085_s6 + $0xf8] sm:$0xff] }
 0x123   : > { %v640_v43 = vpop.permute.xlu1 %639  ;;  %1368 = vmatprep.subr.bf16.mxu0 %v1965_v13  ;;  %v2839_v24 = vcombine.high %v882_v6, %v886_v7 }
 0x124   : > { %v687_v44 = vpack.c.bf16 %v682_v19, %v681_v40  ;;  %v2034_v39 = vpack.c.bf16 %v681_v40, %v681_v40  ;;  %v675_v46 = vadd.f32 %v2619_v17, %v660_v41  ;;  %v653_v3 = vmul.f32 %v2609_v4, %v640_v43  ;;  %v871_v4 = vld [vmem:[%s3085_s6 + $0x80] sm:$0xff]  ;;  %v914_v19 = vld [vmem:[%s3085_s6 + $0x1d8] sm:$0xff] }
 0x125   : > { %v1978_v61 = vcombine.low %v871_v4, %v875_v56  ;;  %v2750_v25 = vcombine.low %v914_v19, %v918_v23  ;;  %v2752_v26 = vcombine.high %v914_v19, %v918_v23  ;;  %v910_v40 = vld [vmem:[%s3085_s6 + $0x1b8] sm:$0xff]  ;;  %v2015_v43 = vcombine.high %v905_v34, %v909_v37  ;;  %v865_v19 = vld [vmem:[%s3085_s6 + $0x50] sm:$0xff] }
 0x126   : > { %722 = vst.msk [vmem:[%s2630_s19 + $0x10] sm:$0xf] %vm717_vm0, %v2034_v39  ;;  %v683_v48 = vmax.f32 %v675_v46, 0.0  ;;  %v661_v50 = vadd.f32 %v653_v3, %v609_v42  ;;  %2058 = vmatprep.mubr.msk.bf16.mxu0 %vm765_vm1, %v687_v44  ;;  %1369 = vmatpush1.bf16.msra.mxu0 %v1964_v12  ;;  %v2774_v44 = vcombine.high %v906_v38, %v910_v40  ;;  %v897_v39 = vld [vmem:[%s3085_s6 + $0x150] sm:$0xff]  ;;  %v878_v12 = vld [vmem:[%s3085_s6 + $0xb8] sm:$0xff] }
 0x127   : > { %1500 = vmatprep.subr.bf16.mxu0 %v2752_v26  ;;  %v901_v3 = vld [vmem:[%s3085_s6 + $0x170] sm:$0xff]  ;;  %v2857_v16 = vcombine.high %v874_v11, %v878_v12  ;;  %v870_v23 = vld [vmem:[%s3085_s6 + $0x78] sm:$0xff] }
 0x128   : > { %v2036_v52 = vpack.c.bf16 %v683_v48, %v683_v48  ;;  %v676_v1 = vadd.f32 %v2619_v17, %v661_v50  ;;  %v1979_v17 = vcombine.high %v871_v4, %v875_v56  ;;  %v902_v50 = vld [vmem:[%s3085_s6 + $0x178] sm:$0xff]  ;;  %v889_v4 = vld [vmem:[%s3085_s6 + $0x110] sm:$0xff]  ;;  %v2006_v60 = vcombine.low %v897_v39, %v901_v3 }
 0x12a   : > { %724 = vst.msk [vmem:[%s2630_s19 + $0x18] sm:$0xf] %vm717_vm0, %v2036_v52  ;;  %v684_v53 = vmax.f32 %v676_v1, 0.0  ;;  %1291 = vmatprep.subr.bf16.mxu1 %v1979_v17  ;;  %v2014_v1 = vcombine.low %v905_v34, %v909_v37  ;;  %v893_v17 = vld [vmem:[%s3085_s6 + $0x130] sm:$0xff]  ;;  %v858_v34 = vld [vmem:[%s3085_s6 + $0x18] sm:$0xff] }
 0x12b   : > { %1292 = vmatpush1.bf16.msra.mxu1 %v1978_v61  ;;  %v1999_v62 = vcombine.high %v889_v4, %v893_v17  ;;  %v1998_v8 = vcombine.low %v889_v4, %v893_v17 }
 0x12c   : > { %v688_v54 = vpack.c.bf16 %v684_v53, %v683_v48  ;;  %v2037_v55 = vpack.c.bf16 %v684_v53, %v684_v53  ;;  %1293 = vmatprep.subr.bf16.mxu1 %v1971_v5  ;;  %v898_v48 = vld [vmem:[%s3085_s6 + $0x158] sm:$0xff]  ;;  %v2794_v53 = vcombine.low %v906_v38, %v910_v40  ;;  %v885_v5 = vld [vmem:[%s3085_s6 + $0xf0] sm:$0xff] }
 0x12d   : > { %v2814_v61 = vcombine.low %v898_v48, %v902_v50  ;;  %v1991_v20 = vcombine.high %v881_v0, %v885_v5  ;;  %v1990_v13 = vcombine.low %v881_v0, %v885_v5 }
 0x12e   : > { %725 = vst.msk [vmem:[%s2630_s19 + $0x1c] sm:$0xf] %vm717_vm0, %v2037_v55  ;;  %2059 = vmatmul.mubr.msk.bf16.gmra.mxu0 %vm765_vm1, %v688_v54  ;;  %v2007_v54 = vcombine.high %v897_v39, %v901_v3  ;;  %v2797_v55 = vcombine.high %v898_v48, %v902_v50 }
 0x12f   : > { %1386 = vmatprep.mubr.bf16.mxu0 %v2355_v2  ;;  %1294 = vmatpush1.bf16.msra.mxu1 %v1970_v18  ;;  %v2836_v18 = vcombine.low %v890_v57, %v894_v58 }
 0x130   : > { %1295 = vmatprep.subr.bf16.mxu1 %v1963_v10  ;;  %v877_v10 = vld [vmem:[%s3085_s6 + $0xb0] sm:$0xff] }
 0x131   : > { %v1983_v15 = vcombine.high %v873_v9, %v877_v10 }
 0x133   : > { %1296 = vmatpush1.bf16.msra.mxu1 %v1962_v14  ;;  %v2854_v14 = vcombine.low %v882_v6, %v886_v7 }
 0x134   : > { %1427 = vmatprep.subr.bf16.mxu1 %v2023_v22  ;;  %v866_v22 = vld [vmem:[%s3085_s6 + $0x58] sm:$0xff] }
 0x135   : > { %v1976_v37 = vcombine.low %v866_v22, %v870_v23 }
 0x1c9   : > { %v2056_v27 = vpop.f32.mrf.mxu0 }
 0x1ca   : > { %v821_v46 = vadd.f32 %v2056_v27, %v2755_v29  ;;  %v1982_v27 = vcombine.low %v873_v9, %v877_v10 }
 0x1cb   : > { %v812_v28 = vpop.f32.mrf.mxu0 }
 0x1cc   : > { %v813_v31 = vadd.f32 %v2755_v29, %v812_v28  ;;  %v845_v56 = vmax.f32 %v821_v46, 0.0  ;;  %v2872_v28 = vcombine.low %v874_v11, %v878_v12 }
 0x1cd   : > { %v2057_v30 = vpop.f32.mrf.mxu0 }
 0x1ce   : > { %v843_v35 = vmax.f32 %v813_v31, 0.0  ;;  %v824_v41 = vadd.f32 %v2057_v30, %v2755_v29  ;;  %v2875_v31 = vcombine.high %v866_v22, %v870_v23 }
 0x1cf   : > { %v815_v32 = vpop.f32.mrf.mxu0 }
 0x1d0   : > { %v816_v33 = vadd.f32 %v2755_v29, %v815_v32  ;;  %v846_v52 = vmax.f32 %v824_v41, 0.0  ;;  %v857_v32 = vld [vmem:[%s3085_s6 + $0x10] sm:$0xff] }
 0x1d2   : > { %v844_v36 = vmax.f32 %v816_v33, 0.0  ;;  %v2811_v59 = vpack.c.bf16 %v846_v52, %v845_v56  ;;  %v861_v33 = vld [vmem:[%s3085_s6 + $0x30] sm:$0xff] }
 0x1d3   : > { %v1967_v38 = vcombine.high %v857_v32, %v861_v33  ;;  %v1966_v39 = vcombine.low %v857_v32, %v861_v33 }
 0x1d4   : > { %v2772_v42 = vpack.c.bf16 %v844_v36, %v843_v35  ;;  %v862_v35 = vld [vmem:[%s3085_s6 + $0x38] sm:$0xff] }
 0x1d5   : > { %v1969_v40 = vcombine.high %v858_v34, %v862_v35  ;;  %v1968_v46 = vcombine.low %v858_v34, %v862_v35 }
 0x1d6   : > { %1314 = vmatmul.mubr.bf16.vlgmr.msra.gmra.mxu1 %v2772_v42  ;;  %1387 = vmatmul.mubr.bf16.vlgmr.msra.gmra.mxu0 %v2772_v42 }
 0x1d7   : > { %1323 = vmatprep.mubr.bf16.mxu1 %v2355_v2  ;;  %1396 = vmatprep.mubr.bf16.mxu0 %v2355_v2 }
 0x1d8   : > { %1428 = vmatpush1.bf16.msra.mxu1 %v2022_v21  ;;  %1501 = vmatpush1.bf16.msra.mxu0 %v2750_v25  ;;  %v869_v21 = vld [vmem:[%s3085_s6 + $0x70] sm:$0xff] }
 0x1d9   : > { %1429 = vmatprep.subr.bf16.mxu1 %v2015_v43  ;;  %1502 = vmatprep.subr.bf16.mxu0 %v2774_v44  ;;  %v1975_v30 = vcombine.high %v865_v19, %v869_v21  ;;  %v1974_v36 = vcombine.low %v865_v19, %v869_v21 }
 0x1dc   : > { %1430 = vmatpush1.bf16.msra.mxu1 %v2014_v1  ;;  %1503 = vmatpush1.bf16.msra.mxu0 %v2794_v53 }
 0x1dd   : > { %1431 = vmatprep.subr.bf16.mxu1 %v2007_v54  ;;  %1504 = vmatprep.subr.bf16.mxu0 %v2797_v55 }
 0x1de   : > { %1324 = vmatmul.mubr.bf16.gmra.mxu1 %v2811_v59  ;;  %1397 = vmatmul.mubr.bf16.gmra.mxu0 %v2811_v59 }
 0x1df   : > { %1333 = vmatprep.mubr.bf16.mxu1 %v2355_v2  ;;  %1406 = vmatprep.mubr.bf16.mxu0 %v2355_v2 }
 0x1e0   : > { %1432 = vmatpush1.bf16.msra.mxu1 %v2006_v60  ;;  %1505 = vmatpush1.bf16.msra.mxu0 %v2814_v61 }
 0x1e1   : > { %1433 = vmatprep.subr.bf16.mxu1 %v1999_v62  ;;  %1506 = vmatprep.subr.bf16.mxu0 %v2817_v63 }
 0x1e4   : > { %1434 = vmatpush1.bf16.msra.mxu1 %v1998_v8  ;;  %1507 = vmatpush1.bf16.msra.mxu0 %v2836_v18 }
 0x1e5   : > { %1435 = vmatprep.subr.bf16.mxu1 %v1991_v20  ;;  %1508 = vmatprep.subr.bf16.mxu0 %v2839_v24 }
 0x1e8   : > { %1436 = vmatpush1.bf16.msra.mxu1 %v1990_v13  ;;  %1509 = vmatpush1.bf16.msra.mxu0 %v2854_v14  ;;  %v2922_v13 = vld [vmem:[#allocation9] sm:$0xff] }
 0x1e9   : > { %1437 = vmatprep.subr.bf16.mxu1 %v1983_v15  ;;  %1510 = vmatprep.subr.bf16.mxu0 %v2857_v16  ;;  %v2933_v22 = vrot.slane %v2922_v13, %v2594_v49 }
 0x1ec   : > { %1438 = vmatpush1.bf16.msra.mxu1 %v1982_v27  ;;  %1511 = vmatpush1.bf16.msra.mxu0 %v2872_v28 }
 0x1ed   : > { %1439 = vmatprep.subr.bf16.mxu1 %v1975_v30  ;;  %1512 = vmatprep.subr.bf16.mxu0 %v2875_v31  ;;  %v2945_v30 = vrot.slane %v2922_v13, %v2591_v47 }
 0x1ee   : > { %v2060_v41 = vpop.f32.mrf.mxu0 }
 0x1ef   : > { %v837_v17 = vadd.f32 %v2060_v41, %v2755_v29 }
 0x1f0   : > { %v828_v43 = vpop.f32.mrf.mxu0  ;;  %1440 = vmatpush1.bf16.msra.mxu1 %v1974_v36  ;;  %1513 = vmatpush1.bf16.msra.mxu0 %v1976_v37 }
 0x1f1   : > { %1441 = vmatprep.subr.bf16.mxu1 %v1967_v38  ;;  %1514 = vmatprep.subr.bf16.mxu0 %v1969_v40  ;;  %v829_v48 = vadd.f32 %v2755_v29, %v828_v43  ;;  %v849_v58 = vmax.f32 %v837_v17, 0.0 }
 0x1f2   : > { %v2061_v3 = vpop.f32.mrf.mxu0 }
 0x1f3   : > { %v847_v1 = vmax.f32 %v829_v48, 0.0  ;;  %v840_v4 = vadd.f32 %v2061_v3, %v2755_v29 }
 0x1f4   : > { %v831_v50 = vpop.f32.mrf.mxu0  ;;  %1442 = vmatpush1.bf16.msra.mxu1 %v1966_v39  ;;  %1515 = vmatpush1.bf16.msra.mxu0 %v1968_v46 }
 0x1f5   : > { %v832_v52 = vadd.f32 %v2755_v29, %v831_v50  ;;  %2062 = vmatprep.subr.bf16.mxu1 %v2752_v26  ;;  %v850_v57 = vmax.f32 %v840_v4, 0.0 }
 0x1f7   : > { %v848_v54 = vmax.f32 %v832_v52, 0.0  ;;  %v854_v60 = vpack.c.bf16 %v850_v57, %v849_v58 }
 0x1f9   : > { %v853_v56 = vpack.c.bf16 %v848_v54, %v847_v1 }
 0x1fb   : > { %1334 = vmatmul.mubr.bf16.gmra.mxu1 %v853_v56  ;;  %1407 = vmatmul.mubr.bf16.gmra.mxu0 %v853_v56 }
 0x1fc   : > { %1343 = vmatprep.mubr.bf16.mxu1 %v2355_v2  ;;  %1416 = vmatprep.mubr.bf16.mxu0 %v2355_v2 }
 0x203   : > { %1344 = vmatmul.mubr.bf16.gmra.mxu1 %v854_v60  ;;  %1417 = vmatmul.mubr.bf16.gmra.mxu0 %v854_v60 }
 0x204   : > { %1459 = vmatprep.mubr.bf16.mxu1 %v2355_v2  ;;  %1532 = vmatprep.mubr.bf16.mxu0 %v2355_v2 }
 0x20b   : > { %1460 = vmatmul.mubr.bf16.vlgmr.msra.gmra.mxu1 %v2772_v42  ;;  %1533 = vmatmul.mubr.bf16.vlgmr.msra.gmra.mxu0 %v2772_v42 }
 0x20c   : > { %2070 = vmatpush1.bf16.msra.mxu1 %v2750_v25  ;;  %1469 = vmatprep.mubr.bf16.mxu1 %v2355_v2 }
 0x20d   : > { %2063 = vmatprep.subr.bf16.mxu1 %v2774_v44  ;;  %1542 = vmatprep.mubr.bf16.mxu0 %v2355_v2 }
 0x210   : > { %2071 = vmatpush1.bf16.msra.mxu1 %v2794_v53 }
 0x211   : > { %2064 = vmatprep.subr.bf16.mxu1 %v2797_v55 }
 0x213   : > { %1470 = vmatmul.mubr.bf16.gmra.mxu1 %v2811_v59  ;;  %1543 = vmatmul.mubr.bf16.gmra.mxu0 %v2811_v59 }
 0x214   : > { %2072 = vmatpush1.bf16.msra.mxu1 %v2814_v61  ;;  %1479 = vmatprep.mubr.bf16.mxu1 %v2355_v2 }
 0x215   : > { %2065 = vmatprep.subr.bf16.mxu1 %v2817_v63  ;;  %1552 = vmatprep.mubr.bf16.mxu0 %v2355_v2 }
 0x218   : > { %2073 = vmatpush1.bf16.msra.mxu1 %v2836_v18 }
 0x219   : > { %2066 = vmatprep.subr.bf16.mxu1 %v2839_v24 }
 0x21b   : > { %1480 = vmatmul.mubr.bf16.gmra.mxu1 %v853_v56  ;;  %1553 = vmatmul.mubr.bf16.gmra.mxu0 %v853_v56 }
 0x21c   : > { %2074 = vmatpush1.bf16.msra.mxu1 %v2854_v14  ;;  %1489 = vmatprep.mubr.bf16.mxu1 %v2355_v2 }
 0x21d   : > { %2067 = vmatprep.subr.bf16.mxu1 %v2857_v16  ;;  %v935_v16 = vsub.s32 3, %v2588_v45 }
 0x220   : > { %2075 = vmatpush1.bf16.msra.mxu1 %v2872_v28  ;;  %v2941_v28 = vrot.slane %v2922_v13, %v2597_v51 }
 0x221   : > { %2068 = vmatprep.subr.bf16.mxu1 %v2875_v31  ;;  %v2948_v31 = vrot.slane %v2922_v13, %v935_v16 }
 0x223   : > { %1490 = vmatmul.mubr.bf16.gmra.mxu1 %v854_v60 }
 0x224   : > { %2076 = vmatpush1.bf16.msra.mxu1 %v1976_v37  ;;  %1562 = vmatprep.mubr.bf16.mxu1 %v2355_v2 }
 0x225   : > { %2069 = vmatprep.subr.bf16.mxu1 %v1969_v40 }
 0x228   : > { %2077 = vmatpush1.bf16.msra.mxu1 %v1968_v46 }
 0x22b   : > { %1563 = vmatmul.mubr.bf16.vlgmr.msra.gmra.mxu1 %v854_v60 }
 0x296   : > { %v1315_v25 = vpop.f32.mrf.mxu1  ;;  %v1388_v26 = vpop.f32.mrf.mxu0 }
 0x297   : > { %v1316_v34 = vadd.f32 %v1315_v25, %v2933_v22  ;;  %v1389_v40 = vadd.f32 %v1388_v26, %v2941_v28 }
 0x298   : > { %v1317_v29 = vpop.f32.mrf.mxu1  ;;  %v1390_v42 = vpop.f32.mrf.mxu0 }
 0x299   : > { %v1318_v41 = vadd.f32 %v1317_v29, %v2945_v30  ;;  %v1391_v43 = vadd.f32 %v1390_v42, %v2948_v31 }
 0x29a   : > { %v1319_v44 = vpop.f32.mrf.mxu1  ;;  %v1392_v53 = vpop.f32.mrf.mxu0 }
 0x29b   : > { %v1320_v32 = vadd.f32 %v1319_v44, %v2933_v22  ;;  %v1393_v35 = vadd.f32 %v1392_v53, %v2941_v28 }
 0x29c   : > { %v1321_v55 = vpop.f32.mrf.mxu1  ;;  %v1394_v59 = vpop.f32.mrf.mxu0 }
 0x29d   : > { %v1322_v51 = vadd.f32 %v1321_v55, %v2945_v30  ;;  %v1395_v36 = vadd.f32 %v1394_v59, %v2948_v31  ;;  %v1573_v39 = vmax.f32 %v1316_v34, %v1320_v32  ;;  %v1599_v54 = vmax.f32 %v1389_v40, %v1393_v35 }
 0x29e   : > { %v1325_v61 = vpop.f32.mrf.mxu1  ;;  %v1398_v62 = vpop.f32.mrf.mxu0 }
 0x29f   : > { %v1326_v47 = vadd.f32 %v1325_v61, %v2933_v22  ;;  %v1399_v46 = vadd.f32 %v1398_v62, %v2941_v28  ;;  %v1586_v4 = vmax.f32 %v1318_v41, %v1322_v51  ;;  %v1612_v56 = vmax.f32 %v1391_v43, %v1395_v36 }
 0x2a0   : > { %v1327_v63 = vpop.f32.mrf.mxu1  ;;  %v1400_v0 = vpop.f32.mrf.mxu0 }
 0x2a1   : > { %v1328_v3 = vadd.f32 %v1327_v63, %v2945_v30  ;;  %v1401_v48 = vadd.f32 %v1400_v0, %v2948_v31  ;;  %v1574_v17 = vmax.f32 %v1573_v39, %v1326_v47  ;;  %v1600_v42 = vmax.f32 %v1599_v54, %v1399_v46 }
 0x2a2   : > { %v1329_v5 = vpop.f32.mrf.mxu1  ;;  %v1402_v6 = vpop.f32.mrf.mxu0 }
 0x2a3   : > { %v1330_v50 = vadd.f32 %v1329_v5, %v2933_v22  ;;  %v1403_v57 = vadd.f32 %v1402_v6, %v2941_v28  ;;  %v1587_v44 = vmax.f32 %v1586_v4, %v1328_v3  ;;  %v1613_v53 = vmax.f32 %v1612_v56, %v1401_v48 }
 0x2a4   : > { %v1331_v7 = vpop.f32.mrf.mxu1  ;;  %v1404_v8 = vpop.f32.mrf.mxu0 }
 0x2a5   : > { %v1332_v58 = vadd.f32 %v1331_v7, %v2945_v30  ;;  %v1405_v60 = vadd.f32 %v1404_v8, %v2948_v31  ;;  %v1575_v55 = vmax.f32 %v1574_v17, %v1330_v50  ;;  %v1601_v6 = vmax.f32 %v1600_v42, %v1403_v57 }
 0x2a6   : > { %v951_v57 = vsub.s32 7, %v2588_v45 }
 0x2a7   : > { %v1588_v7 = vmax.f32 %v1587_v44, %v1332_v58  ;;  %v1614_v8 = vmax.f32 %v1613_v53, %v1405_v60 }
 0x2bb   : > { %v1335_v2 = vpop.f32.mrf.mxu1  ;;  %v1408_v18 = vpop.f32.mrf.mxu0 }
 0x2bc   : > { %v1336_v29 = vadd.f32 %v1335_v2, %v2933_v22  ;;  %v1409_v62 = vadd.f32 %v1408_v18, %v2941_v28  ;;  %v939_v2 = vsub.s32 4, %v2588_v45 }
 0x2bd   : > { %v1337_v20 = vpop.f32.mrf.mxu1  ;;  %v1410_v24 = vpop.f32.mrf.mxu0 }
 0x2be   : > { %v1338_v63 = vadd.f32 %v1337_v20, %v2945_v30  ;;  %v1411_v0 = vadd.f32 %v1410_v24, %v2948_v31  ;;  %v1576_v34 = vmax.f32 %v1575_v55, %v1336_v29  ;;  %v943_v24 = vsub.s32 5, %v2588_v45 }
 0x2bf   : > { %v1339_v9 = vpop.f32.mrf.mxu1  ;;  %v1412_v10 = vpop.f32.mrf.mxu0  ;;  %v1602_v47 = vmax.f32 %v1601_v6, %v1409_v62  ;;  %v3006_v54 = vrot.slane %v2922_v13, %v939_v2 }
 0x2c0   : > { %v1340_v5 = vadd.f32 %v1339_v9, %v2933_v22  ;;  %v1413_v35 = vadd.f32 %v1412_v10, %v2941_v28  ;;  %v1589_v40 = vmax.f32 %v1588_v7, %v1338_v63  ;;  %v1615_v41 = vmax.f32 %v1614_v8, %v1411_v0 }
 0x2c1   : > { %v1341_v11 = vpop.f32.mrf.mxu1  ;;  %v1414_v12 = vpop.f32.mrf.mxu0  ;;  %v3016_v17 = vrot.slane %v2922_v13, %v943_v24 }
 0x2c2   : > { %v1342_v51 = vadd.f32 %v1341_v11, %v2945_v30  ;;  %v1415_v18 = vadd.f32 %v1414_v12, %v2948_v31  ;;  %v1577_v43 = vmax.f32 %v1576_v34, %v1340_v5  ;;  %v1603_v3 = vmax.f32 %v1602_v47, %v1413_v35 }
 0x2c3   : > { %v1345_v14 = vpop.f32.mrf.mxu1  ;;  %v2924_v15 = vpop.f32.mrf.mxu0 }
 0x2c4   : > { %v1346_v20 = vadd.f32 %v1345_v14, %v2933_v22  ;;  %v1419_v39 = vadd.f32 %v2924_v15, %v2941_v28  ;;  %v1590_v48 = vmax.f32 %v1589_v40, %v1342_v51  ;;  %v1616_v50 = vmax.f32 %v1615_v41, %v1415_v18 }
 0x2c5   : > { %v2927_v19 = vpop.f32.mrf.mxu1  ;;  %v2929_v21 = vpop.f32.mrf.mxu0 }
 0x2c6   : > { %v1348_v10 = vadd.f32 %v2927_v19, %v2945_v30  ;;  %v1421_v11 = vadd.f32 %v2929_v21, %v2948_v31  ;;  %v1578_v4 = vmax.f32 %v1577_v43, %v1346_v20  ;;  %v1604_v60 = vmax.f32 %v1603_v3, %v1419_v39 }
 0x2c7   : > { %v2935_v23 = vpop.f32.mrf.mxu1  ;;  %v2937_v27 = vpop.f32.mrf.mxu0 }
 0x2c8   : > { %v1350_v12 = vadd.f32 %v2935_v23, %v2933_v22  ;;  %v1423_v15 = vadd.f32 %v2937_v27, %v2941_v28  ;;  %v947_v23 = vsub.s32 6, %v2588_v45  ;;  %v1591_v29 = vmax.f32 %v1590_v48, %v1348_v10 }
 0x2c9   : > { %v2951_v33 = vpop.f32.mrf.mxu1  ;;  %v2953_v49 = vpop.f32.mrf.mxu0  ;;  %v1617_v27 = vmax.f32 %v1616_v50, %v1421_v11 }
 0x2ca   : > { %v1352_v19 = vadd.f32 %v2951_v33, %v2945_v30  ;;  %v1425_v21 = vadd.f32 %v2953_v49, %v2948_v31  ;;  %v1579_v28 = vmax.f32 %v1578_v4, %v1350_v12  ;;  %v1605_v49 = vmax.f32 %v1604_v60, %v1423_v15 }
 0x2cb   : > { %v2960_v37 = vpop.f32.mrf.mxu1  ;;  %v2962_v38 = vpop.f32.mrf.mxu0 }
 0x2cc   : > { %v1462_v30 = vadd.f32 %v2960_v37, %v3006_v54  ;;  %v1592_v44 = vmax.f32 %v1591_v29, %v1352_v19  ;;  %v1618_v53 = vmax.f32 %v1617_v27, %v1425_v21  ;;  %v1580_v6 = vrot.slane %v1579_v28, 4 }
 0x2cd   : > { %v2971_v52 = vpop.f32.mrf.mxu1  ;;  %v2973_v1 = vpop.f32.mrf.mxu0  ;;  %v3029_v37 = vrot.slane %v2922_v13, %v947_v23 }
 0x2ce   : > { %v1593_v35 = vrot.slane %v1592_v44, 4  ;;  %v1619_v51 = vrot.slane %v1618_v53, 4  ;;  %v1581_v29 = vmax.f32 %v1579_v28, %v1580_v6 }
 0x2cf   : > { %v1465_v25 = vpop.f32.mrf.mxu1  ;;  %v2978_v26 = vpop.f32.mrf.mxu0  ;;  %v1535_v41 = vadd.f32 %v2962_v38, %v3029_v37 }
 0x2d0   : > { %v1466_v58 = vadd.f32 %v1465_v25, %v3006_v54  ;;  %v1464_v25 = vadd.f32 %v2971_v52, %v3016_v17  ;;  %v1606_v52 = vrot.slane %v1605_v49, 4  ;;  %v1539_v18 = vadd.f32 %v2978_v26, %v3029_v37 }
 0x2d1   : > { %v1467_v59 = vpop.f32.mrf.mxu1  ;;  %v2981_v61 = vpop.f32.mrf.mxu0  ;;  %v1594_v48 = vmax.f32 %v1592_v44, %v1593_v35 }
 0x2d2   : > { %v1468_v31 = vadd.f32 %v1467_v59, %v3016_v17  ;;  %v1625_v63 = vmax.f32 %v1462_v30, %v1466_v58  ;;  %v3032_v59 = vrot.slane %v2922_v13, %v951_v57  ;;  %v1651_v50 = vmax.f32 %v1535_v41, %v1539_v18 }
 0x2d3   : > { %v1471_v16 = vpop.f32.mrf.mxu1  ;;  %v2988_v32 = vpop.f32.mrf.mxu0 }
 0x2d4   : > { %v1472_v33 = vadd.f32 %v1471_v16, %v3006_v54  ;;  %v1638_v8 = vmax.f32 %v1464_v25, %v1468_v31  ;;  %v1537_v43 = vadd.f32 %v2973_v1, %v3032_v59  ;;  %v1541_v39 = vadd.f32 %v2981_v61, %v3032_v59 }
 0x2d5   : > { %v1473_v9 = vpop.f32.mrf.mxu1  ;;  %v2995_v36 = vpop.f32.mrf.mxu0  ;;  %v1545_v26 = vadd.f32 %v2988_v32, %v3029_v37  ;;  %v1620_v61 = vmax.f32 %v1618_v53, %v1619_v51 }
 0x2d6   : > { %v1474_v0 = vadd.f32 %v1473_v9, %v3016_v17  ;;  %v1626_v2 = vmax.f32 %v1625_v63, %v1472_v33  ;;  %v1547_v38 = vadd.f32 %v2995_v36, %v3032_v59 }
 0x2d7   : > { %v1475_v14 = vpop.f32.mrf.mxu1  ;;  %v1548_v46 = vpop.f32.mrf.mxu0  ;;  %v1652_v23 = vmax.f32 %v1651_v50, %v1545_v26 }
 0x2d8   : > { %v1476_v5 = vadd.f32 %v1475_v14, %v3006_v54  ;;  %v1639_v9 = vmax.f32 %v1638_v8, %v1474_v0  ;;  %v1549_v1 = vadd.f32 %v1548_v46, %v3029_v37  ;;  %v1607_v46 = vmax.f32 %v1605_v49, %v1606_v52 }
 0x2d9   : > { %v1477_v56 = vpop.f32.mrf.mxu1  ;;  %v1550_v22 = vpop.f32.mrf.mxu0  ;;  %v1621_v0 = vrot.slane %v1620_v61, 2 }
 0x2da   : > { %v1478_v16 = vadd.f32 %v1477_v56, %v3016_v17  ;;  %v1627_v47 = vmax.f32 %v1626_v2, %v1476_v5  ;;  %v1664_v56 = vmax.f32 %v1537_v43, %v1541_v39  ;;  %v1551_v57 = vadd.f32 %v1550_v22, %v3032_v59 }
 0x2db   : > { %v1481_v42 = vpop.f32.mrf.mxu1  ;;  %v1554_v55 = vpop.f32.mrf.mxu0  ;;  %v1653_v31 = vmax.f32 %v1652_v23, %v1549_v1  ;;  %v1582_v2 = vrot.slane %v1581_v29, 2 }
 0x2dc   : > { %v1482_v34 = vadd.f32 %v1481_v42, %v3006_v54  ;;  %v1640_v11 = vmax.f32 %v1639_v9, %v1478_v16  ;;  %v1555_v58 = vadd.f32 %v1554_v55, %v3029_v37  ;;  %v1665_v30 = vmax.f32 %v1664_v56, %v1547_v38 }
 0x2dd   : > { %v1483_v62 = vpop.f32.mrf.mxu1  ;;  %v1556_v20 = vpop.f32.mrf.mxu0  ;;  %v1595_v55 = vrot.slane %v1594_v48, 2  ;;  %v1608_v16 = vrot.slane %v1607_v46, 2  ;;  %v1583_v43 = vmax.f32 %v1581_v29, %v1582_v2  ;;  %v2356_v38 = vmov 1966171168  }
 0x2de   : > { %v1484_v13 = vadd.f32 %v1483_v62, %v3016_v17  ;;  %v1628_v12 = vmax.f32 %v1627_v47, %v1482_v34  ;;  %v1557_v33 = vadd.f32 %v1556_v20, %v3032_v59  ;;  %v1666_v28 = vmax.f32 %v1665_v30, %v1551_v57 }
 0x2df   : > { %v1485_v7 = vpop.f32.mrf.mxu1  ;;  %v1558_v4 = vpop.f32.mrf.mxu0  ;;  %v1654_v5 = vmax.f32 %v1653_v31, %v1555_v58  ;;  %v1596_v20 = vmax.f32 %v1594_v48, %v1595_v55  ;;  %v1609_v39 = vmax.f32 %v1607_v46, %v1608_v16  ;;  %v1696_v1 = vunpack.c.l.s4 %v2356_v38 }
 0x2e0   : > { %v1486_v40 = vadd.f32 %v1485_v7, %v3006_v54  ;;  %v1641_v19 = vmax.f32 %v1640_v11, %v1484_v13  ;;  %v1559_v62 = vadd.f32 %v1558_v4, %v3029_v37  ;;  %v1667_v34 = vmax.f32 %v1666_v28, %v1557_v33 }
 0x2e1   : > { %v1487_v24 = vpop.f32.mrf.mxu1  ;;  %v1560_v44 = vpop.f32.mrf.mxu0  ;;  %v1597_v50 = vrot.slane %v1596_v20, 1  ;;  %v1697_v57 = vunpack.c.0.s8 %v1696_v1 }
 0x2e2   : > { %v1488_v14 = vadd.f32 %v1487_v24, %v3016_v17  ;;  %v1629_v21 = vmax.f32 %v1628_v12, %v1486_v40  ;;  %v1655_v35 = vmax.f32 %v1654_v5, %v1559_v62  ;;  %v1622_v24 = vmax.f32 %v1620_v61, %v1621_v0 }
 0x2e3   : > { %v1491_v10 = vpop.f32.mrf.mxu1  ;;  %v1598_v23 = vmax.f32 %v1596_v20, %v1597_v50  ;;  %v1700_v33 = vsub.s32 %v1697_v57, %v2588_v45 }
 0x2e4   : > { %v1492_v3 = vadd.f32 %v1491_v10, %v3006_v54  ;;  %v1642_v27 = vmax.f32 %v1641_v19, %v1488_v14  ;;  %v1623_v48 = vrot.slane %v1622_v24, 1  ;;  %v1584_v19 = vrot.slane %v1583_v43, 1 }
 0x2e5   : > { %v1493_v15 = vpop.f32.mrf.mxu1 }
 0x2e6   : > { %v1494_v32 = vadd.f32 %v1493_v15, %v3016_v17  ;;  %v1630_v42 = vmax.f32 %v1629_v21, %v1492_v3  ;;  %v1610_v21 = vrot.slane %v1609_v39, 1  ;;  %v1624_v58 = vmax.f32 %v1622_v24, %v1623_v48 }
 0x2e7   : > { %v1495_v60 = vpop.f32.mrf.mxu1 }
 0x2e8   : > { %v1496_v36 = vadd.f32 %v1495_v60, %v3006_v54  ;;  %v1643_v25 = vmax.f32 %v1642_v27, %v1494_v32  ;;  %v1561_v54 = vadd.f32 %v1560_v44, %v3032_v59 }
 0x2e9   : > { %v1497_v53 = vpop.f32.mrf.mxu1 }
 0x2ea   : > { %v1631_v63 = vmax.f32 %v1630_v42, %v1496_v36  ;;  %v1498_v22 = vadd.f32 %v1497_v53, %v3016_v17  ;;  %v1668_v47 = vmax.f32 %v1667_v34, %v1561_v54  ;;  %v1585_v42 = vmax.f32 %v1583_v43, %v1584_v19 }
 0x2eb   : > { %v1564_v6 = vpop.f32.mrf.mxu1 }
 0x2ec   : > { %v1632_v49 = vrot.slane %v1631_v63, 4  ;;  %v1644_v7 = vmax.f32 %v1643_v25, %v1498_v22  ;;  %v1565_v8 = vadd.f32 %v1564_v6, %v3029_v37  ;;  %v1691_v31 = vcombine.low %v1585_v42, %v1598_v23 }
 0x2ed   : > { %v1566_v52 = vpop.f32.mrf.mxu1 }
 0x2ee   : > { %v1633_v51 = vmax.f32 %v1631_v63, %v1632_v49  ;;  %v1645_v18 = vrot.slane %v1644_v7, 4  ;;  %v1567_v17 = vadd.f32 %v1566_v52, %v3032_v59  ;;  %v1656_v40 = vmax.f32 %v1655_v35, %v1565_v8 }
 0x2ef   : > { %v1568_v9 = vpop.f32.mrf.mxu1  ;;  %v1701_v55 = vrot.slane %v1691_v31, %v1700_v33 }
 0x2f0   : > { %v1646_v13 = vmax.f32 %v1644_v7, %v1645_v18  ;;  %v1569_v41 = vadd.f32 %v1568_v9, %v3029_v37  ;;  %v1634_v26 = vrot.slane %v1633_v51, 2  ;;  %v1669_v12 = vmax.f32 %v1668_v47, %v1567_v17 }
 0x2f1   : > { %v1570_v10 = vpop.f32.mrf.mxu1 }
 0x2f2   : > { %v1647_v11 = vrot.slane %v1646_v13, 2  ;;  %v1657_v14 = vmax.f32 %v1656_v40, %v1569_v41  ;;  %v1571_v3 = vadd.f32 %v1570_v10, %v3032_v59  ;;  %v1635_v32 = vmax.f32 %v1633_v51, %v1634_v26 }
 0x2f3   : > { %v1611_v59 = vmax.f32 %v1609_v39, %v1610_v21 }
 0x2f4   : > { %v1648_v4 = vmax.f32 %v1646_v13, %v1647_v11  ;;  %v1658_v15 = vrot.slane %v1657_v14, 4  ;;  %v1670_v61 = vmax.f32 %v1669_v12, %v1571_v3  ;;  %v1636_v36 = vrot.slane %v1635_v32, 1 }
 0x2f5   : > { %v1692_v44 = vcombine.low %v1611_v59, %v1624_v58 }
 0x2f6   : > { %v1659_v37 = vmax.f32 %v1657_v14, %v1658_v15  ;;  %v1671_v56 = vrot.slane %v1670_v61, 4  ;;  %v1649_v60 = vrot.slane %v1648_v4, 1  ;;  %v1637_v63 = vmax.f32 %v1635_v32, %v1636_v36 }
 0x2f7   : > { %v1708_v0 = vrot.slane %v1692_v44, %v1700_v33 }
 0x2f8   : > { %v1660_v29 = vrot.slane %v1659_v37, 2  ;;  %v1672_v27 = vmax.f32 %v1670_v61, %v1671_v56  ;;  %v1650_v53 = vmax.f32 %v1648_v4, %v1649_v60 }
 0x2f9   : > { %v1723_v49 = vcombine.low %v1701_v55, %v1708_v0 }
 0x2fa   : > { %v1661_v46 = vmax.f32 %v1659_v37, %v1660_v29  ;;  %v1673_v30 = vrot.slane %v1672_v27, 2  ;;  %v1693_v28 = vcombine.low %v1637_v63, %v1650_v53 }
 0x2fb   : > { %v1731_v16 = vrot.slane %v1723_v49, %v1700_v33 }
 0x2fc   : > { %v1662_v62 = vrot.slane %v1661_v46, 1  ;;  %v1674_v25 = vmax.f32 %v1672_v27, %v1673_v30  ;;  %v1715_v7 = vrot.slane %v1693_v28, %v1700_v33 }
 0x2fe   : > { %v1675_v22 = vrot.slane %v1674_v25, 1  ;;  %v1663_v5 = vmax.f32 %v1661_v46, %v1662_v62 }
 0x300   : > { %v1676_v6 = vmax.f32 %v1674_v25, %v1675_v22 }
 0x302   : > { %v1694_v54 = vcombine.low %v1663_v5, %v1676_v6 }
 0x304   : > { %v1722_v8 = vrot.slane %v1694_v54, %v1700_v33 }
 0x306   : > { %v1724_v2 = vcombine.low %v1715_v7, %v1722_v8 }
 0x308   : > { %v1738_v45 = vrot.slane %v1724_v2, %v1700_v33 }
 0x30a   : > { %v1739_v34 = vcombine.low %v1731_v16, %v1738_v45 }
 0x30c   : > { %v1741_v52 = vmax.f32 %v1739_v34, -1e+30 }
 0x30e   : > { %1742 = vst [vmem:[%s464_s26] sm:$0xff] %v1741_v52 }
 0x30f PF: > { %s23_s11 = sadd.s32 1, %s2344_s11   ;;  %s3100_s30 = smov %s2340_s10 }
 0x310   : > { %p20_p7 = scmp.ge.s32.totalorder %s23_s11, 4   ;;  %s3101_s10 = smov %s3103_s20 }
 0x312   :  { %22 = sbr.rel (!%p20_p7) target bundleno = 4 (0x4), region = 122 }
 0x317   :  { %1787 = vsyncpa [#allocation3], 1 }
 0x318   :  { %1789 = vsyncpa [#allocation3 + $0x1], 1 }
 0x319   :  { %1790 = vsyncpa [#allocation5], 1 }
 0x31a   :  { %1791 = vsyncpa [#allocation8], 1 }

// kernel: pointnet_densecls_forward.5
= control target key start
LH: loop header
LB: loop body
LE: loop exit
PB: predicated region body
PF: predicated region fallthrough
CT: control target
= control target key end

     0   :  { %12 = vsyncpa [#allocation3], 0  ;;  %s3881_s0 = inlined_call_operand.vmem [shape: f32[2,1024], index: 0, kind: input, shape index: {}]   ;;  %s3882_s1 = inlined_call_operand.hbm [shape: bf16[1024,512], index: 1, kind: input, shape index: {}]   ;;  %s3883_s2 = inlined_call_operand.hbm [shape: f32[1,512], index: 2, kind: input, shape index: {}]   ;;  %s3884_s3 = inlined_call_operand.hbm [shape: bf16[512,256], index: 3, kind: input, shape index: {}]   ;;  %s3885_s4 = inlined_call_operand.hbm [shape: f32[1,256], index: 4, kind: input, shape index: {}]   ;;  %s3886_s5 = inlined_call_operand.vmem [shape: bf16[256,9], index: 5, kind: input, shape index: {}]   ;;  %s3887_s6 = inlined_call_operand.hbm [shape: f32[1,9], index: 6, kind: input, shape index: {}]   ;;  %s3888_s7 = inlined_call_operand.vmem [shape: f32[2,9], index: 7, kind: output, shape index: {}]  }
   0x1   :  { %13 = vsyncpa [#allocation5], 0 }
   0x2   :  { %14 = vsyncpa [#allocation8], 0  ;;  %s3676_s24 = smov [#allocation4]   ;;  %s3677_s26 = smov [#allocation7]  }
   0x3   :  { %s35_s25 = sshll.u32 %s3676_s24, 4  ;;  %s57_s27 = sshll.u32 %s3677_s26, 4  ;;  %s36_s25 = int_to_ptr.vmem [resolvable:$true] %s35_s25  ;;  %s58_s27 = int_to_ptr.vmem [resolvable:$true] %s57_s27 }
   0x4   :  { %s3578_s28 = scalar_lea.vmem %s36_s25, 64  ;;  %p3583_p1 = scmp.lt.s32.totalorder %s36_s25, %s36_s25 }
   0x5   :  { %p3579_p0 = scmp.ne.s32.totalorder %s36_s25, %s3578_s28  ;;  %p3584_p2 = scmp.lt.s32.totalorder %s3578_s28, %s3578_s28 }
   0x7   :  { %p3585_p3 = por %p3584_p2, %p3583_p1 }
   0x9   :  { %p3586_p4 = pnand %p3585_p3, %p3579_p0 }
   0xb   :  { %3589 = shalt.err (!%p3586_p4)
}
   0xc   :  { %38 = dma.hbm_to_vmem [thread:$0]  %s3883_s2, 64, %s36_s25, [#allocation5]  }
   0xd   :  { %s3598_s8 = scalar_lea.vmem %s58_s27, 32  ;;  %p3603_p6 = scmp.lt.s32.totalorder %s58_s27, %s58_s27 }
   0xe   :  { %p3599_p5 = scmp.ne.s32.totalorder %s58_s27, %s3598_s8  ;;  %p3604_p7 = scmp.lt.s32.totalorder %s3598_s8, %s3598_s8 }
  0x10   :  { %p3605_p8 = por %p3604_p7, %p3603_p6 }
  0x12   :  { %p3606_p9 = pnand %p3605_p8, %p3599_p5 }
  0x14   :  { %3609 = shalt.err (!%p3606_p9)
}
  0x15   :  { %60 = dma.hbm_to_vmem [thread:$0]  %s3885_s4, 32, %s58_s27, [#allocation8]  }
  0x16   :  { %s3678_s11 = smov [#allocation2]  }
  0x17   :  { %s22_s12 = sshll.u32 %s3678_s11, 4  ;;  %s23_s12 = int_to_ptr.vmem [resolvable:$true] %s22_s12 }
  0x18   :  { %s3618_s13 = scalar_lea.vmem %s23_s12, 32768  ;;  %p3623_p11 = scmp.lt.s32.totalorder %s23_s12, %s23_s12 }
  0x19   :  { %p3619_p10 = scmp.ne.s32.totalorder %s23_s12, %s3618_s13  ;;  %p3624_p12 = scmp.lt.s32.totalorder %s3618_s13, %s3618_s13 }
  0x1b   :  { %p3625_p13 = por %p3624_p12, %p3623_p11 }
  0x1d   :  { %p3626_p0 = pnand %p3625_p13, %p3619_p10 }
  0x1f   :  { %3629 = shalt.err (!%p3626_p0)
}
  0x20   :  { %s3679_s2 = smov 256   ;;  %s3680_s14 = smov 16  }
  0x21   :  { %28 = dma.hbm_to_vmem [thread:$0]  %s3882_s1, 32768, %s23_s12, [#allocation3], %s3679_s2, %s3679_s2, %s3680_s14  }
  0x22   :  { %s3681_s17 = smov [#allocation6]  }
  0x23   :  { %s44_s18 = sshll.u32 %s3681_s17, 4  ;;  %s45_s18 = int_to_ptr.vmem [resolvable:$true] %s44_s18 }
  0x24   :  { %s3638_s4 = scalar_lea.vmem %s45_s18, 8192  ;;  %p3643_p2 = scmp.lt.s32.totalorder %s45_s18, %s45_s18 }
  0x25   :  { %p3639_p1 = scmp.ne.s32.totalorder %s45_s18, %s3638_s4  ;;  %p3644_p3 = scmp.lt.s32.totalorder %s3638_s4, %s3638_s4 }
  0x27   :  { %p3645_p4 = por %p3644_p3, %p3643_p2 }
  0x29   :  { %p3646_p5 = pnand %p3645_p4, %p3639_p1 }
  0x2b   :  { %3649 = shalt.err (!%p3646_p5)
}
  0x2c   :  { %s3682_s19 = smov 128   ;;  %s3683_s20 = smov 8  }
  0x2d   :  { %50 = dma.hbm_to_vmem [thread:$0]  %s3884_s3, 8192, %s45_s18, [#allocation5], %s3682_s19, %s3682_s19, %s3683_s20  }
  0x2e   :  { %s3684_s23 = smov [#allocation9]  }
  0x2f   :  { %s69_s24 = sshll.u32 %s3684_s23, 4  ;;  %s70_s24 = int_to_ptr.vmem [resolvable:$true] %s69_s24 }
  0x30   :  { %s3658_s1 = scalar_lea.vmem %s70_s24, 16  ;;  %s3662_s25 = scalar_lea.vmem %s70_s24, 32 }
  0x31   :  { %p3659_p6 = scmp.ne.s32.totalorder %s70_s24, %s3658_s1  ;;  %p3663_p7 = scmp.lt.s32.totalorder %s70_s24, %s70_s24 }
  0x32   :  { %p3664_p8 = scmp.lt.s32.totalorder %s3662_s25, %s3658_s1 }
  0x34   :  { %p3665_p9 = por %p3664_p8, %p3663_p7 }
  0x36   :  { %p3666_p10 = pnand %p3665_p9, %p3659_p6 }
  0x38   :  { %3669 = shalt.err (!%p3666_p10)
}
  0x39   :  { %72 = dma.hbm_to_vmem [thread:$0]  %s3887_s6, 16, %s70_s24, [#allocation8]  }
  0x3a   :  { %3670 = dma.done.wait [#allocation3], 32768  }
  0x3b   :  { %3671 = vsyncadd [#allocation3], 4294934528 }
  0x3c   :  { %3672 = dma.done.wait [#allocation5], 8256  }
  0x3d   :  { %3673 = vsyncadd [#allocation5], 4294959040 }
  0x3e   :  { %3674 = dma.done.wait [#allocation8], 48  }
  0x3f   :  { %3675 = vsyncadd [#allocation8], 4294967248  ;;  %v3072_v0 = vld [vmem:[#allocation2 + $0xe4] ss:$16 sps:$4 sm:$0xff]   ;;  %v3076_v2 = vld [vmem:[#allocation2 + $0xe0] ss:$16 sps:$4 sm:$0xff]   ;;  %v97_v38 = vlaneseq }
  0x40   :  { %v3074_v1 = vld [vmem:[#allocation2 + $0x2e4] ss:$16 sps:$4 sm:$0xff]   ;;  %1701 = vmatprep.subr.bf16.mxu0 %v3072_v0  ;;  %v3077_v3 = vld [vmem:[#allocation2 + $0x2e0] ss:$16 sps:$4 sm:$0xff]   ;;  %v3685_v36 = vmov 1983009808  }
  0x41   :  { %1742 = vmatprep.subr.bf16.mxu1 %v3074_v1  ;;  %v3078_v4 = vld [vmem:[#allocation2 + $0xc4] ss:$16 sps:$4 sm:$0xff]   ;;  %1702 = vmatpush1.bf16.msra.mxu0 %v3076_v2  ;;  %v3082_v6 = vld [vmem:[#allocation2 + $0xc0] ss:$16 sps:$4 sm:$0xff]   ;;  %v95_v37 = vunpack.c.l.s4 %v3685_v36  ;;  %v3741_v43 = vshrl.u32 %v97_v38, 7  ;;  %vm2694_vm0 = vcmask 66560  }
  0x42   :  { %1743 = vmatpush1.bf16.msra.mxu1 %v3077_v3  ;;  %v3080_v5 = vld [vmem:[#allocation2 + $0x2c4] ss:$16 sps:$4 sm:$0xff]   ;;  %1703 = vmatprep.subr.bf16.mxu0 %v3078_v4  ;;  %v3083_v7 = vld [vmem:[#allocation2 + $0x2c0] ss:$16 sps:$4 sm:$0xff]  }
  0x43   :  { %1744 = vmatprep.subr.bf16.mxu1 %v3080_v5  ;;  %v3084_v8 = vld [vmem:[#allocation2 + $0xa4] ss:$16 sps:$4 sm:$0xff]   ;;  %v3088_v10 = vld [vmem:[#allocation2 + $0xa0] ss:$16 sps:$4 sm:$0xff]   ;;  %v96_v42 = vunpack.c.0.s8 %v95_v37 }
  0x44   :  { %v3086_v9 = vld [vmem:[#allocation2 + $0x2a4] ss:$16 sps:$4 sm:$0xff]   ;;  %v3089_v11 = vld [vmem:[#allocation2 + $0x2a0] ss:$16 sps:$4 sm:$0xff]  }
  0x45   :  { %1704 = vmatpush1.bf16.msra.mxu0 %v3082_v6  ;;  %v3090_v12 = vld [vmem:[#allocation2 + $0x84] ss:$16 sps:$4 sm:$0xff]   ;;  %v3094_v14 = vld [vmem:[#allocation2 + $0x80] ss:$16 sps:$4 sm:$0xff]   ;;  %v3744_v49 = vsub.s32 %v96_v42, %v3741_v43  ;;  %v90_v42 = vld [vmem:[%s3881_s0 + $0x8] sm:$0xff] }
  0x46   :  { %1745 = vmatpush1.bf16.msra.mxu1 %v3083_v7  ;;  %1705 = vmatprep.subr.bf16.mxu0 %v3084_v8  ;;  %v3092_v13 = vld [vmem:[#allocation2 + $0x284] ss:$16 sps:$4 sm:$0xff]   ;;  %v3095_v15 = vld [vmem:[#allocation2 + $0x280] ss:$16 sps:$4 sm:$0xff]  }
  0x47   :  { %1746 = vmatprep.subr.bf16.mxu1 %v3086_v9  ;;  %v3096_v16 = vld [vmem:[#allocation2 + $0x64] ss:$16 sps:$4 sm:$0xff]   ;;  %v3100_v18 = vld [vmem:[#allocation2 + $0x60] ss:$16 sps:$4 sm:$0xff]  }
  0x48   :  { %v3098_v17 = vld [vmem:[#allocation2 + $0x264] ss:$16 sps:$4 sm:$0xff]   ;;  %v3101_v19 = vld [vmem:[#allocation2 + $0x260] ss:$16 sps:$4 sm:$0xff]  }
  0x49   :  { %1706 = vmatpush1.bf16.msra.mxu0 %v3088_v10  ;;  %v3102_v20 = vld [vmem:[#allocation2 + $0x44] ss:$16 sps:$4 sm:$0xff]   ;;  %v3106_v22 = vld [vmem:[#allocation2 + $0x40] ss:$16 sps:$4 sm:$0xff]  }
  0x4a   :  { %1747 = vmatpush1.bf16.msra.mxu1 %v3089_v11  ;;  %1707 = vmatprep.subr.bf16.mxu0 %v3090_v12  ;;  %v3104_v21 = vld [vmem:[#allocation2 + $0x244] ss:$16 sps:$4 sm:$0xff]   ;;  %v3107_v23 = vld [vmem:[#allocation2 + $0x240] ss:$16 sps:$4 sm:$0xff]  }
  0x4b   :  { %1748 = vmatprep.subr.bf16.mxu1 %v3092_v13  ;;  %v3108_v24 = vld [vmem:[#allocation2 + $0x24] ss:$16 sps:$4 sm:$0xff]   ;;  %v3112_v26 = vld [vmem:[#allocation2 + $0x20] ss:$16 sps:$4 sm:$0xff]  }
  0x4c   :  { %v3110_v25 = vld [vmem:[#allocation2 + $0x224] ss:$16 sps:$4 sm:$0xff]   ;;  %v3113_v27 = vld [vmem:[#allocation2 + $0x220] ss:$16 sps:$4 sm:$0xff]  }
  0x4d   :  { %1708 = vmatpush1.bf16.msra.mxu0 %v3094_v14  ;;  %v3114_v28 = vld [vmem:[#allocation2 + $0x4] ss:$16 sps:$4 sm:$0xff]   ;;  %v3118_v30 = vld [vmem:[#allocation2] ss:$16 sps:$4 sm:$0xff]  }
  0x4e   :  { %1749 = vmatpush1.bf16.msra.mxu1 %v3095_v15  ;;  %1709 = vmatprep.subr.bf16.mxu0 %v3096_v16  ;;  %v3116_v29 = vld [vmem:[#allocation2 + $0x204] ss:$16 sps:$4 sm:$0xff]   ;;  %v3119_v31 = vld [vmem:[#allocation2 + $0x200] ss:$16 sps:$4 sm:$0xff]  }
  0x4f   :  { %1750 = vmatprep.subr.bf16.mxu1 %v3098_v17  ;;  %v3120_v32 = vld [vmem:[#allocation2 + $0x1e4] ss:$16 sps:$4 sm:$0xff]   ;;  %v3124_v34 = vld [vmem:[#allocation2 + $0x1e0] ss:$16 sps:$4 sm:$0xff]  }
  0x50   :  { %v3122_v33 = vld [vmem:[#allocation2 + $0x3e4] ss:$16 sps:$4 sm:$0xff]   ;;  %v3125_v35 = vld [vmem:[#allocation2 + $0x3e0] ss:$16 sps:$4 sm:$0xff]  }
  0x51   :  { %1710 = vmatpush1.bf16.msra.mxu0 %v3100_v18  ;;  %v3126_v39 = vld [vmem:[#allocation2 + $0x1c4] ss:$16 sps:$4 sm:$0xff]   ;;  %v3130_v41 = vld [vmem:[#allocation2 + $0x1c0] ss:$16 sps:$4 sm:$0xff]  }
  0x52   :  { %1751 = vmatpush1.bf16.msra.mxu1 %v3101_v19  ;;  %1711 = vmatprep.subr.bf16.mxu0 %v3102_v20  ;;  %v3128_v40 = vld [vmem:[#allocation2 + $0x3c4] ss:$16 sps:$4 sm:$0xff]   ;;  %v3131_v44 = vld [vmem:[#allocation2 + $0x3c0] ss:$16 sps:$4 sm:$0xff]  }
  0x53   :  { %1752 = vmatprep.subr.bf16.mxu1 %v3104_v21  ;;  %v3132_v45 = vld [vmem:[#allocation2 + $0x1a4] ss:$16 sps:$4 sm:$0xff]   ;;  %v3136_v47 = vld [vmem:[#allocation2 + $0x1a0] ss:$16 sps:$4 sm:$0xff]  }
  0x54   :  { %v3134_v46 = vld [vmem:[#allocation2 + $0x3a4] ss:$16 sps:$4 sm:$0xff]   ;;  %v3137_v48 = vld [vmem:[#allocation2 + $0x3a0] ss:$16 sps:$4 sm:$0xff]  }
  0x55   :  { %1712 = vmatpush1.bf16.msra.mxu0 %v3106_v22  ;;  %v3138_v50 = vld [vmem:[#allocation2 + $0x184] ss:$16 sps:$4 sm:$0xff]   ;;  %v3142_v53 = vld [vmem:[#allocation2 + $0x180] ss:$16 sps:$4 sm:$0xff]  }
  0x56   :  { %1753 = vmatpush1.bf16.msra.mxu1 %v3107_v23  ;;  %1713 = vmatprep.subr.bf16.mxu0 %v3108_v24  ;;  %v3140_v51 = vld [vmem:[#allocation2 + $0x384] ss:$16 sps:$4 sm:$0xff]   ;;  %v3143_v56 = vld [vmem:[#allocation2 + $0x380] ss:$16 sps:$4 sm:$0xff]  }
  0x57   :  { %1754 = vmatprep.subr.bf16.mxu1 %v3110_v25  ;;  %v89_v52 = vld [vmem:[%s3881_s0] sm:$0xff] }
  0x58   :  { %v100_v54 = vrot.slane %v89_v52, %v3744_v49  ;;  %v93_v55 = vcombine.high %v89_v52, %v89_v52  ;;  %v3144_v57 = vld [vmem:[#allocation2 + $0x164] ss:$16 sps:$4 sm:$0xff]   ;;  %v3148_v61 = vld [vmem:[#allocation2 + $0x160] ss:$16 sps:$4 sm:$0xff]  }
  0x59   :  { %1714 = vmatpush1.bf16.msra.mxu0 %v3112_v26  ;;  %v3146_v58 = vld [vmem:[#allocation2 + $0x364] ss:$16 sps:$4 sm:$0xff]   ;;  %v3149_v0 = vld [vmem:[#allocation2 + $0x360] ss:$16 sps:$4 sm:$0xff]  }
  0x5a   :  { %1755 = vmatpush1.bf16.msra.mxu1 %v3113_v27  ;;  %1715 = vmatprep.subr.bf16.mxu0 %v3114_v28  ;;  %v108_v59 = vcombine.high %v100_v54, %v100_v54  ;;  %v107_v60 = vrot.slane %v93_v55, %v3744_v49  ;;  %v3150_v1 = vld [vmem:[#allocation2 + $0x144] ss:$16 sps:$4 sm:$0xff]   ;;  %v3154_v4 = vld [vmem:[#allocation2 + $0x140] ss:$16 sps:$4 sm:$0xff]   ;;  %v3757_v16 = vpack.c.bf16 %v100_v54, %v100_v54 }
  0x5b   :  { %1756 = vmatprep.subr.bf16.mxu1 %v3116_v29  ;;  %v3152_v2 = vld [vmem:[#allocation2 + $0x344] ss:$16 sps:$4 sm:$0xff]   ;;  %v3155_v5 = vld [vmem:[#allocation2 + $0x340] ss:$16 sps:$4 sm:$0xff]  }
  0x5c   :  { %v3751_v62 = vpack.c.bf16 %v108_v59, %v108_v59  ;;  %v109_v63 = vcombine.high %v107_v60, %v107_v60  ;;  %v3156_v6 = vld [vmem:[#allocation2 + $0x124] ss:$16 sps:$4 sm:$0xff]   ;;  %v3160_v8 = vld [vmem:[#allocation2 + $0x120] ss:$16 sps:$4 sm:$0xff]   ;;  %v3759_v17 = vpack.c.bf16 %v107_v60, %v107_v60 }
  0x5d   :  { %1716 = vmatpush1.bf16.msra.mxu0 %v3118_v30  ;;  %v3158_v7 = vld [vmem:[#allocation2 + $0x324] ss:$16 sps:$4 sm:$0xff]   ;;  %v3161_v9 = vld [vmem:[#allocation2 + $0x320] ss:$16 sps:$4 sm:$0xff]  }
  0x5e   :  { %1757 = vmatpush1.bf16.msra.mxu1 %v3119_v31  ;;  %1717 = vmatprep.subr.bf16.mxu0 %v3120_v32  ;;  %v3753_v3 = vpack.c.bf16 %v109_v63, %v109_v63  ;;  %v3162_v10 = vld [vmem:[#allocation2 + $0x104] ss:$16 sps:$4 sm:$0xff]   ;;  %v3166_v12 = vld [vmem:[#allocation2 + $0x100] ss:$16 sps:$4 sm:$0xff]  }
  0x5f   :  { %1758 = vmatprep.subr.bf16.mxu1 %v3122_v33  ;;  %1733 = vmatprep.mubr.bf16.mxu0 %v3751_v62  ;;  %v3164_v11 = vld [vmem:[#allocation2 + $0x304] ss:$16 sps:$4 sm:$0xff]   ;;  %v3167_v13 = vld [vmem:[#allocation2 + $0x300] ss:$16 sps:$4 sm:$0xff]  }
  0x60   :  { %1774 = vmatprep.mubr.bf16.mxu1 %v3753_v3  ;;  %v3171_v14 = vld [vmem:[#allocation2 + $0x4e4] ss:$16 sps:$4 sm:$0xff]   ;;  %v3169_v18 = vld [vmem:[#allocation2 + $0x4e0] ss:$16 sps:$4 sm:$0xff]  }
  0x61   :  { %1718 = vmatpush2.bf16.msra.mxu0 %v3124_v34  ;;  %v3174_v15 = vld [vmem:[#allocation2 + $0x6e4] ss:$16 sps:$4 sm:$0xff]   ;;  %v3172_v19 = vld [vmem:[#allocation2 + $0x6e0] ss:$16 sps:$4 sm:$0xff]  }
  0x62   :  { %1759 = vmatpush2.bf16.msra.mxu1 %v3125_v35  ;;  %1719 = vmatprep.subr.bf16.mxu0 %v3126_v39  ;;  %v3177_v20 = vld [vmem:[#allocation2 + $0x4c4] ss:$16 sps:$4 sm:$0xff]   ;;  %v3175_v22 = vld [vmem:[#allocation2 + $0x4c0] ss:$16 sps:$4 sm:$0xff]  }
  0x63   :  { %1760 = vmatprep.subr.bf16.mxu1 %v3128_v40  ;;  %v3180_v21 = vld [vmem:[#allocation2 + $0x6c4] ss:$16 sps:$4 sm:$0xff]   ;;  %v3178_v23 = vld [vmem:[#allocation2 + $0x6c0] ss:$16 sps:$4 sm:$0xff]  }
  0x64   :  { %v3183_v24 = vld [vmem:[#allocation2 + $0x4a4] ss:$16 sps:$4 sm:$0xff]   ;;  %v3181_v26 = vld [vmem:[#allocation2 + $0x4a0] ss:$16 sps:$4 sm:$0xff]  }
  0x65   :  { %1720 = vmatpush2.bf16.msra.mxu0 %v3130_v41  ;;  %v3186_v25 = vld [vmem:[#allocation2 + $0x6a4] ss:$16 sps:$4 sm:$0xff]   ;;  %v3184_v27 = vld [vmem:[#allocation2 + $0x6a0] ss:$16 sps:$4 sm:$0xff]  }
  0x66   :  { %1761 = vmatpush2.bf16.msra.mxu1 %v3131_v44  ;;  %1721 = vmatprep.subr.bf16.mxu0 %v3132_v45  ;;  %v3189_v28 = vld [vmem:[#allocation2 + $0x484] ss:$16 sps:$4 sm:$0xff]   ;;  %v3187_v30 = vld [vmem:[#allocation2 + $0x480] ss:$16 sps:$4 sm:$0xff]   ;;  %v3767_v44 = vrot.slane %v90_v42, %v3744_v49  ;;  %v110_v45 = vcombine.high %v90_v42, %v90_v42  ;;  %v3281_v42 = vld [vmem:[#allocation2 + $0x2a8] ss:$16 sps:$4 sm:$0xff]  }
  0x67   :  { %1762 = vmatprep.subr.bf16.mxu1 %v3134_v46  ;;  %v3192_v29 = vld [vmem:[#allocation2 + $0x684] ss:$16 sps:$4 sm:$0xff]   ;;  %v3190_v31 = vld [vmem:[#allocation2 + $0x680] ss:$16 sps:$4 sm:$0xff]  }
  0x68   :  { %v3195_v32 = vld [vmem:[#allocation2 + $0x464] ss:$16 sps:$4 sm:$0xff]   ;;  %v3193_v34 = vld [vmem:[#allocation2 + $0x460] ss:$16 sps:$4 sm:$0xff]  }
  0x69   :  { %1722 = vmatpush2.bf16.msra.mxu0 %v3136_v47  ;;  %v3198_v33 = vld [vmem:[#allocation2 + $0x664] ss:$16 sps:$4 sm:$0xff]   ;;  %v3196_v35 = vld [vmem:[#allocation2 + $0x660] ss:$16 sps:$4 sm:$0xff]  }
  0x6a   :  { %1763 = vmatpush2.bf16.msra.mxu1 %v3137_v48  ;;  %1723 = vmatprep.subr.bf16.mxu0 %v3138_v50  ;;  %v3201_v36 = vld [vmem:[#allocation2 + $0x444] ss:$16 sps:$4 sm:$0xff]   ;;  %v3199_v38 = vld [vmem:[#allocation2 + $0x440] ss:$16 sps:$4 sm:$0xff]   ;;  %v125_v48 = vcombine.high %v3767_v44, %v3767_v44  ;;  %v3772_v50 = vrot.slane %v110_v45, %v3744_v49  ;;  %v3289_v45 = vld [vmem:[#allocation2 + $0x28c] ss:$16 sps:$4 sm:$0xff]  }
  0x6b   :  { %1764 = vmatprep.subr.bf16.mxu1 %v3140_v51  ;;  %v3204_v37 = vld [vmem:[#allocation2 + $0x644] ss:$16 sps:$4 sm:$0xff]   ;;  %v3202_v39 = vld [vmem:[#allocation2 + $0x640] ss:$16 sps:$4 sm:$0xff]  }
  0x6c   :  { %v3207_v40 = vld [vmem:[#allocation2 + $0x424] ss:$16 sps:$4 sm:$0xff]   ;;  %v3205_v46 = vld [vmem:[#allocation2 + $0x420] ss:$16 sps:$4 sm:$0xff]   ;;  %v126_v54 = vcombine.high %v3772_v50, %v3772_v50 }
  0x6d   :  { %1724 = vmatpush2.bf16.msra.mxu0 %v3142_v53  ;;  %v3210_v41 = vld [vmem:[#allocation2 + $0x624] ss:$16 sps:$4 sm:$0xff]   ;;  %v3208_v47 = vld [vmem:[#allocation2 + $0x620] ss:$16 sps:$4 sm:$0xff]   ;;  %v3774_v53 = vpack.c.bf16 %v125_v48, %v125_v48  ;;  %v3292_v48 = vld [vmem:[#allocation2 + $0x6c] ss:$16 sps:$4 sm:$0xff]  }
  0x6e   :  { %1765 = vmatpush2.bf16.msra.mxu1 %v3143_v56  ;;  %1725 = vmatprep.subr.bf16.mxu0 %v3144_v57  ;;  %v3213_v51 = vld [vmem:[#allocation2 + $0x404] ss:$16 sps:$4 sm:$0xff]   ;;  %v3211_v55 = vld [vmem:[#allocation2 + $0x400] ss:$16 sps:$4 sm:$0xff]   ;;  %v3778_v57 = vpack.c.bf16 %v126_v54, %v126_v54  ;;  %v3296_v54 = vld [vmem:[#allocation2 + $0x48] ss:$16 sps:$4 sm:$0xff]  }
  0x6f   :  { %1766 = vmatprep.subr.bf16.mxu1 %v3146_v58  ;;  %v3216_v52 = vld [vmem:[#allocation2 + $0x604] ss:$16 sps:$4 sm:$0xff]   ;;  %v3214_v56 = vld [vmem:[#allocation2 + $0x600] ss:$16 sps:$4 sm:$0xff]  }
  0x70   :  { %v3219_v58 = vld [vmem:[#allocation2 + $0x5e4] ss:$16 sps:$4 sm:$0xff]   ;;  %v3217_v59 = vld [vmem:[#allocation2 + $0x5e0] ss:$16 sps:$4 sm:$0xff]  }
  0x71   :  { %1726 = vmatpush2.bf16.msra.mxu0 %v3148_v61  ;;  %v3222_v49 = vld [vmem:[#allocation2 + $0x7e4] ss:$16 sps:$4 sm:$0xff]   ;;  %v3220_v60 = vld [vmem:[#allocation2 + $0x7e0] ss:$16 sps:$4 sm:$0xff]  }
  0x72   :  { %1767 = vmatpush2.bf16.msra.mxu1 %v3149_v0  ;;  %1727 = vmatprep.subr.bf16.mxu0 %v3150_v1  ;;  %v3225_v61 = vld [vmem:[#allocation2 + $0x5c4] ss:$16 sps:$4 sm:$0xff]   ;;  %v3223_v0 = vld [vmem:[#allocation2 + $0x5c0] ss:$16 sps:$4 sm:$0xff]  }
  0x73   :  { %1768 = vmatprep.subr.bf16.mxu1 %v3152_v2  ;;  %v3228_v63 = vld [vmem:[#allocation2 + $0x7c4] ss:$16 sps:$4 sm:$0xff]   ;;  %v3226_v1 = vld [vmem:[#allocation2 + $0x7c0] ss:$16 sps:$4 sm:$0xff]  }
  0x74   :  { %v3231_v2 = vld [vmem:[#allocation2 + $0x5a4] ss:$16 sps:$4 sm:$0xff]  }
  0x75   :  { %1728 = vmatpush2.bf16.msra.mxu0 %v3154_v4  ;;  %v3234_v4 = vld [vmem:[#allocation2 + $0x7a4] ss:$16 sps:$4 sm:$0xff]  }
  0x76   :  { %1769 = vmatpush2.bf16.msra.mxu1 %v3155_v5  ;;  %1729 = vmatprep.subr.bf16.mxu0 %v3156_v6  ;;  %v3229_v5 = vld [vmem:[#allocation2 + $0x5a0] ss:$16 sps:$4 sm:$0xff]  }
  0x77   :  { %1770 = vmatprep.subr.bf16.mxu1 %v3158_v7  ;;  %v3232_v6 = vld [vmem:[#allocation2 + $0x7a0] ss:$16 sps:$4 sm:$0xff]   ;;  %v3237_v7 = vld [vmem:[#allocation2 + $0x584] ss:$16 sps:$4 sm:$0xff]  }
  0x79   :  { %1730 = vmatpush2.bf16.msra.mxu0 %v3160_v8  ;;  %v3240_v8 = vld [vmem:[#allocation2 + $0x784] ss:$16 sps:$4 sm:$0xff]  }
  0x7a   :  { %1771 = vmatpush2.bf16.msra.mxu1 %v3161_v9  ;;  %1731 = vmatprep.subr.bf16.mxu0 %v3162_v10  ;;  %v3235_v9 = vld [vmem:[#allocation2 + $0x580] ss:$16 sps:$4 sm:$0xff]  }
  0x7b   :  { %1772 = vmatprep.subr.bf16.mxu1 %v3164_v11  ;;  %v3238_v10 = vld [vmem:[#allocation2 + $0x780] ss:$16 sps:$4 sm:$0xff]   ;;  %v3243_v11 = vld [vmem:[#allocation2 + $0x564] ss:$16 sps:$4 sm:$0xff]  }
  0x7d   :  { %1732 = vmatpush2.bf16.msra.mxu0 %v3166_v12  ;;  %v3246_v12 = vld [vmem:[#allocation2 + $0x764] ss:$16 sps:$4 sm:$0xff]  }
  0x7e   :  { %1773 = vmatpush2.bf16.msra.mxu1 %v3167_v13  ;;  %1783 = vmatprep.subr.bf16.mxu0 %v3171_v14  ;;  %v3241_v13 = vld [vmem:[#allocation2 + $0x560] ss:$16 sps:$4 sm:$0xff]  }
  0x7f   :  { %1824 = vmatprep.subr.bf16.mxu1 %v3174_v15  ;;  %v3244_v14 = vld [vmem:[#allocation2 + $0x760] ss:$16 sps:$4 sm:$0xff]   ;;  %v3249_v15 = vld [vmem:[#allocation2 + $0x544] ss:$16 sps:$4 sm:$0xff]  }
  0x80   :  { %1734 = vmatmul.mubr.bf16.vlgmr.msra.gmra.mxu0 %v3757_v16 }
  0x81   :  { %1775 = vmatmul.mubr.bf16.vlgmr.msra.gmra.mxu1 %v3759_v17  ;;  %1784 = vmatpush1.bf16.msra.mxu0 %v3169_v18  ;;  %v3252_v18 = vld [vmem:[#allocation2 + $0x744] ss:$16 sps:$4 sm:$0xff]  }
  0x82   :  { %1825 = vmatpush1.bf16.msra.mxu1 %v3172_v19  ;;  %1785 = vmatprep.subr.bf16.mxu0 %v3177_v20  ;;  %v3247_v19 = vld [vmem:[#allocation2 + $0x540] ss:$16 sps:$4 sm:$0xff]  }
  0x83   :  { %1826 = vmatprep.subr.bf16.mxu1 %v3180_v21  ;;  %1815 = vmatprep.mubr.bf16.mxu0 %v3774_v53  ;;  %v3250_v20 = vld [vmem:[#allocation2 + $0x740] ss:$16 sps:$4 sm:$0xff]   ;;  %v3255_v21 = vld [vmem:[#allocation2 + $0x524] ss:$16 sps:$4 sm:$0xff]  }
  0x84   :  { %1856 = vmatprep.mubr.bf16.mxu1 %v3778_v57 }
  0x85   :  { %1786 = vmatpush1.bf16.msra.mxu0 %v3175_v22  ;;  %v3258_v22 = vld [vmem:[#allocation2 + $0x724] ss:$16 sps:$4 sm:$0xff]  }
  0x86   :  { %1827 = vmatpush1.bf16.msra.mxu1 %v3178_v23  ;;  %1787 = vmatprep.subr.bf16.mxu0 %v3183_v24  ;;  %v3253_v23 = vld [vmem:[#allocation2 + $0x520] ss:$16 sps:$4 sm:$0xff]  }
  0x87   :  { %1828 = vmatprep.subr.bf16.mxu1 %v3186_v25  ;;  %v3256_v24 = vld [vmem:[#allocation2 + $0x720] ss:$16 sps:$4 sm:$0xff]   ;;  %v3261_v25 = vld [vmem:[#allocation2 + $0x504] ss:$16 sps:$4 sm:$0xff]  }
  0x89   :  { %1788 = vmatpush1.bf16.msra.mxu0 %v3181_v26  ;;  %v3264_v26 = vld [vmem:[#allocation2 + $0x704] ss:$16 sps:$4 sm:$0xff]  }
  0x8a   :  { %1829 = vmatpush1.bf16.msra.mxu1 %v3184_v27  ;;  %1789 = vmatprep.subr.bf16.mxu0 %v3189_v28  ;;  %v3259_v27 = vld [vmem:[#allocation2 + $0x500] ss:$16 sps:$4 sm:$0xff]  }
  0x8b   :  { %1830 = vmatprep.subr.bf16.mxu1 %v3192_v29  ;;  %v3262_v28 = vld [vmem:[#allocation2 + $0x700] ss:$16 sps:$4 sm:$0xff]   ;;  %v3268_v29 = vld [vmem:[#allocation2 + $0xec] ss:$16 sps:$4 sm:$0xff]  }
  0x8d   :  { %1790 = vmatpush1.bf16.msra.mxu0 %v3187_v30  ;;  %v3271_v30 = vld [vmem:[#allocation2 + $0x2ec] ss:$16 sps:$4 sm:$0xff]  }
  0x8e   :  { %1831 = vmatpush1.bf16.msra.mxu1 %v3190_v31  ;;  %1791 = vmatprep.subr.bf16.mxu0 %v3195_v32  ;;  %v3784_v31 = vpack.c.bf16 %v3767_v44, %v3767_v44  ;;  %v3788_v32 = vpack.c.bf16 %v3772_v50, %v3772_v50  ;;  %v3286_v44 = vld [vmem:[#allocation2 + $0x8c] ss:$16 sps:$4 sm:$0xff]  }
  0x8f   :  { %1832 = vmatprep.subr.bf16.mxu1 %v3198_v33  ;;  %v3266_v33 = vld [vmem:[#allocation2 + $0xe8] ss:$16 sps:$4 sm:$0xff]   ;;  %v3295_v50 = vld [vmem:[#allocation2 + $0x26c] ss:$16 sps:$4 sm:$0xff]  }
  0x91   :  { %1792 = vmatpush1.bf16.msra.mxu0 %v3193_v34  ;;  %v3269_v34 = vld [vmem:[#allocation2 + $0x2e8] ss:$16 sps:$4 sm:$0xff]  }
  0x92   :  { %1833 = vmatpush1.bf16.msra.mxu1 %v3196_v35  ;;  %1793 = vmatprep.subr.bf16.mxu0 %v3201_v36  ;;  %v3274_v35 = vld [vmem:[#allocation2 + $0xcc] ss:$16 sps:$4 sm:$0xff]  }
  0x93   :  { %1834 = vmatprep.subr.bf16.mxu1 %v3204_v37  ;;  %v3277_v36 = vld [vmem:[#allocation2 + $0x2cc] ss:$16 sps:$4 sm:$0xff]   ;;  %v3272_v37 = vld [vmem:[#allocation2 + $0xc8] ss:$16 sps:$4 sm:$0xff]  }
  0x95   :  { %1794 = vmatpush1.bf16.msra.mxu0 %v3199_v38  ;;  %v3275_v38 = vld [vmem:[#allocation2 + $0x2c8] ss:$16 sps:$4 sm:$0xff]  }
  0x96   :  { %1835 = vmatpush1.bf16.msra.mxu1 %v3202_v39  ;;  %1795 = vmatprep.subr.bf16.mxu0 %v3207_v40  ;;  %v3280_v39 = vld [vmem:[#allocation2 + $0xac] ss:$16 sps:$4 sm:$0xff]  }
  0x97   :  { %1836 = vmatprep.subr.bf16.mxu1 %v3210_v41  ;;  %v3283_v40 = vld [vmem:[#allocation2 + $0x2ac] ss:$16 sps:$4 sm:$0xff]   ;;  %v3278_v41 = vld [vmem:[#allocation2 + $0xa8] ss:$16 sps:$4 sm:$0xff]  }
  0x99   :  { %1796 = vmatpush1.bf16.msra.mxu0 %v3205_v46  ;;  %v3284_v46 = vld [vmem:[#allocation2 + $0x88] ss:$16 sps:$4 sm:$0xff]  }
  0x9a   :  { %1837 = vmatpush1.bf16.msra.mxu1 %v3208_v47  ;;  %1797 = vmatprep.subr.bf16.mxu0 %v3213_v51  ;;  %v3287_v47 = vld [vmem:[#allocation2 + $0x288] ss:$16 sps:$4 sm:$0xff]   ;;  %v3298_v51 = vld [vmem:[#allocation2 + $0x4c] ss:$16 sps:$4 sm:$0xff]  }
  0x9b   :  { %1838 = vmatprep.subr.bf16.mxu1 %v3216_v52  ;;  %v3301_v52 = vld [vmem:[#allocation2 + $0x24c] ss:$16 sps:$4 sm:$0xff]  }
  0x9d   :  { %1798 = vmatpush1.bf16.msra.mxu0 %v3211_v55  ;;  %v3299_v55 = vld [vmem:[#allocation2 + $0x248] ss:$16 sps:$4 sm:$0xff]  }
  0x9e   :  { %1839 = vmatpush1.bf16.msra.mxu1 %v3214_v56  ;;  %1799 = vmatprep.subr.bf16.mxu0 %v3219_v58  ;;  %v3304_v56 = vld [vmem:[#allocation2 + $0x2c] ss:$16 sps:$4 sm:$0xff]  }
  0x9f   :  { %1840 = vmatprep.subr.bf16.mxu1 %v3222_v49  ;;  %v3307_v58 = vld [vmem:[#allocation2 + $0x22c] ss:$16 sps:$4 sm:$0xff]   ;;  %v3302_v49 = vld [vmem:[#allocation2 + $0x28] ss:$16 sps:$4 sm:$0xff]  }
  0xa1   :  { %1800 = vmatpush2.bf16.msra.mxu0 %v3217_v59  ;;  %v3305_v59 = vld [vmem:[#allocation2 + $0x228] ss:$16 sps:$4 sm:$0xff]  }
  0xa2   :  { %1841 = vmatpush2.bf16.msra.mxu1 %v3220_v60  ;;  %1801 = vmatprep.subr.bf16.mxu0 %v3225_v61  ;;  %v3310_v60 = vld [vmem:[#allocation2 + $0xc] ss:$16 sps:$4 sm:$0xff]  }
  0xa3   :  { %1842 = vmatprep.subr.bf16.mxu1 %v3228_v63  ;;  %v3313_v61 = vld [vmem:[#allocation2 + $0x20c] ss:$16 sps:$4 sm:$0xff]   ;;  %v3308_v63 = vld [vmem:[#allocation2 + $0x8] ss:$16 sps:$4 sm:$0xff]  }
  0xa5   :  { %1802 = vmatpush2.bf16.msra.mxu0 %v3223_v0  ;;  %v3311_v0 = vld [vmem:[#allocation2 + $0x208] ss:$16 sps:$4 sm:$0xff]  }
  0xa6   :  { %1843 = vmatpush2.bf16.msra.mxu1 %v3226_v1  ;;  %1803 = vmatprep.subr.bf16.mxu0 %v3231_v2  ;;  %v3316_v1 = vld [vmem:[#allocation2 + $0x1ec] ss:$16 sps:$4 sm:$0xff]  }
  0xa7   :  { %1844 = vmatprep.subr.bf16.mxu1 %v3234_v4  ;;  %v3319_v2 = vld [vmem:[#allocation2 + $0x3ec] ss:$16 sps:$4 sm:$0xff]   ;;  %v3314_v4 = vld [vmem:[#allocation2 + $0x1e8] ss:$16 sps:$4 sm:$0xff]  }
  0xa9   :  { %1804 = vmatpush2.bf16.msra.mxu0 %v3229_v5  ;;  %v3317_v5 = vld [vmem:[#allocation2 + $0x3e8] ss:$16 sps:$4 sm:$0xff]  }
  0xaa   :  { %1845 = vmatpush2.bf16.msra.mxu1 %v3232_v6  ;;  %1805 = vmatprep.subr.bf16.mxu0 %v3237_v7  ;;  %v3322_v6 = vld [vmem:[#allocation2 + $0x1cc] ss:$16 sps:$4 sm:$0xff]  }
  0xab   :  { %1846 = vmatprep.subr.bf16.mxu1 %v3240_v8  ;;  %v3325_v7 = vld [vmem:[#allocation2 + $0x3cc] ss:$16 sps:$4 sm:$0xff]   ;;  %v3320_v8 = vld [vmem:[#allocation2 + $0x1c8] ss:$16 sps:$4 sm:$0xff]  }
  0xad   :  { %1806 = vmatpush2.bf16.msra.mxu0 %v3235_v9  ;;  %v3323_v9 = vld [vmem:[#allocation2 + $0x3c8] ss:$16 sps:$4 sm:$0xff]  }
  0xae   :  { %1847 = vmatpush2.bf16.msra.mxu1 %v3238_v10  ;;  %1807 = vmatprep.subr.bf16.mxu0 %v3243_v11  ;;  %v3328_v10 = vld [vmem:[#allocation2 + $0x1ac] ss:$16 sps:$4 sm:$0xff]  }
  0xaf   :  { %1848 = vmatprep.subr.bf16.mxu1 %v3246_v12  ;;  %v3331_v11 = vld [vmem:[#allocation2 + $0x3ac] ss:$16 sps:$4 sm:$0xff]   ;;  %v3326_v12 = vld [vmem:[#allocation2 + $0x1a8] ss:$16 sps:$4 sm:$0xff]  }
  0xb1   :  { %1808 = vmatpush2.bf16.msra.mxu0 %v3241_v13  ;;  %v3329_v13 = vld [vmem:[#allocation2 + $0x3a8] ss:$16 sps:$4 sm:$0xff]  }
  0xb2   :  { %1849 = vmatpush2.bf16.msra.mxu1 %v3244_v14  ;;  %1809 = vmatprep.subr.bf16.mxu0 %v3249_v15  ;;  %v3334_v14 = vld [vmem:[#allocation2 + $0x18c] ss:$16 sps:$4 sm:$0xff]  }
  0xb3   :  { %1850 = vmatprep.subr.bf16.mxu1 %v3252_v18  ;;  %v3337_v15 = vld [vmem:[#allocation2 + $0x38c] ss:$16 sps:$4 sm:$0xff]   ;;  %v3332_v18 = vld [vmem:[#allocation2 + $0x188] ss:$16 sps:$4 sm:$0xff]  }
  0xb5   :  { %1810 = vmatpush2.bf16.msra.mxu0 %v3247_v19  ;;  %v3335_v19 = vld [vmem:[#allocation2 + $0x388] ss:$16 sps:$4 sm:$0xff]  }
  0xb6   :  { %1851 = vmatpush2.bf16.msra.mxu1 %v3250_v20  ;;  %1811 = vmatprep.subr.bf16.mxu0 %v3255_v21  ;;  %v3340_v20 = vld [vmem:[#allocation2 + $0x16c] ss:$16 sps:$4 sm:$0xff]  }
  0xb7   :  { %1852 = vmatprep.subr.bf16.mxu1 %v3258_v22  ;;  %v3343_v21 = vld [vmem:[#allocation2 + $0x36c] ss:$16 sps:$4 sm:$0xff]   ;;  %v3338_v22 = vld [vmem:[#allocation2 + $0x168] ss:$16 sps:$4 sm:$0xff]  }
  0xb9   :  { %1812 = vmatpush2.bf16.msra.mxu0 %v3253_v23  ;;  %v3341_v23 = vld [vmem:[#allocation2 + $0x368] ss:$16 sps:$4 sm:$0xff]  }
  0xba   :  { %1853 = vmatpush2.bf16.msra.mxu1 %v3256_v24  ;;  %1813 = vmatprep.subr.bf16.mxu0 %v3261_v25  ;;  %v3346_v24 = vld [vmem:[#allocation2 + $0x14c] ss:$16 sps:$4 sm:$0xff]  }
  0xbb   :  { %1854 = vmatprep.subr.bf16.mxu1 %v3264_v26  ;;  %v3349_v25 = vld [vmem:[#allocation2 + $0x34c] ss:$16 sps:$4 sm:$0xff]   ;;  %v3344_v26 = vld [vmem:[#allocation2 + $0x148] ss:$16 sps:$4 sm:$0xff]  }
  0xbd   :  { %1814 = vmatpush2.bf16.msra.mxu0 %v3259_v27  ;;  %v3347_v27 = vld [vmem:[#allocation2 + $0x348] ss:$16 sps:$4 sm:$0xff]  }
  0xbe   :  { %1855 = vmatpush2.bf16.msra.mxu1 %v3262_v28  ;;  %1865 = vmatprep.subr.bf16.mxu0 %v3268_v29  ;;  %v3352_v28 = vld [vmem:[#allocation2 + $0x12c] ss:$16 sps:$4 sm:$0xff]  }
  0xbf   :  { %1906 = vmatprep.subr.bf16.mxu1 %v3271_v30  ;;  %v3355_v29 = vld [vmem:[#allocation2 + $0x32c] ss:$16 sps:$4 sm:$0xff]   ;;  %v3350_v30 = vld [vmem:[#allocation2 + $0x128] ss:$16 sps:$4 sm:$0xff]  }
  0xc0   :  { %1816 = vmatmul.mubr.bf16.vlgmr.msra.gmra.mxu0 %v3784_v31 }
  0xc1   :  { %1857 = vmatmul.mubr.bf16.vlgmr.msra.gmra.mxu1 %v3788_v32  ;;  %1866 = vmatpush1.bf16.msra.mxu0 %v3266_v33  ;;  %v3353_v33 = vld [vmem:[#allocation2 + $0x328] ss:$16 sps:$4 sm:$0xff]  }
  0xc2   :  { %1907 = vmatpush1.bf16.msra.mxu1 %v3269_v34  ;;  %1867 = vmatprep.subr.bf16.mxu0 %v3274_v35  ;;  %v3358_v34 = vld [vmem:[#allocation2 + $0x10c] ss:$16 sps:$4 sm:$0xff]  }
  0xc3   :  { %1908 = vmatprep.subr.bf16.mxu1 %v3277_v36  ;;  %1897 = vmatprep.mubr.bf16.mxu0 %v3751_v62  ;;  %v3290_v62 = vld [vmem:[#allocation2 + $0x68] ss:$16 sps:$4 sm:$0xff]   ;;  %v3361_v35 = vld [vmem:[#allocation2 + $0x30c] ss:$16 sps:$4 sm:$0xff]  }
  0xc4   :  { %1938 = vmatprep.mubr.bf16.mxu1 %v3753_v3  ;;  %v3293_v3 = vld [vmem:[#allocation2 + $0x268] ss:$16 sps:$4 sm:$0xff]  }
  0xc5   :  { %1868 = vmatpush1.bf16.msra.mxu0 %v3272_v37  ;;  %v3356_v36 = vld [vmem:[#allocation2 + $0x108] ss:$16 sps:$4 sm:$0xff]  }
  0xc6   :  { %1909 = vmatpush1.bf16.msra.mxu1 %v3275_v38  ;;  %1869 = vmatprep.subr.bf16.mxu0 %v3280_v39  ;;  %v3359_v37 = vld [vmem:[#allocation2 + $0x308] ss:$16 sps:$4 sm:$0xff]   ;;  %v3364_v38 = vld [vmem:[#allocation2 + $0x4ec] ss:$16 sps:$4 sm:$0xff]  }
  0xc7   :  { %1910 = vmatprep.subr.bf16.mxu1 %v3283_v40  ;;  %v3367_v39 = vld [vmem:[#allocation2 + $0x6ec] ss:$16 sps:$4 sm:$0xff]   ;;  %v3362_v40 = vld [vmem:[#allocation2 + $0x4e8] ss:$16 sps:$4 sm:$0xff]  }
  0xc9   :  { %1870 = vmatpush1.bf16.msra.mxu0 %v3278_v41  ;;  %v3365_v41 = vld [vmem:[#allocation2 + $0x6e8] ss:$16 sps:$4 sm:$0xff]  }
  0xca   :  { %1911 = vmatpush1.bf16.msra.mxu1 %v3281_v42  ;;  %1871 = vmatprep.subr.bf16.mxu0 %v3286_v44  ;;  %v3370_v42 = vld [vmem:[#allocation2 + $0x4cc] ss:$16 sps:$4 sm:$0xff]  }
  0xcb   :  { %1912 = vmatprep.subr.bf16.mxu1 %v3289_v45  ;;  %v3373_v44 = vld [vmem:[#allocation2 + $0x6cc] ss:$16 sps:$4 sm:$0xff]   ;;  %v3368_v45 = vld [vmem:[#allocation2 + $0x4c8] ss:$16 sps:$4 sm:$0xff]  }
  0xcd   :  { %1872 = vmatpush1.bf16.msra.mxu0 %v3284_v46  ;;  %v3371_v46 = vld [vmem:[#allocation2 + $0x6c8] ss:$16 sps:$4 sm:$0xff]  }
  0xce   :  { %1913 = vmatpush1.bf16.msra.mxu1 %v3287_v47  ;;  %1873 = vmatprep.subr.bf16.mxu0 %v3292_v48  ;;  %v3376_v47 = vld [vmem:[#allocation2 + $0x4ac] ss:$16 sps:$4 sm:$0xff]  }
  0xcf   :  { %1914 = vmatprep.subr.bf16.mxu1 %v3295_v50  ;;  %v3379_v48 = vld [vmem:[#allocation2 + $0x6ac] ss:$16 sps:$4 sm:$0xff]   ;;  %v3374_v50 = vld [vmem:[#allocation2 + $0x4a8] ss:$16 sps:$4 sm:$0xff]  }
  0xd1   :  { %1874 = vmatpush1.bf16.msra.mxu0 %v3290_v62  ;;  %v3377_v62 = vld [vmem:[#allocation2 + $0x6a8] ss:$16 sps:$4 sm:$0xff]  }
  0xd2   :  { %1915 = vmatpush1.bf16.msra.mxu1 %v3293_v3  ;;  %1875 = vmatprep.subr.bf16.mxu0 %v3298_v51  ;;  %v3382_v3 = vld [vmem:[#allocation2 + $0x48c] ss:$16 sps:$4 sm:$0xff]   ;;  %v3380_v51 = vld [vmem:[#allocation2 + $0x488] ss:$16 sps:$4 sm:$0xff]  }
  0xd3   :  { %1916 = vmatprep.subr.bf16.mxu1 %v3301_v52  ;;  %v3388_v52 = vld [vmem:[#allocation2 + $0x46c] ss:$16 sps:$4 sm:$0xff]  }
  0xd5   :  { %1876 = vmatpush1.bf16.msra.mxu0 %v3296_v54  ;;  %v3391_v54 = vld [vmem:[#allocation2 + $0x66c] ss:$16 sps:$4 sm:$0xff]  }
  0xd6   :  { %1917 = vmatpush1.bf16.msra.mxu1 %v3299_v55  ;;  %1877 = vmatprep.subr.bf16.mxu0 %v3304_v56  ;;  %v3386_v55 = vld [vmem:[#allocation2 + $0x468] ss:$16 sps:$4 sm:$0xff]  }
  0xd7   :  { %1918 = vmatprep.subr.bf16.mxu1 %v3307_v58  ;;  %v3389_v56 = vld [vmem:[#allocation2 + $0x668] ss:$16 sps:$4 sm:$0xff]   ;;  %v3394_v58 = vld [vmem:[#allocation2 + $0x44c] ss:$16 sps:$4 sm:$0xff]  }
  0xd9   :  { %1878 = vmatpush1.bf16.msra.mxu0 %v3302_v49  ;;  %v3395_v49 = vld [vmem:[#allocation2 + $0x648] ss:$16 sps:$4 sm:$0xff]  }
  0xda   :  { %1919 = vmatpush1.bf16.msra.mxu1 %v3305_v59  ;;  %1879 = vmatprep.subr.bf16.mxu0 %v3310_v60  ;;  %v3400_v59 = vld [vmem:[#allocation2 + $0x42c] ss:$16 sps:$4 sm:$0xff]  }
  0xdb   :  { %1920 = vmatprep.subr.bf16.mxu1 %v3313_v61  ;;  %v3403_v60 = vld [vmem:[#allocation2 + $0x62c] ss:$16 sps:$4 sm:$0xff]   ;;  %v3398_v61 = vld [vmem:[#allocation2 + $0x428] ss:$16 sps:$4 sm:$0xff]  }
  0xdd   :  { %1880 = vmatpush1.bf16.msra.mxu0 %v3308_v63  ;;  %v3401_v63 = vld [vmem:[#allocation2 + $0x628] ss:$16 sps:$4 sm:$0xff]  }
  0xde   :  { %1921 = vmatpush1.bf16.msra.mxu1 %v3311_v0  ;;  %1881 = vmatprep.subr.bf16.mxu0 %v3316_v1  ;;  %v3406_v0 = vld [vmem:[#allocation2 + $0x40c] ss:$16 sps:$4 sm:$0xff]  }
  0xdf   :  { %1922 = vmatprep.subr.bf16.mxu1 %v3319_v2  ;;  %v3409_v1 = vld [vmem:[#allocation2 + $0x60c] ss:$16 sps:$4 sm:$0xff]   ;;  %v3404_v2 = vld [vmem:[#allocation2 + $0x408] ss:$16 sps:$4 sm:$0xff]  }
  0xe1   :  { %1882 = vmatpush2.bf16.msra.mxu0 %v3314_v4  ;;  %v3407_v4 = vld [vmem:[#allocation2 + $0x608] ss:$16 sps:$4 sm:$0xff]  }
  0xe2   :  { %1923 = vmatpush2.bf16.msra.mxu1 %v3317_v5  ;;  %1883 = vmatprep.subr.bf16.mxu0 %v3322_v6  ;;  %v3412_v5 = vld [vmem:[#allocation2 + $0x5ec] ss:$16 sps:$4 sm:$0xff]  }
  0xe3   :  { %1924 = vmatprep.subr.bf16.mxu1 %v3325_v7  ;;  %v3415_v6 = vld [vmem:[#allocation2 + $0x7ec] ss:$16 sps:$4 sm:$0xff]   ;;  %v3410_v7 = vld [vmem:[#allocation2 + $0x5e8] ss:$16 sps:$4 sm:$0xff]  }
  0xe5   :  { %1884 = vmatpush2.bf16.msra.mxu0 %v3320_v8  ;;  %v3413_v8 = vld [vmem:[#allocation2 + $0x7e8] ss:$16 sps:$4 sm:$0xff]  }
  0xe6   :  { %1925 = vmatpush2.bf16.msra.mxu1 %v3323_v9  ;;  %1885 = vmatprep.subr.bf16.mxu0 %v3328_v10  ;;  %v3418_v9 = vld [vmem:[#allocation2 + $0x5cc] ss:$16 sps:$4 sm:$0xff]  }
  0xe7   :  { %1926 = vmatprep.subr.bf16.mxu1 %v3331_v11  ;;  %v3421_v10 = vld [vmem:[#allocation2 + $0x7cc] ss:$16 sps:$4 sm:$0xff]   ;;  %v3416_v11 = vld [vmem:[#allocation2 + $0x5c8] ss:$16 sps:$4 sm:$0xff]  }
  0xe9   :  { %1886 = vmatpush2.bf16.msra.mxu0 %v3326_v12  ;;  %v3419_v12 = vld [vmem:[#allocation2 + $0x7c8] ss:$16 sps:$4 sm:$0xff]  }
  0xea   :  { %1927 = vmatpush2.bf16.msra.mxu1 %v3329_v13  ;;  %1887 = vmatprep.subr.bf16.mxu0 %v3334_v14  ;;  %v3424_v13 = vld [vmem:[#allocation2 + $0x5ac] ss:$16 sps:$4 sm:$0xff]  }
  0xeb   :  { %1928 = vmatprep.subr.bf16.mxu1 %v3337_v15  ;;  %v3427_v14 = vld [vmem:[#allocation2 + $0x7ac] ss:$16 sps:$4 sm:$0xff]   ;;  %v3422_v15 = vld [vmem:[#allocation2 + $0x5a8] ss:$16 sps:$4 sm:$0xff]  }
  0xed   :  { %1888 = vmatpush2.bf16.msra.mxu0 %v3332_v18  ;;  %v3425_v18 = vld [vmem:[#allocation2 + $0x7a8] ss:$16 sps:$4 sm:$0xff]  }
  0xee   :  { %1929 = vmatpush2.bf16.msra.mxu1 %v3335_v19  ;;  %1889 = vmatprep.subr.bf16.mxu0 %v3340_v20  ;;  %v3430_v19 = vld [vmem:[#allocation2 + $0x58c] ss:$16 sps:$4 sm:$0xff]  }
  0xef   :  { %1930 = vmatprep.subr.bf16.mxu1 %v3343_v21  ;;  %v3433_v20 = vld [vmem:[#allocation2 + $0x78c] ss:$16 sps:$4 sm:$0xff]   ;;  %v3428_v21 = vld [vmem:[#allocation2 + $0x588] ss:$16 sps:$4 sm:$0xff]  }
  0xf1   :  { %1890 = vmatpush2.bf16.msra.mxu0 %v3338_v22  ;;  %v3431_v22 = vld [vmem:[#allocation2 + $0x788] ss:$16 sps:$4 sm:$0xff]  }
  0xf2   :  { %1931 = vmatpush2.bf16.msra.mxu1 %v3341_v23  ;;  %1891 = vmatprep.subr.bf16.mxu0 %v3346_v24  ;;  %v3436_v23 = vld [vmem:[#allocation2 + $0x56c] ss:$16 sps:$4 sm:$0xff]  }
  0xf3   :  { %1932 = vmatprep.subr.bf16.mxu1 %v3349_v25  ;;  %v3439_v24 = vld [vmem:[#allocation2 + $0x76c] ss:$16 sps:$4 sm:$0xff]   ;;  %v3434_v25 = vld [vmem:[#allocation2 + $0x568] ss:$16 sps:$4 sm:$0xff]  }
  0xf5   :  { %1892 = vmatpush2.bf16.msra.mxu0 %v3344_v26  ;;  %v3437_v26 = vld [vmem:[#allocation2 + $0x768] ss:$16 sps:$4 sm:$0xff]  }
  0xf6   :  { %1933 = vmatpush2.bf16.msra.mxu1 %v3347_v27  ;;  %1893 = vmatprep.subr.bf16.mxu0 %v3352_v28  ;;  %v3442_v27 = vld [vmem:[#allocation2 + $0x54c] ss:$16 sps:$4 sm:$0xff]  }
  0xf7   :  { %1934 = vmatprep.subr.bf16.mxu1 %v3355_v29  ;;  %v3445_v28 = vld [vmem:[#allocation2 + $0x74c] ss:$16 sps:$4 sm:$0xff]   ;;  %v3440_v29 = vld [vmem:[#allocation2 + $0x548] ss:$16 sps:$4 sm:$0xff]  }
  0xf9   :  { %1894 = vmatpush2.bf16.msra.mxu0 %v3350_v30  ;;  %v3443_v30 = vld [vmem:[#allocation2 + $0x748] ss:$16 sps:$4 sm:$0xff]  }
  0xfa   :  { %1935 = vmatpush2.bf16.msra.mxu1 %v3353_v33  ;;  %1895 = vmatprep.subr.bf16.mxu0 %v3358_v34  ;;  %v3448_v33 = vld [vmem:[#allocation2 + $0x52c] ss:$16 sps:$4 sm:$0xff]  }
  0xfb   :  { %1936 = vmatprep.subr.bf16.mxu1 %v3361_v35  ;;  %v3451_v34 = vld [vmem:[#allocation2 + $0x72c] ss:$16 sps:$4 sm:$0xff]   ;;  %v3446_v35 = vld [vmem:[#allocation2 + $0x528] ss:$16 sps:$4 sm:$0xff]  }
  0xfd   :  { %1896 = vmatpush2.bf16.msra.mxu0 %v3356_v36  ;;  %v3449_v36 = vld [vmem:[#allocation2 + $0x728] ss:$16 sps:$4 sm:$0xff]  }
  0xfe   :  { %1937 = vmatpush2.bf16.msra.mxu1 %v3359_v37  ;;  %1947 = vmatprep.subr.bf16.mxu0 %v3364_v38  ;;  %v3454_v37 = vld [vmem:[#allocation2 + $0x50c] ss:$16 sps:$4 sm:$0xff]  }
  0xff   :  { %1988 = vmatprep.subr.bf16.mxu1 %v3367_v39  ;;  %v3457_v38 = vld [vmem:[#allocation2 + $0x70c] ss:$16 sps:$4 sm:$0xff]   ;;  %v3452_v39 = vld [vmem:[#allocation2 + $0x508] ss:$16 sps:$4 sm:$0xff]  }
 0x100   :  { %1898 = vmatmul.mubr.bf16.vlgmr.msra.gmra.mxu0 %v3757_v16  ;;  %v3385_v16 = vld [vmem:[#allocation2 + $0x68c] ss:$16 sps:$4 sm:$0xff]  }
 0x101   :  { %1939 = vmatmul.mubr.bf16.vlgmr.msra.gmra.mxu1 %v3759_v17  ;;  %1948 = vmatpush1.bf16.msra.mxu0 %v3362_v40  ;;  %v3383_v17 = vld [vmem:[#allocation2 + $0x688] ss:$16 sps:$4 sm:$0xff]  }
 0x102   :  { %1989 = vmatpush1.bf16.msra.mxu1 %v3365_v41  ;;  %1949 = vmatprep.subr.bf16.mxu0 %v3370_v42  ;;  %v3455_v40 = vld [vmem:[#allocation2 + $0x708] ss:$16 sps:$4 sm:$0xff]   ;;  %v3458_v42 = vld [vmem:[#allocation6 + $0x70] ss:$8 sps:$4 sm:$0xff]  }
 0x103   :  { %1990 = vmatprep.subr.bf16.mxu1 %v3373_v44  ;;  %1979 = vmatprep.mubr.bf16.mxu0 %v3774_v53  ;;  %v3397_v53 = vld [vmem:[#allocation2 + $0x64c] ss:$16 sps:$4 sm:$0xff]   ;;  %v3460_v41 = vld [vmem:[#allocation6 + $0x74] ss:$8 sps:$4 sm:$0xff]   ;;  %v3463_v44 = vld [vmem:[#allocation6 + $0x64] ss:$8 sps:$4 sm:$0xff]  }
 0x104   :  { %2020 = vmatprep.mubr.bf16.mxu1 %v3778_v57  ;;  %v3392_v57 = vld [vmem:[#allocation2 + $0x448] ss:$16 sps:$4 sm:$0xff]  }
 0x105   :  { %1950 = vmatpush1.bf16.msra.mxu0 %v3368_v45 }
 0x106   :  { %1991 = vmatpush1.bf16.msra.mxu1 %v3371_v46  ;;  %1951 = vmatprep.subr.bf16.mxu0 %v3376_v47  ;;  %v3461_v47 = vld [vmem:[#allocation6 + $0x60] ss:$8 sps:$4 sm:$0xff]  }
 0x107   :  { %1992 = vmatprep.subr.bf16.mxu1 %v3379_v48 }
 0x109   :  { %1952 = vmatpush1.bf16.msra.mxu0 %v3374_v50 }
 0x10a   :  { %1993 = vmatpush1.bf16.msra.mxu1 %v3377_v62  ;;  %1953 = vmatprep.subr.bf16.mxu0 %v3382_v3  ;;  %v3466_v62 = vld [vmem:[#allocation6 + $0x54] ss:$8 sps:$4 sm:$0xff]  }
 0x10b   :  { %1994 = vmatprep.subr.bf16.mxu1 %v3385_v16 }
 0x10d   :  { %1954 = vmatpush1.bf16.msra.mxu0 %v3380_v51  ;;  %v3464_v51 = vld [vmem:[#allocation6 + $0x50] ss:$8 sps:$4 sm:$0xff]  }
 0x10e   :  { %1995 = vmatpush1.bf16.msra.mxu1 %v3383_v17  ;;  %1955 = vmatprep.subr.bf16.mxu0 %v3388_v52 }
 0x10f   :  { %1996 = vmatprep.subr.bf16.mxu1 %v3391_v54  ;;  %v3469_v54 = vld [vmem:[#allocation6 + $0x44] ss:$8 sps:$4 sm:$0xff]  }
 0x111   :  { %1956 = vmatpush1.bf16.msra.mxu0 %v3386_v55  ;;  %v3506_v55 = vld [vmem:[#allocation6 + $0x170] ss:$8 sps:$4 sm:$0xff]  }
 0x112   :  { %1997 = vmatpush1.bf16.msra.mxu1 %v3389_v56  ;;  %1957 = vmatprep.subr.bf16.mxu0 %v3394_v58  ;;  %v3511_v56 = vld [vmem:[#allocation6 + $0x164] ss:$8 sps:$4 sm:$0xff]   ;;  %v3509_v58 = vld [vmem:[#allocation6 + $0x160] ss:$8 sps:$4 sm:$0xff]  }
 0x113   :  { %1998 = vmatprep.subr.bf16.mxu1 %v3397_v53  ;;  %v3472_v53 = vld [vmem:[#allocation6 + $0x34] ss:$8 sps:$4 sm:$0xff]  }
 0x115   :  { %1958 = vmatpush1.bf16.msra.mxu0 %v3392_v57  ;;  %v3514_v57 = vld [vmem:[#allocation6 + $0x154] ss:$8 sps:$4 sm:$0xff]  }
 0x116   :  { %1999 = vmatpush1.bf16.msra.mxu1 %v3395_v49  ;;  %1959 = vmatprep.subr.bf16.mxu0 %v3400_v59  ;;  %v3470_v49 = vld [vmem:[#allocation6 + $0x30] ss:$8 sps:$4 sm:$0xff]  }
 0x117   :  { %2000 = vmatprep.subr.bf16.mxu1 %v3403_v60  ;;  %v3512_v59 = vld [vmem:[#allocation6 + $0x150] ss:$8 sps:$4 sm:$0xff]   ;;  %v3475_v60 = vld [vmem:[#allocation6 + $0x24] ss:$8 sps:$4 sm:$0xff]  }
 0x119   :  { %1960 = vmatpush1.bf16.msra.mxu0 %v3398_v61  ;;  %v3517_v61 = vld [vmem:[#allocation6 + $0x144] ss:$8 sps:$4 sm:$0xff]  }
 0x11a   :  { %2001 = vmatpush1.bf16.msra.mxu1 %v3401_v63  ;;  %1961 = vmatprep.subr.bf16.mxu0 %v3406_v0  ;;  %v3473_v63 = vld [vmem:[#allocation6 + $0x20] ss:$8 sps:$4 sm:$0xff]  }
 0x11b   :  { %2002 = vmatprep.subr.bf16.mxu1 %v3409_v1  ;;  %v3515_v0 = vld [vmem:[#allocation6 + $0x140] ss:$8 sps:$4 sm:$0xff]   ;;  %v3478_v1 = vld [vmem:[#allocation6 + $0x14] ss:$8 sps:$4 sm:$0xff]  }
 0x11d   :  { %1962 = vmatpush1.bf16.msra.mxu0 %v3404_v2  ;;  %v3520_v2 = vld [vmem:[#allocation6 + $0x134] ss:$8 sps:$4 sm:$0xff]  }
 0x11e   :  { %2003 = vmatpush1.bf16.msra.mxu1 %v3407_v4  ;;  %1963 = vmatprep.subr.bf16.mxu0 %v3412_v5  ;;  %v3476_v4 = vld [vmem:[#allocation6 + $0x10] ss:$8 sps:$4 sm:$0xff]  }
 0x11f   :  { %2004 = vmatprep.subr.bf16.mxu1 %v3415_v6  ;;  %v3518_v5 = vld [vmem:[#allocation6 + $0x130] ss:$8 sps:$4 sm:$0xff]   ;;  %v3481_v6 = vld [vmem:[#allocation6 + $0x4] ss:$8 sps:$4 sm:$0xff]  }
 0x121   :  { %1964 = vmatpush2.bf16.msra.mxu0 %v3410_v7  ;;  %v3523_v7 = vld [vmem:[#allocation6 + $0x124] ss:$8 sps:$4 sm:$0xff]  }
 0x122   :  { %2005 = vmatpush2.bf16.msra.mxu1 %v3413_v8  ;;  %1965 = vmatprep.subr.bf16.mxu0 %v3418_v9  ;;  %v3479_v8 = vld [vmem:[#allocation6] ss:$8 sps:$4 sm:$0xff]  }
 0x123   :  { %2006 = vmatprep.subr.bf16.mxu1 %v3421_v10  ;;  %v3521_v9 = vld [vmem:[#allocation6 + $0x120] ss:$8 sps:$4 sm:$0xff]   ;;  %v3484_v10 = vld [vmem:[#allocation6 + $0xf4] ss:$8 sps:$4 sm:$0xff]  }
 0x125   :  { %1966 = vmatpush2.bf16.msra.mxu0 %v3416_v11  ;;  %v3526_v11 = vld [vmem:[#allocation6 + $0x114] ss:$8 sps:$4 sm:$0xff]  }
 0x126   :  { %2007 = vmatpush2.bf16.msra.mxu1 %v3419_v12  ;;  %1967 = vmatprep.subr.bf16.mxu0 %v3424_v13  ;;  %v3482_v12 = vld [vmem:[#allocation6 + $0xf0] ss:$8 sps:$4 sm:$0xff]  }
 0x127   :  { %2008 = vmatprep.subr.bf16.mxu1 %v3427_v14  ;;  %v3524_v13 = vld [vmem:[#allocation6 + $0x110] ss:$8 sps:$4 sm:$0xff]   ;;  %v3487_v14 = vld [vmem:[#allocation6 + $0xe4] ss:$8 sps:$4 sm:$0xff]  }
 0x129   :  { %1968 = vmatpush2.bf16.msra.mxu0 %v3422_v15  ;;  %v3529_v15 = vld [vmem:[#allocation6 + $0x104] ss:$8 sps:$4 sm:$0xff]  }
 0x12a   :  { %2009 = vmatpush2.bf16.msra.mxu1 %v3425_v18  ;;  %1969 = vmatprep.subr.bf16.mxu0 %v3430_v19  ;;  %v3485_v18 = vld [vmem:[#allocation6 + $0xe0] ss:$8 sps:$4 sm:$0xff]  }
 0x12b   :  { %2010 = vmatprep.subr.bf16.mxu1 %v3433_v20  ;;  %v3527_v19 = vld [vmem:[#allocation6 + $0x100] ss:$8 sps:$4 sm:$0xff]   ;;  %v3490_v20 = vld [vmem:[#allocation6 + $0xd4] ss:$8 sps:$4 sm:$0xff]  }
 0x12d   :  { %1970 = vmatpush2.bf16.msra.mxu0 %v3428_v21  ;;  %v3532_v21 = vld [vmem:[#allocation6 + $0x1f4] ss:$8 sps:$4 sm:$0xff]  }
 0x12e   :  { %2011 = vmatpush2.bf16.msra.mxu1 %v3431_v22  ;;  %1971 = vmatprep.subr.bf16.mxu0 %v3436_v23  ;;  %v3488_v22 = vld [vmem:[#allocation6 + $0xd0] ss:$8 sps:$4 sm:$0xff]  }
 0x12f   :  { %2012 = vmatprep.subr.bf16.mxu1 %v3439_v24  ;;  %v3530_v23 = vld [vmem:[#allocation6 + $0x1f0] ss:$8 sps:$4 sm:$0xff]   ;;  %v3493_v24 = vld [vmem:[#allocation6 + $0xc4] ss:$8 sps:$4 sm:$0xff]  }
 0x131   :  { %1972 = vmatpush2.bf16.msra.mxu0 %v3434_v25  ;;  %v3535_v25 = vld [vmem:[#allocation6 + $0x1e4] ss:$8 sps:$4 sm:$0xff]  }
 0x132   :  { %2013 = vmatpush2.bf16.msra.mxu1 %v3437_v26  ;;  %1973 = vmatprep.subr.bf16.mxu0 %v3442_v27  ;;  %v3491_v26 = vld [vmem:[#allocation6 + $0xc0] ss:$8 sps:$4 sm:$0xff]  }
 0x133   :  { %2014 = vmatprep.subr.bf16.mxu1 %v3445_v28  ;;  %v3533_v27 = vld [vmem:[#allocation6 + $0x1e0] ss:$8 sps:$4 sm:$0xff]   ;;  %v3496_v28 = vld [vmem:[#allocation6 + $0xb4] ss:$8 sps:$4 sm:$0xff]  }
 0x135   :  { %1974 = vmatpush2.bf16.msra.mxu0 %v3440_v29  ;;  %v3538_v29 = vld [vmem:[#allocation6 + $0x1d4] ss:$8 sps:$4 sm:$0xff]  }
 0x136   :  { %2015 = vmatpush2.bf16.msra.mxu1 %v3443_v30  ;;  %1975 = vmatprep.subr.bf16.mxu0 %v3448_v33  ;;  %v3494_v30 = vld [vmem:[#allocation6 + $0xb0] ss:$8 sps:$4 sm:$0xff]  }
 0x137   :  { %2016 = vmatprep.subr.bf16.mxu1 %v3451_v34  ;;  %v3536_v33 = vld [vmem:[#allocation6 + $0x1d0] ss:$8 sps:$4 sm:$0xff]   ;;  %v3499_v34 = vld [vmem:[#allocation6 + $0xa4] ss:$8 sps:$4 sm:$0xff]  }
 0x139   :  { %1976 = vmatpush2.bf16.msra.mxu0 %v3446_v35  ;;  %v3541_v35 = vld [vmem:[#allocation6 + $0x1c4] ss:$8 sps:$4 sm:$0xff]  }
 0x13a   :  { %2017 = vmatpush2.bf16.msra.mxu1 %v3449_v36  ;;  %1977 = vmatprep.subr.bf16.mxu0 %v3454_v37  ;;  %v3497_v36 = vld [vmem:[#allocation6 + $0xa0] ss:$8 sps:$4 sm:$0xff]  }
 0x13b   :  { %2018 = vmatprep.subr.bf16.mxu1 %v3457_v38  ;;  %v3539_v37 = vld [vmem:[#allocation6 + $0x1c0] ss:$8 sps:$4 sm:$0xff]   ;;  %v3502_v38 = vld [vmem:[#allocation6 + $0x94] ss:$8 sps:$4 sm:$0xff]  }
 0x13d   :  { %1978 = vmatpush2.bf16.msra.mxu0 %v3452_v39  ;;  %v3544_v39 = vld [vmem:[#allocation6 + $0x1b4] ss:$8 sps:$4 sm:$0xff]  }
 0x13e   :  { %2019 = vmatpush2.bf16.msra.mxu1 %v3455_v40  ;;  %2433 = vmatprep.subr.bf16.mxu0 %v3460_v41  ;;  %v403_v40 = vsub.s32 0, %v3741_v43  ;;  %v3809_v41 = vld [vmem:[#allocation4] sm:$0xf] }
 0x140   :  { %v3798_v45 = vpop.f32.mrf.mxu0  ;;  %1980 = vmatmul.mubr.bf16.vlgmr.msra.gmra.mxu0 %v3784_v31  ;;  %v3508_v31 = vld [vmem:[#allocation6 + $0x174] ss:$8 sps:$4 sm:$0xff]  }
 0x141   :  { %v3800_v46 = vpop.f32.mrf.mxu1  ;;  %2021 = vmatmul.mubr.bf16.vlgmr.msra.gmra.mxu1 %v3788_v32  ;;  %2434 = vmatpush1.bf16.msra.mxu0 %v3458_v42  ;;  %v3467_v32 = vld [vmem:[#allocation6 + $0x40] ss:$8 sps:$4 sm:$0xff]   ;;  %v407_v42 = vsub.s32 1, %v3741_v43 }
 0x142   :  { %v3804_v48 = vpop.f32.mrf.mxu0  ;;  %2435 = vmatprep.subr.bf16.mxu0 %v3463_v44  ;;  %2474 = vmatprep.subr.bf16.mxu1 %v3508_v31  ;;  %v3500_v44 = vld [vmem:[#allocation6 + $0x90] ss:$8 sps:$4 sm:$0xff]   ;;  %v3545_v31 = vld [vmem:[#allocation6 + $0x1a0] ss:$8 sps:$4 sm:$0xff]  }
 0x143   :  { %v3806_v50 = vpop.f32.mrf.mxu1  ;;  %2475 = vmatpush1.bf16.msra.mxu1 %v3506_v55 }
 0x144   :  { %v1739_v3 = vpop.f32.mrf.mxu0  ;;  %2476 = vmatprep.subr.bf16.mxu1 %v3511_v56 }
 0x145   :  { %v1780_v16 = vpop.f32.mrf.mxu1  ;;  %2436 = vmatpush1.bf16.msra.mxu0 %v3461_v47  ;;  %v3542_v47 = vld [vmem:[#allocation6 + $0x1b0] ss:$8 sps:$4 sm:$0xff]   ;;  %v404_v3 = vrot.slane %v3809_v41, %v403_v40 }
 0x146   :  { %v1740_v17 = vpop.f32.mrf.mxu0  ;;  %2437 = vmatprep.subr.bf16.mxu0 %v3466_v62  ;;  %v3505_v62 = vld [vmem:[#allocation6 + $0x84] ss:$8 sps:$4 sm:$0xff]   ;;  %v408_v16 = vrot.slane %v3809_v41, %v407_v42 }
 0x147   :  { %v1781_v52 = vpop.f32.mrf.mxu1  ;;  %2477 = vmatpush1.bf16.msra.mxu1 %v3509_v58  ;;  %v1736_v17 = vadd.f32 %v3798_v45, %v404_v3  ;;  %v3548_v45 = vld [vmem:[#allocation6 + $0x190] ss:$8 sps:$4 sm:$0xff]  }
 0x148   :  { %2478 = vmatprep.subr.bf16.mxu1 %v3514_v57  ;;  %v1738_v52 = vadd.f32 %v3804_v48, %v408_v16 }
 0x149   :  { %2438 = vmatpush1.bf16.msra.mxu0 %v3464_v51  ;;  %v3503_v51 = vld [vmem:[#allocation6 + $0x80] ss:$8 sps:$4 sm:$0xff]   ;;  %v1777_v55 = vadd.f32 %v3800_v46, %v1736_v17 }
 0x14a   :  { %2439 = vmatprep.subr.bf16.mxu0 %v3469_v54  ;;  %v3547_v54 = vld [vmem:[#allocation6 + $0x1a4] ss:$8 sps:$4 sm:$0xff]   ;;  %v1779_v58 = vadd.f32 %v3806_v50, %v1738_v52 }
 0x14b   :  { %2479 = vmatpush1.bf16.msra.mxu1 %v3512_v59  ;;  %v3550_v59 = vld [vmem:[#allocation6 + $0x194] ss:$8 sps:$4 sm:$0xff]  }
 0x14c   :  { %2480 = vmatprep.subr.bf16.mxu1 %v3517_v61 }
 0x14d   :  { %2440 = vmatpush1.bf16.msra.mxu0 %v3467_v32 }
 0x14e   :  { %2441 = vmatprep.subr.bf16.mxu0 %v3472_v53 }
 0x14f   :  { %2481 = vmatpush1.bf16.msra.mxu1 %v3515_v0 }
 0x150   :  { %2482 = vmatprep.subr.bf16.mxu1 %v3520_v2 }
 0x151   :  { %2442 = vmatpush1.bf16.msra.mxu0 %v3470_v49 }
 0x152   :  { %2443 = vmatprep.subr.bf16.mxu0 %v3475_v60 }
 0x153   :  { %2483 = vmatpush1.bf16.msra.mxu1 %v3518_v5 }
 0x154   :  { %2484 = vmatprep.subr.bf16.mxu1 %v3523_v7 }
 0x155   :  { %2444 = vmatpush1.bf16.msra.mxu0 %v3473_v63 }
 0x156   :  { %2445 = vmatprep.subr.bf16.mxu0 %v3478_v1 }
 0x157   :  { %2485 = vmatpush1.bf16.msra.mxu1 %v3521_v9 }
 0x158   :  { %2486 = vmatprep.subr.bf16.mxu1 %v3526_v11 }
 0x159   :  { %2446 = vmatpush1.bf16.msra.mxu0 %v3476_v4  ;;  %v3553_v4 = vld [vmem:[#allocation6 + $0x184] ss:$8 sps:$4 sm:$0xff]  }
 0x15a   :  { %2447 = vmatprep.subr.bf16.mxu0 %v3481_v6  ;;  %v3551_v6 = vld [vmem:[#allocation6 + $0x180] ss:$8 sps:$4 sm:$0xff]  }
 0x15b   :  { %2487 = vmatpush1.bf16.msra.mxu1 %v3524_v13 }
 0x15c   :  { %2488 = vmatprep.subr.bf16.mxu1 %v3529_v15 }
 0x15d   :  { %2448 = vmatpush1.bf16.msra.mxu0 %v3479_v8 }
 0x15e   :  { %2449 = vmatprep.subr.bf16.mxu0 %v3484_v10 }
 0x15f   :  { %2489 = vmatpush1.bf16.msra.mxu1 %v3527_v19  ;;  %v3555_v19 = vld [vmem:[%s3886_s5 + $0x38] sm:$0xff]  }
 0x160   :  { %2490 = vmatprep.subr.bf16.mxu1 %v3532_v21  ;;  %v3557_v21 = vld [vmem:[%s3886_s5 + $0x30] sm:$0xff]  }
 0x161   :  { %2450 = vmatpush2.bf16.msra.mxu0 %v3482_v12 }
 0x162   :  { %2451 = vmatprep.subr.bf16.mxu0 %v3487_v14 }
 0x163   :  { %2491 = vmatpush2.bf16.msra.mxu1 %v3530_v23  ;;  %v3559_v23 = vld [vmem:[%s3886_s5 + $0x28] sm:$0xff]  }
 0x164   :  { %2492 = vmatprep.subr.bf16.mxu1 %v3535_v25  ;;  %v3561_v25 = vld [vmem:[%s3886_s5 + $0x20] sm:$0xff]  }
 0x165   :  { %2452 = vmatpush2.bf16.msra.mxu0 %v3485_v18  ;;  %v3554_v18 = vld [vmem:[%s3886_s5 + $0x78] sm:$0xff]  }
 0x166   :  { %2453 = vmatprep.subr.bf16.mxu0 %v3490_v20  ;;  %v3556_v20 = vld [vmem:[%s3886_s5 + $0x70] sm:$0xff]  }
 0x167   :  { %2493 = vmatpush2.bf16.msra.mxu1 %v3533_v27  ;;  %v3563_v27 = vld [vmem:[%s3886_s5 + $0x18] sm:$0xff]  }
 0x168   :  { %2494 = vmatprep.subr.bf16.mxu1 %v3538_v29  ;;  %v3565_v29 = vld [vmem:[%s3886_s5 + $0x10] sm:$0xff]  }
 0x169   :  { %2454 = vmatpush2.bf16.msra.mxu0 %v3488_v22  ;;  %v3558_v22 = vld [vmem:[%s3886_s5 + $0x68] sm:$0xff]  }
 0x16a   :  { %2455 = vmatprep.subr.bf16.mxu0 %v3493_v24  ;;  %v3560_v24 = vld [vmem:[%s3886_s5 + $0x60] sm:$0xff]  }
 0x16b   :  { %2495 = vmatpush2.bf16.msra.mxu1 %v3536_v33  ;;  %v415_v33 = vsub.s32 3, %v3741_v43 }
 0x16c   :  { %2496 = vmatprep.subr.bf16.mxu1 %v3541_v35 }
 0x16d   :  { %2456 = vmatpush2.bf16.msra.mxu0 %v3491_v26  ;;  %v3562_v26 = vld [vmem:[%s3886_s5 + $0x58] sm:$0xff]   ;;  %v416_v35 = vrot.slane %v3809_v41, %v415_v33 }
 0x16e   :  { %2457 = vmatprep.subr.bf16.mxu0 %v3496_v28  ;;  %v3564_v28 = vld [vmem:[%s3886_s5 + $0x50] sm:$0xff]  }
 0x16f   :  { %2497 = vmatpush2.bf16.msra.mxu1 %v3539_v37 }
 0x170   :  { %2498 = vmatprep.subr.bf16.mxu1 %v3544_v39 }
 0x171   :  { %2458 = vmatpush2.bf16.msra.mxu0 %v3494_v30  ;;  %v411_v30 = vsub.s32 2, %v3741_v43 }
 0x172   :  { %2459 = vmatprep.subr.bf16.mxu0 %v3499_v34 }
 0x173   :  { %2499 = vmatpush2.bf16.msra.mxu1 %v3542_v47  ;;  %v412_v34 = vrot.slane %v3809_v41, %v411_v30 }
 0x174   :  { %2500 = vmatprep.subr.bf16.mxu1 %v3547_v54 }
 0x175   :  { %2460 = vmatpush2.bf16.msra.mxu0 %v3497_v36 }
 0x176   :  { %2461 = vmatprep.subr.bf16.mxu0 %v3502_v38 }
 0x177   :  { %2501 = vmatpush2.bf16.msra.mxu1 %v3545_v31 }
 0x178   :  { %2502 = vmatprep.subr.bf16.mxu1 %v3550_v59  ;;  %v3567_v59 = vld [vmem:[%s3886_s5 + $0x8] sm:$0xff]  }
 0x179   :  { %2462 = vmatpush2.bf16.msra.mxu0 %v3500_v44 }
 0x17a   :  { %2463 = vmatprep.subr.bf16.mxu0 %v3505_v62 }
 0x17b   :  { %2503 = vmatpush2.bf16.msra.mxu1 %v3548_v45  ;;  %v3568_v45 = vld [vmem:[%s3886_s5 + $0x40] sm:$0xff]  }
 0x17c   :  { %2504 = vmatprep.subr.bf16.mxu1 %v3553_v4 }
 0x17d   :  { %2464 = vmatpush2.bf16.msra.mxu0 %v3503_v51 }
 0x17e   :  { %3040 = vmatprep.subr.bf16.mxu0 %v3554_v18 }
 0x17f   :  { %2505 = vmatpush2.bf16.msra.mxu1 %v3551_v6 }
 0x180   :  { %v1817_v56 = vpop.f32.mrf.mxu0 }
 0x181   :  { %v1858_v32 = vpop.f32.mrf.mxu1  ;;  %v1818_v53 = vadd.f32 %v1817_v56, %v1777_v55 }
 0x182   :  { %v1819_v57 = vpop.f32.mrf.mxu0 }
 0x183   :  { %v1860_v49 = vpop.f32.mrf.mxu1  ;;  %v1859_v60 = vadd.f32 %v1858_v32, %v1818_v53  ;;  %v1820_v61 = vadd.f32 %v1819_v57, %v1779_v58 }
 0x184   :  { %v1821_v63 = vpop.f32.mrf.mxu0 }
 0x185   :  { %v1862_v48 = vpop.f32.mrf.mxu1  ;;  %v1861_v0 = vadd.f32 %v1860_v49, %v1820_v61  ;;  %v2029_v46 = vmax.f32 %v1859_v60, 0.0  ;;  %v3566_v49 = vld [vmem:[%s3886_s5 + $0x48] sm:$0xff]   ;;  %v3569_v63 = vld [vmem:[%s3886_s5] sm:$0xff]  }
 0x186   :  { %v1822_v1 = vpop.f32.mrf.mxu0 }
 0x187   :  { %v1863_v2 = vpop.f32.mrf.mxu1  ;;  %v2030_v5 = vmax.f32 %v1861_v0, 0.0  ;;  %v2033_v7 = vpack.c.bf16 %v2029_v46, %v2029_v46  ;;  %v2101_v0 = vld [vmem:[#allocation7] sm:$0x3] }
 0x188   :  { %v2106_v46 = vrot.slane %v2101_v0, %v403_v40  ;;  %v2110_v1 = vrot.slane %v2101_v0, %v407_v42 }
 0x189   :  { %v2034_v50 = vpack.c.bf16 %v2030_v5, %v2030_v5 }
 0x18b   :  { %2465 = vmatprep.mubr.bf16.mxu0 %v2034_v50 }
 0x18c   :  { %2466 = vmatmul.mubr.bf16.vlgmr.msra.gmra.mxu0 %v2033_v7 }
 0x18d   :  { %3041 = vmatpush3.bf16.msra.mxu0 %v3555_v19 }
 0x18e   :  { %3042 = vmatprep.subr.bf16.mxu0 %v3556_v20 }
 0x191   :  { %3043 = vmatpush3.bf16.msra.mxu0 %v3557_v21 }
 0x192   :  { %3044 = vmatprep.subr.bf16.mxu0 %v3558_v22 }
 0x195   :  { %3045 = vmatpush3.bf16.msra.mxu0 %v3559_v23 }
 0x196   :  { %3046 = vmatprep.subr.bf16.mxu0 %v3560_v24 }
 0x199   :  { %3047 = vmatpush3.bf16.msra.mxu0 %v3561_v25 }
 0x19a   :  { %3048 = vmatprep.subr.bf16.mxu0 %v3562_v26 }
 0x19d   :  { %3049 = vmatpush3.bf16.msra.mxu0 %v3563_v27 }
 0x19e   :  { %3050 = vmatprep.subr.bf16.mxu0 %v3564_v28 }
 0x1a1   :  { %3051 = vmatpush3.bf16.msra.mxu0 %v3565_v29 }
 0x1a2   :  { %3052 = vmatprep.subr.bf16.mxu0 %v3566_v49 }
 0x1a5   :  { %3053 = vmatpush3.bf16.msra.mxu0 %v3567_v59 }
 0x1a6   :  { %3054 = vmatprep.subr.bf16.mxu0 %v3568_v45 }
 0x1a9   :  { %3055 = vmatpush3.bf16.msra.mxu0 %v3569_v63 }
 0x1c0   :  { %v1899_v8 = vpop.f32.mrf.mxu0 }
 0x1c1   :  { %v1940_v9 = vpop.f32.mrf.mxu1  ;;  %v1900_v36 = vadd.f32 %v1899_v8, %v412_v34 }
 0x1c2   :  { %v1901_v10 = vpop.f32.mrf.mxu0 }
 0x1c3   :  { %v1942_v11 = vpop.f32.mrf.mxu1  ;;  %v1902_v37 = vadd.f32 %v1901_v10, %v416_v35  ;;  %v1941_v38 = vadd.f32 %v1940_v9, %v1900_v36 }
 0x1c4   :  { %v1903_v12 = vpop.f32.mrf.mxu0 }
 0x1c5   :  { %v1944_v13 = vpop.f32.mrf.mxu1  ;;  %v1943_v47 = vadd.f32 %v1942_v11, %v1902_v37 }
 0x1c6   :  { %v1904_v14 = vpop.f32.mrf.mxu0 }
 0x1c7   :  { %v1945_v15 = vpop.f32.mrf.mxu1 }
 0x1c8   :  { %v3023_v15 = vld [vmem:[#allocation9] ss:$0 sm:$0xff] }
 0x200   :  { %v1981_v39 = vpop.f32.mrf.mxu0 }
 0x201   :  { %v2022_v44 = vpop.f32.mrf.mxu1  ;;  %v1982_v62 = vadd.f32 %v1981_v39, %v1941_v38 }
 0x202   :  { %v1983_v3 = vpop.f32.mrf.mxu0 }
 0x203   :  { %v2024_v16 = vpop.f32.mrf.mxu1  ;;  %v2023_v51 = vadd.f32 %v2022_v44, %v1982_v62  ;;  %v1984_v17 = vadd.f32 %v1983_v3, %v1943_v47 }
 0x204   :  { %v1985_v52 = vpop.f32.mrf.mxu0 }
 0x205   :  { %v2026_v54 = vpop.f32.mrf.mxu1  ;;  %v2025_v55 = vadd.f32 %v2024_v16, %v1984_v17  ;;  %v2031_v31 = vmax.f32 %v2023_v51, 0.0 }
 0x206   :  { %v1986_v56 = vpop.f32.mrf.mxu0 }
 0x207   :  { %v2027_v32 = vpop.f32.mrf.mxu1  ;;  %v2032_v58 = vmax.f32 %v2025_v55, 0.0  ;;  %v2035_v41 = vpack.c.bf16 %v2031_v31, %v2031_v31 }
 0x209   :  { %v2036_v53 = vpack.c.bf16 %v2032_v58, %v2032_v58 }
 0x20b   :  { %2506 = vmatprep.mubr.bf16.mxu1 %v2036_v53 }
 0x20c   :  { %2507 = vmatmul.mubr.bf16.vlgmr.msra.gmra.mxu1 %v2035_v41 }
 0x24c   :  { %v2467_v57 = vpop.f32.mrf.mxu0 }
 0x24d   :  { %v2468_v2 = vadd.f32 %v2467_v57, %v2106_v46 }
 0x24e   :  { %v2469_v60 = vpop.f32.mrf.mxu0 }
 0x24f   :  { %v2470_v5 = vadd.f32 %v2469_v60, %v2110_v1 }
 0x250   :  { %v2471_v61 = vpop.f32.mrf.mxu0 }
 0x252   :  { %v2472_v48 = vpop.f32.mrf.mxu0 }
 0x2cc   :  { %v2508_v4 = vpop.f32.mrf.mxu1 }
 0x2cd   :  { %v2509_v6 = vadd.f32 %v2508_v4, %v2468_v2 }
 0x2ce   :  { %v2510_v50 = vpop.f32.mrf.mxu1 }
 0x2cf   :  { %v2511_v7 = vadd.f32 %v2510_v50, %v2470_v5  ;;  %v2515_v8 = vmax.f32 %v2509_v6, 0.0 }
 0x2d0   :  { %v2512_v9 = vpop.f32.mrf.mxu1 }
 0x2d1   :  { %v2516_v10 = vmax.f32 %v2511_v7, 0.0  ;;  %v2517_v13 = vpack.c.bf16 %v2515_v8, %v2515_v8 }
 0x2d2   :  { %v2513_v11 = vpop.f32.mrf.mxu1 }
 0x2d3   :  { %v2518_v12 = vpack.c.bf16 %v2516_v10, %v2516_v10 }
 0x2d5   :  { %2686 = vmatprep.mubr.bf16.mxu0 %v2518_v12 }
 0x2d6   :  { %2687 = vmatmul.mubr.bf16.vlgmr.msra.gmra.mxu0 %v2517_v13 }
 0x396   :  { %v3056_v14 = vpop.f32.mrf.mxu0 }
 0x398   :  { %v3057_v40 = vpop.f32.mrf.mxu0 }
 0x399   :  { %v3058_v18 = vadd.f32 %v3057_v40, %v3056_v14 }
 0x39a   :  { %v3059_v43 = vpop.f32.mrf.mxu0 }
 0x39b   :  { %v2689_v42 = vadd.f32 %v3058_v18, %v3023_v15 }
 0x39c   :  { %v3060_v19 = vpop.f32.mrf.mxu0 }
 0x39d   :  { %2695 = vst.msk [vmem:[%s3888_s7] sm:$0x3] %vm2694_vm0, %v2689_v42 }
 0x39e   :  { %2700 = vsyncpa [#allocation3], 1 }
 0x39f   :  { %2701 = vsyncpa [#allocation5], 1 }
 0x3a0   :  { %2702 = vsyncpa [#allocation8], 1 }

// kernel: pointnet_densecls_forward.7
= control target key start
LH: loop header
LB: loop body
LE: loop exit
PB: predicated region body
PF: predicated region fallthrough
CT: control target
= control target key end

     0   :  { %s2340_s30 = smov 0   ;;  %s2342_s10 = smov 0   ;;  %s2876_s0 = inlined_call_operand.vmem [shape: bf16[2,64,64], index: 0, kind: input, shape index: {}]   ;;  %s2877_s1 = inlined_call_operand.vmem [shape: f32[2,1,512], index: 1, kind: input, shape index: {}]   ;;  %s2878_s2 = inlined_call_operand.vmem [shape: bf16[64,512], index: 2, kind: input, shape index: {}]   ;;  %s2879_s3 = inlined_call_operand.vmem [shape: bf16[512,256], index: 3, kind: input, shape index: {}]   ;;  %s2880_s4 = inlined_call_operand.vmem [shape: f32[1,256], index: 4, kind: input, shape index: {}]   ;;  %s2881_s5 = inlined_call_operand.vmem [shape: bf16[256,128], index: 5, kind: input, shape index: {}]   ;;  %s2882_s6 = inlined_call_operand.vmem [shape: f32[1,128], index: 6, kind: input, shape index: {}]   ;;  %s2883_s7 = inlined_call_operand.vmem [shape: bf16[128,128], index: 7, kind: input, shape index: {}]   ;;  %s2884_s8 = inlined_call_operand.vmem [shape: f32[1,128], index: 8, kind: input, shape index: {}]   ;;  %s2885_s9 = inlined_call_operand.vmem [shape: f32[2,64,128], index: 9, kind: output, shape index: {}]  }
   0x1   :  { %s2344_s11 = smov 0  }
   0x2 LB: > { %s31_s12 = sadd.s32 1, %s2283_s10  ;;  %p1856_p0 = scmp.ge.s32.totalorder %s2287_s11, 1  ;;  %s2287_s11 = sphi %s2344_s11, %s19_s11   ;;  %s2283_s10 = sphi %s2342_s10, %s2887_s10   ;;  %s2279_s30 = sphi %s2340_s30, %s2886_s30  }
   0x3   : > { %p33_p1 = scmp.ge.s32.totalorder %s31_s12, 2  ;;  %p317_p2 = scmp.lt.s32.totalorder %s2287_s11, 3 }
   0x5   : > { %s2889_s12 = smov (%p33_p1, %s31_s12), 0  ;;  %p318_p3 = pnand %p1856_p0, %p317_p2 }
   0x6   : > { %p366_p4 = scmp.lt.s32.totalorder (!%p318_p3), %s2279_s30, 1 }
   0x7   : > { %321 = sbr.rel (%p318_p3) target bundleno = 1195 (0x4ab), region = 56 }
   0xc   : > { %v2085_v0 = vld [vmem:[%s2878_s2 + $0x64] ss:$16 sps:$4 sm:$0xff]   ;;  %v2087_v1 = vld [vmem:[%s2878_s2 + $0x6c] ss:$16 sps:$4 sm:$0xff]   ;;  %v2289_v2 = vmov 0   ;;  %s2891_s30 = smov (!%p366_p4, %s2279_s30), 1 }
   0xd   : > { %581 = vmatprep.mubr.bf16.mxu0 %v2289_v2  ;;  %654 = vmatprep.mubr.bf16.mxu1 %v2289_v2  ;;  %v2089_v3 = vld [vmem:[%s2878_s2 + $0x60] ss:$16 sps:$4 sm:$0xff]   ;;  %v2090_v4 = vld [vmem:[%s2878_s2 + $0x68] ss:$16 sps:$4 sm:$0xff]   ;;  %v2091_v5 = vld [vmem:[%s2878_s2 + $0x44] ss:$16 sps:$4 sm:$0xff]  }
   0xe   : > { %557 = vmatprep.subr.bf16.mxu0 %v2085_v0  ;;  %630 = vmatprep.subr.bf16.mxu1 %v2087_v1  ;;  %v2093_v6 = vld [vmem:[%s2878_s2 + $0x4c] ss:$16 sps:$4 sm:$0xff]   ;;  %v2095_v7 = vld [vmem:[%s2878_s2 + $0x40] ss:$16 sps:$4 sm:$0xff]   ;;  %v2096_v8 = vld [vmem:[%s2878_s2 + $0x48] ss:$16 sps:$4 sm:$0xff]  }
   0xf   : > { %558 = vmatpush1.bf16.msra.mxu0 %v2089_v3  ;;  %631 = vmatpush1.bf16.msra.mxu1 %v2090_v4  ;;  %v2097_v9 = vld [vmem:[%s2878_s2 + $0x24] ss:$16 sps:$4 sm:$0xff]   ;;  %s1982_s14 = sshll.u32 %s2891_s30, 5  ;;  %v2099_v10 = vld [vmem:[%s2878_s2 + $0x2c] ss:$16 sps:$4 sm:$0xff]   ;;  %vm536_vm0 = vcmask 523264  }
  0x10   : > { %559 = vmatprep.subr.bf16.mxu0 %v2091_v5  ;;  %632 = vmatprep.subr.bf16.mxu1 %v2093_v6  ;;  %v2101_v11 = vld [vmem:[%s2878_s2 + $0x20] ss:$16 sps:$4 sm:$0xff]   ;;  %v2102_v12 = vld [vmem:[%s2878_s2 + $0x28] ss:$16 sps:$4 sm:$0xff]   ;;  %v2103_v13 = vld [vmem:[%s2878_s2 + $0x4] ss:$16 sps:$4 sm:$0xff]   ;;  %s2408_s27 = scalar_lea.vmem %s2876_s0, %s1982_s14 }
  0x11   : > { %v2105_v14 = vld [vmem:[%s2878_s2 + $0xc] ss:$16 sps:$4 sm:$0xff]   ;;  %v2107_v15 = vld [vmem:[%s2878_s2] ss:$16 sps:$4 sm:$0xff]   ;;  %v2108_v16 = vld [vmem:[%s2878_s2 + $0x8] ss:$16 sps:$4 sm:$0xff]  }
  0x12   : > { %v2109_v17 = vld [vmem:[%s2408_s27] sm:$0xff]   ;;  %v2115_v18 = vld [vmem:[%s2879_s3 + $0x74] ss:$8 sps:$4 sm:$0xff]   ;;  %v2113_v19 = vld [vmem:[%s2879_s3 + $0x70] ss:$8 sps:$4 sm:$0xff]   ;;  %s1859_s29 = sshll.u32 %s2891_s30, 2 }
  0x13   : > { %560 = vmatpush1.bf16.msra.mxu0 %v2095_v7  ;;  %633 = vmatpush1.bf16.msra.mxu1 %v2096_v8  ;;  %v2118_v20 = vld [vmem:[%s2879_s3 + $0x174] ss:$8 sps:$4 sm:$0xff]   ;;  %v2116_v21 = vld [vmem:[%s2879_s3 + $0x170] ss:$8 sps:$4 sm:$0xff]   ;;  %v2121_v22 = vld [vmem:[%s2879_s3 + $0x64] ss:$8 sps:$4 sm:$0xff]   ;;  %s378_s16 = scalar_lea.vmem %s2877_s1, %s1859_s29 }
  0x14   : > { %561 = vmatprep.subr.bf16.mxu0 %v2097_v9  ;;  %634 = vmatprep.subr.bf16.mxu1 %v2099_v10  ;;  %v2124_v23 = vld [vmem:[%s2879_s3 + $0x164] ss:$8 sps:$4 sm:$0xff]   ;;  %v2119_v24 = vld [vmem:[%s2879_s3 + $0x60] ss:$8 sps:$4 sm:$0xff]   ;;  %v2127_v26 = vld [vmem:[%s2879_s3 + $0x54] ss:$8 sps:$4 sm:$0xff]  }
  0x15   : > { %v2122_v25 = vld [vmem:[%s2879_s3 + $0x160] ss:$8 sps:$4 sm:$0xff]   ;;  %v2125_v28 = vld [vmem:[%s2879_s3 + $0x50] ss:$8 sps:$4 sm:$0xff]   ;;  %v2130_v29 = vld [vmem:[%s2879_s3 + $0x154] ss:$8 sps:$4 sm:$0xff]  }
  0x16   : > { %v2110_v27 = vld [vmem:[%s2408_s27 + $0x8] sm:$0xff]   ;;  %v2128_v30 = vld [vmem:[%s2879_s3 + $0x150] ss:$8 sps:$4 sm:$0xff]   ;;  %v2139_v35 = vld [vmem:[%s2879_s3 + $0x34] ss:$8 sps:$4 sm:$0xff]   ;;  %s1983_s17 = sshll.u32 %s2891_s30, 6 }
  0x17   : > { %562 = vmatpush1.bf16.msra.mxu0 %v2101_v11  ;;  %635 = vmatpush1.bf16.msra.mxu1 %v2102_v12  ;;  %v2133_v31 = vld [vmem:[%s2879_s3 + $0x44] ss:$8 sps:$4 sm:$0xff]   ;;  %v2131_v33 = vld [vmem:[%s2879_s3 + $0x40] ss:$8 sps:$4 sm:$0xff]   ;;  %v2111_v36 = vld [vmem:[%s2408_s27 + $0x10] sm:$0xff]   ;;  %s2842_s20 = scalar_lea.vmem %s2885_s9, %s1983_s17 }
  0x18   : > { %563 = vmatprep.subr.bf16.mxu0 %v2103_v13  ;;  %636 = vmatprep.subr.bf16.mxu1 %v2105_v14  ;;  %v2136_v32 = vld [vmem:[%s2879_s3 + $0x144] ss:$8 sps:$4 sm:$0xff]   ;;  %v2134_v34 = vld [vmem:[%s2879_s3 + $0x140] ss:$8 sps:$4 sm:$0xff]   ;;  %v2137_v37 = vld [vmem:[%s2879_s3 + $0x30] ss:$8 sps:$4 sm:$0xff]  }
  0x19   : > { %v2142_v38 = vld [vmem:[%s2879_s3 + $0x134] ss:$8 sps:$4 sm:$0xff]   ;;  %v2140_v39 = vld [vmem:[%s2879_s3 + $0x130] ss:$8 sps:$4 sm:$0xff]   ;;  %v2145_v40 = vld [vmem:[%s2879_s3 + $0x24] ss:$8 sps:$4 sm:$0xff]  }
  0x1a   : > { %v2148_v41 = vld [vmem:[%s2879_s3 + $0x124] ss:$8 sps:$4 sm:$0xff]   ;;  %v2143_v42 = vld [vmem:[%s2879_s3 + $0x20] ss:$8 sps:$4 sm:$0xff]   ;;  %v2151_v44 = vld [vmem:[%s2879_s3 + $0x14] ss:$8 sps:$4 sm:$0xff]  }
  0x1b   : > { %564 = vmatpush1.bf16.msra.mxu0 %v2107_v15  ;;  %637 = vmatpush1.bf16.msra.mxu1 %v2108_v16  ;;  %v2146_v43 = vld [vmem:[%s2879_s3 + $0x120] ss:$8 sps:$4 sm:$0xff]   ;;  %v2112_v45 = vld [vmem:[%s2408_s27 + $0x18] sm:$0xff]   ;;  %v2157_v49 = vld [vmem:[%s2879_s3 + $0x4] ss:$8 sps:$4 sm:$0xff]  }
  0x1c   : > { %1139 = vmatprep.subr.bf16.mxu0 %v2115_v18  ;;  %1212 = vmatprep.subr.bf16.mxu1 %v2118_v20  ;;  %v2154_v46 = vld [vmem:[%s2879_s3 + $0x114] ss:$8 sps:$4 sm:$0xff]   ;;  %v2149_v47 = vld [vmem:[%s2879_s3 + $0x10] ss:$8 sps:$4 sm:$0xff]   ;;  %v2160_v50 = vld [vmem:[%s2879_s3 + $0x104] ss:$8 sps:$4 sm:$0xff]  }
  0x1d   : > { %v2152_v48 = vld [vmem:[%s2879_s3 + $0x110] ss:$8 sps:$4 sm:$0xff]   ;;  %v2155_v51 = vld [vmem:[%s2879_s3] ss:$8 sps:$4 sm:$0xff]   ;;  %v2163_v53 = vld [vmem:[%s2879_s3 + $0xf4] ss:$8 sps:$4 sm:$0xff]  }
  0x1e   : > { %1882 = vmatmul.mubr.msk.bf16.vlgmr.msra.gmra.mxu0 %vm536_vm0, %v2109_v17  ;;  %1886 = vmatmul.mubr.msk.bf16.vlgmr.msra.gmra.mxu1 %vm536_vm0, %v2109_v17  ;;  %v2158_v52 = vld [vmem:[%s2879_s3 + $0x100] ss:$8 sps:$4 sm:$0xff]   ;;  %v2161_v54 = vld [vmem:[%s2879_s3 + $0xf0] ss:$8 sps:$4 sm:$0xff]   ;;  %v2166_v55 = vld [vmem:[%s2879_s3 + $0x1f4] ss:$8 sps:$4 sm:$0xff]  }
  0x1f   : > { %591 = vmatprep.mubr.bf16.mxu0 %v2289_v2  ;;  %664 = vmatprep.mubr.bf16.mxu1 %v2289_v2  ;;  %v2164_v56 = vld [vmem:[%s2879_s3 + $0x1f0] ss:$8 sps:$4 sm:$0xff]   ;;  %v2169_v57 = vld [vmem:[%s2879_s3 + $0xe4] ss:$8 sps:$4 sm:$0xff]   ;;  %v2167_v59 = vld [vmem:[%s2879_s3 + $0xe0] ss:$8 sps:$4 sm:$0xff]  }
  0x20   : > { %1140 = vmatpush1.bf16.msra.mxu0 %v2113_v19  ;;  %1213 = vmatpush1.bf16.msra.mxu1 %v2116_v21  ;;  %v2172_v58 = vld [vmem:[%s2879_s3 + $0x1e4] ss:$8 sps:$4 sm:$0xff]   ;;  %v2170_v60 = vld [vmem:[%s2879_s3 + $0x1e0] ss:$8 sps:$4 sm:$0xff]   ;;  %v2175_v61 = vld [vmem:[%s2879_s3 + $0xd4] ss:$8 sps:$4 sm:$0xff]  }
  0x21   : > { %1141 = vmatprep.subr.bf16.mxu0 %v2121_v22  ;;  %1214 = vmatprep.subr.bf16.mxu1 %v2124_v23  ;;  %v2178_v62 = vld [vmem:[%s2879_s3 + $0x1d4] ss:$8 sps:$4 sm:$0xff]   ;;  %v2173_v63 = vld [vmem:[%s2879_s3 + $0xd0] ss:$8 sps:$4 sm:$0xff]   ;;  %v2181_v1 = vld [vmem:[%s2879_s3 + $0xc4] ss:$8 sps:$4 sm:$0xff]   ;;  %v416_v22 = vlaneseq }
  0x22   : > { %v2176_v0 = vld [vmem:[%s2879_s3 + $0x1d0] ss:$8 sps:$4 sm:$0xff]   ;;  %v2179_v3 = vld [vmem:[%s2879_s3 + $0xc0] ss:$8 sps:$4 sm:$0xff]   ;;  %v2187_v5 = vld [vmem:[%s2879_s3 + $0xb4] ss:$8 sps:$4 sm:$0xff]  }
  0x23   : > { %v2182_v4 = vld [vmem:[%s2879_s3 + $0x1c0] ss:$8 sps:$4 sm:$0xff]   ;;  %v2190_v6 = vld [vmem:[%s2879_s3 + $0x1b4] ss:$8 sps:$4 sm:$0xff]   ;;  %v2185_v7 = vld [vmem:[%s2879_s3 + $0xb0] ss:$8 sps:$4 sm:$0xff]  }
  0x24   : > { %1142 = vmatpush1.bf16.msra.mxu0 %v2119_v24  ;;  %1215 = vmatpush1.bf16.msra.mxu1 %v2122_v25  ;;  %v2188_v8 = vld [vmem:[%s2879_s3 + $0x1b0] ss:$8 sps:$4 sm:$0xff]   ;;  %v2193_v9 = vld [vmem:[%s2879_s3 + $0xa4] ss:$8 sps:$4 sm:$0xff]   ;;  %v2191_v11 = vld [vmem:[%s2879_s3 + $0xa0] ss:$8 sps:$4 sm:$0xff]  }
  0x25   : > { %1143 = vmatprep.subr.bf16.mxu0 %v2127_v26  ;;  %1216 = vmatprep.subr.bf16.mxu1 %v2130_v29  ;;  %v2196_v10 = vld [vmem:[%s2879_s3 + $0x1a4] ss:$8 sps:$4 sm:$0xff]   ;;  %v2194_v12 = vld [vmem:[%s2879_s3 + $0x1a0] ss:$8 sps:$4 sm:$0xff]   ;;  %v2199_v13 = vld [vmem:[%s2879_s3 + $0x94] ss:$8 sps:$4 sm:$0xff]  }
  0x26   : > { %1883 = vmatmul.mubr.msk.bf16.gmra.mxu0 %vm536_vm0, %v2110_v27  ;;  %1887 = vmatmul.mubr.msk.bf16.gmra.mxu1 %vm536_vm0, %v2110_v27  ;;  %v2202_v14 = vld [vmem:[%s2879_s3 + $0x194] ss:$8 sps:$4 sm:$0xff]   ;;  %v2197_v15 = vld [vmem:[%s2879_s3 + $0x90] ss:$8 sps:$4 sm:$0xff]   ;;  %v2205_v17 = vld [vmem:[%s2879_s3 + $0x84] ss:$8 sps:$4 sm:$0xff]  }
  0x27   : > { %601 = vmatprep.mubr.bf16.mxu0 %v2289_v2  ;;  %674 = vmatprep.mubr.bf16.mxu1 %v2289_v2  ;;  %v2200_v16 = vld [vmem:[%s2879_s3 + $0x190] ss:$8 sps:$4 sm:$0xff]   ;;  %v2208_v18 = vld [vmem:[%s2879_s3 + $0x184] ss:$8 sps:$4 sm:$0xff]   ;;  %v2203_v19 = vld [vmem:[%s2879_s3 + $0x80] ss:$8 sps:$4 sm:$0xff]  }
  0x28   : > { %1144 = vmatpush1.bf16.msra.mxu0 %v2125_v28  ;;  %1217 = vmatpush1.bf16.msra.mxu1 %v2128_v30  ;;  %v2206_v20 = vld [vmem:[%s2879_s3 + $0x180] ss:$8 sps:$4 sm:$0xff]   ;;  %v2209_v21 = vld [vmem:[%s2881_s5 + $0x78] sm:$0xff]   ;;  %v2630_v23 = vshrl.u32 %v416_v22, 7 }
  0x29   : > { %1145 = vmatprep.subr.bf16.mxu0 %v2133_v31  ;;  %1218 = vmatprep.subr.bf16.mxu1 %v2136_v32  ;;  %v414_v28 = vld [vmem:[%s378_s16] sm:$0xf] }
  0x2a   : > { %v422_v24 = vsub.s32 1, %v2630_v23  ;;  %v430_v25 = vsub.s32 3, %v2630_v23  ;;  %v418_v26 = vsub.s32 0, %v2630_v23  ;;  %v426_v27 = vsub.s32 2, %v2630_v23 }
  0x2c   : > { %1146 = vmatpush1.bf16.msra.mxu0 %v2131_v33  ;;  %1219 = vmatpush1.bf16.msra.mxu1 %v2134_v34  ;;  %v2641_v31 = vrot.slane %v414_v28, %v422_v24  ;;  %v2643_v32 = vrot.slane %v414_v28, %v430_v25  ;;  %v2647_v33 = vrot.slane %v414_v28, %v418_v26 }
  0x2d   : > { %1147 = vmatprep.subr.bf16.mxu0 %v2139_v35  ;;  %1220 = vmatprep.subr.bf16.mxu1 %v2142_v38  ;;  %v2649_v34 = vrot.slane %v414_v28, %v426_v27 }
  0x2e   : > { %1884 = vmatmul.mubr.msk.bf16.gmra.mxu0 %vm536_vm0, %v2111_v36  ;;  %1888 = vmatmul.mubr.msk.bf16.gmra.mxu1 %vm536_vm0, %v2111_v36 }
  0x2f   : > { %611 = vmatprep.mubr.bf16.mxu0 %v2289_v2  ;;  %684 = vmatprep.mubr.bf16.mxu1 %v2289_v2  ;;  %v2184_v2 = vld [vmem:[%s2879_s3 + $0x1c4] ss:$8 sps:$4 sm:$0xff]  }
  0x30   : > { %1148 = vmatpush1.bf16.msra.mxu0 %v2137_v37  ;;  %1221 = vmatpush1.bf16.msra.mxu1 %v2140_v39 }
  0x31   : > { %1149 = vmatprep.subr.bf16.mxu0 %v2145_v40  ;;  %1222 = vmatprep.subr.bf16.mxu1 %v2148_v41 }
  0x34   : > { %1150 = vmatpush1.bf16.msra.mxu0 %v2143_v42  ;;  %1223 = vmatpush1.bf16.msra.mxu1 %v2146_v43 }
  0x35   : > { %1151 = vmatprep.subr.bf16.mxu0 %v2151_v44  ;;  %1224 = vmatprep.subr.bf16.mxu1 %v2154_v46 }
  0x36   : > { %1885 = vmatmul.mubr.msk.bf16.gmra.mxu0 %vm536_vm0, %v2112_v45  ;;  %1889 = vmatmul.mubr.msk.bf16.gmra.mxu1 %vm536_vm0, %v2112_v45 }
  0x38   : > { %1152 = vmatpush1.bf16.msra.mxu0 %v2149_v47  ;;  %1225 = vmatpush1.bf16.msra.mxu1 %v2152_v48 }
  0x39   : > { %1153 = vmatprep.subr.bf16.mxu0 %v2157_v49  ;;  %1226 = vmatprep.subr.bf16.mxu1 %v2160_v50 }
  0x3c   : > { %1154 = vmatpush1.bf16.msra.mxu0 %v2155_v51  ;;  %1227 = vmatpush1.bf16.msra.mxu1 %v2158_v52 }
  0x3d   : > { %1155 = vmatprep.subr.bf16.mxu0 %v2163_v53  ;;  %1228 = vmatprep.subr.bf16.mxu1 %v2166_v55 }
  0x40   : > { %1156 = vmatpush2.bf16.msra.mxu0 %v2161_v54  ;;  %1229 = vmatpush2.bf16.msra.mxu1 %v2164_v56 }
  0x41   : > { %1157 = vmatprep.subr.bf16.mxu0 %v2169_v57  ;;  %1230 = vmatprep.subr.bf16.mxu1 %v2172_v58 }
  0x44   : > { %1158 = vmatpush2.bf16.msra.mxu0 %v2167_v59  ;;  %1231 = vmatpush2.bf16.msra.mxu1 %v2170_v60 }
  0x45   : > { %1159 = vmatprep.subr.bf16.mxu0 %v2175_v61  ;;  %1232 = vmatprep.subr.bf16.mxu1 %v2178_v62 }
  0x48   : > { %1160 = vmatpush2.bf16.msra.mxu0 %v2173_v63  ;;  %1233 = vmatpush2.bf16.msra.mxu1 %v2176_v0  ;;  %v2210_v63 = vld [vmem:[%s2881_s5 + $0x38] sm:$0xff]  }
  0x49   : > { %1161 = vmatprep.subr.bf16.mxu0 %v2181_v1  ;;  %1234 = vmatprep.subr.bf16.mxu1 %v2184_v2 }
  0x4c   : > { %1162 = vmatpush2.bf16.msra.mxu0 %v2179_v3  ;;  %1235 = vmatpush2.bf16.msra.mxu1 %v2182_v4 }
  0x4d   : > { %1163 = vmatprep.subr.bf16.mxu0 %v2187_v5  ;;  %1236 = vmatprep.subr.bf16.mxu1 %v2190_v6  ;;  %v2211_v5 = vld [vmem:[%s2881_s5 + $0x70] sm:$0xff]  }
  0x50   : > { %1164 = vmatpush2.bf16.msra.mxu0 %v2185_v7  ;;  %1237 = vmatpush2.bf16.msra.mxu1 %v2188_v8 }
  0x51   : > { %1165 = vmatprep.subr.bf16.mxu0 %v2193_v9  ;;  %1238 = vmatprep.subr.bf16.mxu1 %v2196_v10 }
  0x54   : > { %1166 = vmatpush2.bf16.msra.mxu0 %v2191_v11  ;;  %1239 = vmatpush2.bf16.msra.mxu1 %v2194_v12 }
  0x55   : > { %1167 = vmatprep.subr.bf16.mxu0 %v2199_v13  ;;  %1240 = vmatprep.subr.bf16.mxu1 %v2202_v14 }
  0x58   : > { %1168 = vmatpush2.bf16.msra.mxu0 %v2197_v15  ;;  %1241 = vmatpush2.bf16.msra.mxu1 %v2200_v16  ;;  %v2212_v15 = vld [vmem:[%s2881_s5 + $0x30] sm:$0xff]  }
  0x59   : > { %1169 = vmatprep.subr.bf16.mxu0 %v2205_v17  ;;  %1242 = vmatprep.subr.bf16.mxu1 %v2208_v18 }
  0x5c   : > { %1170 = vmatpush2.bf16.msra.mxu0 %v2203_v19  ;;  %1243 = vmatpush2.bf16.msra.mxu1 %v2206_v20  ;;  %v2213_v20 = vld [vmem:[%s2881_s5 + $0x68] sm:$0xff]  }
  0x5d   : > { %1984 = vmatprep.subr.bf16.mxu0 %v2209_v21 }
  0xde   : > { %v583_v29 = vpop.f32.mrf.mxu0  ;;  %v656_v30 = vpop.f32.mrf.mxu1 }
  0xdf   : > { %v584_v43 = vadd.f32 %v583_v29, %v2647_v33  ;;  %v657_v44 = vadd.f32 %v656_v30, %v2649_v34 }
  0xe0   : > { %v585_v35 = vpop.f32.mrf.mxu0  ;;  %v658_v36 = vpop.f32.mrf.mxu1 }
  0xe1   : > { %v586_v39 = vadd.f32 %v585_v35, %v2641_v31  ;;  %v659_v40 = vadd.f32 %v658_v36, %v2643_v32  ;;  %v695_v57 = vmax.f32 %v584_v43, 0.0  ;;  %v697_v58 = vmax.f32 %v657_v44, 0.0  ;;  %v2215_v44 = vld [vmem:[%s2881_s5 + $0x60] sm:$0xff]  }
  0xe2   : > { %v587_v37 = vpop.f32.mrf.mxu0  ;;  %v660_v38 = vpop.f32.mrf.mxu1 }
  0xe3   : > { %v588_v41 = vadd.f32 %v587_v37, %v2647_v33  ;;  %v661_v42 = vadd.f32 %v660_v38, %v2649_v34  ;;  %v696_v53 = vmax.f32 %v586_v39, 0.0  ;;  %v698_v54 = vmax.f32 %v659_v40, 0.0  ;;  %v2214_v38 = vld [vmem:[%s2881_s5 + $0x28] sm:$0xff]  }
  0xe4   : > { %v589_v45 = vpop.f32.mrf.mxu0  ;;  %v662_v46 = vpop.f32.mrf.mxu1 }
  0xe5   : > { %v590_v47 = vadd.f32 %v589_v45, %v2641_v31  ;;  %v663_v48 = vadd.f32 %v662_v46, %v2643_v32  ;;  %v699_v49 = vmax.f32 %v588_v41, 0.0  ;;  %v701_v50 = vmax.f32 %v661_v42, 0.0 }
  0xe6   : > { %v593_v51 = vpop.f32.mrf.mxu0  ;;  %v666_v52 = vpop.f32.mrf.mxu1 }
  0xe7   : > { %v700_v55 = vmax.f32 %v590_v47, 0.0  ;;  %v702_v56 = vmax.f32 %v663_v48, 0.0  ;;  %v727_v0 = vpack.c.bf16 %v699_v49, %v695_v57  ;;  %v729_v1 = vpack.c.bf16 %v701_v50, %v697_v58 }
  0xe8   : > { %v595_v59 = vpop.f32.mrf.mxu0  ;;  %v668_v60 = vpop.f32.mrf.mxu1  ;;  %v594_v9 = vadd.f32 %v593_v51, %v2647_v33  ;;  %v667_v10 = vadd.f32 %v666_v52, %v2649_v34 }
  0xe9   : > { %v728_v61 = vpack.c.bf16 %v700_v55, %v696_v53  ;;  %v730_v62 = vpack.c.bf16 %v702_v56, %v698_v54  ;;  %v596_v2 = vadd.f32 %v595_v59, %v2641_v31  ;;  %v669_v6 = vadd.f32 %v668_v60, %v2643_v32  ;;  %v2216_v54 = vld [vmem:[%s2881_s5 + $0x20] sm:$0xff]   ;;  %v2217_v59 = vld [vmem:[%s2881_s5 + $0x58] sm:$0xff]  }
  0xea   : > { %v597_v3 = vpop.f32.mrf.mxu0  ;;  %v670_v4 = vpop.f32.mrf.mxu1  ;;  %v703_v28 = vmax.f32 %v594_v9, 0.0  ;;  %v705_v29 = vmax.f32 %v667_v10, 0.0 }
  0xeb   : > { %v598_v7 = vadd.f32 %v597_v3, %v2647_v33  ;;  %v671_v8 = vadd.f32 %v670_v4, %v2649_v34  ;;  %1171 = vmatprep.mubr.bf16.mxu0 %v728_v61  ;;  %1244 = vmatprep.mubr.bf16.mxu1 %v730_v62  ;;  %v704_v21 = vmax.f32 %v596_v2, 0.0  ;;  %v706_v22 = vmax.f32 %v669_v6, 0.0 }
  0xec   : > { %v599_v11 = vpop.f32.mrf.mxu0  ;;  %v672_v12 = vpop.f32.mrf.mxu1  ;;  %1172 = vmatmul.mubr.bf16.vlgmr.msra.gmra.mxu0 %v727_v0  ;;  %1245 = vmatmul.mubr.bf16.vlgmr.msra.gmra.mxu1 %v729_v1 }
  0xed   : > { %v600_v13 = vadd.f32 %v599_v11, %v2641_v31  ;;  %v673_v14 = vadd.f32 %v672_v12, %v2643_v32  ;;  %1985 = vmatpush3.bf16.msra.mxu0 %v2210_v63  ;;  %v707_v16 = vmax.f32 %v598_v7, 0.0  ;;  %v709_v17 = vmax.f32 %v671_v8, 0.0 }
  0xee   : > { %v603_v18 = vpop.f32.mrf.mxu0  ;;  %v676_v19 = vpop.f32.mrf.mxu1  ;;  %1986 = vmatprep.subr.bf16.mxu0 %v2211_v5 }
  0xef   : > { %v708_v25 = vmax.f32 %v600_v13, 0.0  ;;  %v710_v27 = vmax.f32 %v673_v14, 0.0  ;;  %v731_v39 = vpack.c.bf16 %v707_v16, %v703_v28  ;;  %v733_v40 = vpack.c.bf16 %v709_v17, %v705_v29 }
  0xf0   : > { %v605_v30 = vpop.f32.mrf.mxu0  ;;  %v678_v35 = vpop.f32.mrf.mxu1  ;;  %v604_v48 = vadd.f32 %v603_v18, %v2647_v33  ;;  %v677_v49 = vadd.f32 %v676_v19, %v2649_v34 }
  0xf1   : > { %v732_v36 = vpack.c.bf16 %v708_v25, %v704_v21  ;;  %v734_v37 = vpack.c.bf16 %v710_v27, %v706_v22  ;;  %1987 = vmatpush3.bf16.msra.mxu0 %v2212_v15  ;;  %v606_v41 = vadd.f32 %v605_v30, %v2641_v31  ;;  %v679_v45 = vadd.f32 %v678_v35, %v2643_v32 }
  0xf2   : > { %v607_v42 = vpop.f32.mrf.mxu0  ;;  %v680_v43 = vpop.f32.mrf.mxu1  ;;  %1988 = vmatprep.subr.bf16.mxu0 %v2213_v20  ;;  %v711_v0 = vmax.f32 %v604_v48, 0.0  ;;  %v713_v1 = vmax.f32 %v677_v49, 0.0 }
  0xf3   : > { %v608_v46 = vadd.f32 %v607_v42, %v2647_v33  ;;  %v681_v47 = vadd.f32 %v680_v43, %v2649_v34  ;;  %1181 = vmatprep.mubr.bf16.mxu0 %v732_v36  ;;  %1254 = vmatprep.mubr.bf16.mxu1 %v734_v37  ;;  %v712_v60 = vmax.f32 %v606_v41, 0.0  ;;  %v714_v61 = vmax.f32 %v679_v45, 0.0  ;;  %v2220_v37 = vld [vmem:[%s2881_s5 + $0x10] sm:$0xff]   ;;  %v2224_v41 = vld [vmem:[%s2881_s5] sm:$0xff]   ;;  %v2225_v42 = vld [vmem:[%s2883_s7 + $0x38] sm:$0xff]  }
  0xf4   : > { %v609_v50 = vpop.f32.mrf.mxu0  ;;  %v682_v51 = vpop.f32.mrf.mxu1  ;;  %1182 = vmatmul.mubr.bf16.gmra.mxu0 %v731_v39  ;;  %1255 = vmatmul.mubr.bf16.gmra.mxu1 %v733_v40  ;;  %v2222_v39 = vld [vmem:[%s2881_s5 + $0x8] sm:$0xff]   ;;  %v2223_v40 = vld [vmem:[%s2881_s5 + $0x40] sm:$0xff]   ;;  %v2226_v43 = vld [vmem:[%s2883_s7 + $0x30] sm:$0xff]  }
  0xf5   : > { %v610_v52 = vadd.f32 %v609_v50, %v2641_v31  ;;  %v683_v53 = vadd.f32 %v682_v51, %v2643_v32  ;;  %1989 = vmatpush3.bf16.msra.mxu0 %v2214_v38  ;;  %v715_v55 = vmax.f32 %v608_v46, 0.0  ;;  %v717_v56 = vmax.f32 %v681_v47, 0.0  ;;  %v2221_v38 = vld [vmem:[%s2881_s5 + $0x48] sm:$0xff]   ;;  %2036 = vmatprep.subr.bf16.mxu1 %v2225_v42  ;;  %v807_v45 = vld [vmem:[%s2880_s4] sm:$0x3] }
  0xf6   : > { %v613_v57 = vpop.f32.mrf.mxu0  ;;  %v686_v58 = vpop.f32.mrf.mxu1  ;;  %1990 = vmatprep.subr.bf16.mxu0 %v2215_v44  ;;  %2037 = vmatpush3.bf16.msra.mxu1 %v2225_v42  ;;  %v2227_v44 = vld [vmem:[%s2883_s7 + $0x28] sm:$0xff]   ;;  %v2742_v46 = vrot.slane %v807_v45, %v422_v24  ;;  %v2746_v47 = vrot.slane %v807_v45, %v418_v26 }
  0xf7   : > { %v716_v62 = vmax.f32 %v610_v52, 0.0  ;;  %v718_v63 = vmax.f32 %v683_v53, 0.0  ;;  %v735_v6 = vpack.c.bf16 %v715_v55, %v711_v0  ;;  %v737_v7 = vpack.c.bf16 %v717_v56, %v713_v1  ;;  %2038 = vmatprep.subr.bf16.mxu1 %v2226_v43 }
  0xf8   : > { %v615_v2 = vpop.f32.mrf.mxu0  ;;  %v688_v3 = vpop.f32.mrf.mxu1  ;;  %v614_v14 = vadd.f32 %v613_v57, %v2647_v33  ;;  %v687_v15 = vadd.f32 %v686_v58, %v2649_v34 }
  0xf9   : > { %v736_v4 = vpack.c.bf16 %v716_v62, %v712_v60  ;;  %v738_v5 = vpack.c.bf16 %v718_v63, %v714_v61  ;;  %1991 = vmatpush3.bf16.msra.mxu0 %v2216_v54  ;;  %v616_v8 = vadd.f32 %v615_v2, %v2641_v31  ;;  %v689_v11 = vadd.f32 %v688_v3, %v2643_v32 }
  0xfa   : > { %v617_v9 = vpop.f32.mrf.mxu0  ;;  %v690_v10 = vpop.f32.mrf.mxu1  ;;  %1992 = vmatprep.subr.bf16.mxu0 %v2217_v59  ;;  %v719_v29 = vmax.f32 %v614_v14, 0.0  ;;  %v721_v30 = vmax.f32 %v687_v15, 0.0  ;;  %2039 = vmatpush3.bf16.msra.mxu1 %v2226_v43 }
  0xfb   : > { %v618_v12 = vadd.f32 %v617_v9, %v2647_v33  ;;  %v691_v13 = vadd.f32 %v690_v10, %v2649_v34  ;;  %1191 = vmatprep.mubr.bf16.mxu0 %v736_v4  ;;  %1264 = vmatprep.mubr.bf16.mxu1 %v738_v5  ;;  %v720_v22 = vmax.f32 %v616_v8, 0.0  ;;  %v722_v25 = vmax.f32 %v689_v11, 0.0 }
  0xfc   : > { %v619_v16 = vpop.f32.mrf.mxu0  ;;  %v692_v17 = vpop.f32.mrf.mxu1  ;;  %1192 = vmatmul.mubr.bf16.gmra.mxu0 %v735_v6  ;;  %1265 = vmatmul.mubr.bf16.gmra.mxu1 %v737_v7 }
  0xfd   : > { %v620_v18 = vadd.f32 %v619_v16, %v2641_v31  ;;  %v693_v19 = vadd.f32 %v692_v17, %v2643_v32  ;;  %v723_v20 = vmax.f32 %v618_v12, 0.0  ;;  %v725_v21 = vmax.f32 %v691_v13, 0.0  ;;  %v2218_v31 = vld [vmem:[%s2881_s5 + $0x18] sm:$0xff]   ;;  %v2219_v32 = vld [vmem:[%s2881_s5 + $0x50] sm:$0xff]   ;;  %2040 = vmatprep.subr.bf16.mxu1 %v2227_v44 }
  0xfe   : > { %1993 = vmatpush3.bf16.msra.mxu0 %v2218_v31  ;;  %2041 = vmatpush3.bf16.msra.mxu1 %v2227_v44 }
  0xff   : > { %v724_v27 = vmax.f32 %v620_v18, 0.0  ;;  %v726_v28 = vmax.f32 %v693_v19, 0.0  ;;  %v739_v36 = vpack.c.bf16 %v723_v20, %v719_v29  ;;  %v741_v34 = vpack.c.bf16 %v725_v21, %v721_v30  ;;  %1994 = vmatprep.subr.bf16.mxu0 %v2219_v32 }
 0x101   : > { %v740_v35 = vpack.c.bf16 %v724_v27, %v720_v22  ;;  %v742_v33 = vpack.c.bf16 %v726_v28, %v722_v25 }
 0x102   : > { %1995 = vmatpush3.bf16.msra.mxu0 %v2220_v37 }
 0x103   : > { %1201 = vmatprep.mubr.bf16.mxu0 %v740_v35  ;;  %1274 = vmatprep.mubr.bf16.mxu1 %v742_v33 }
 0x104   : > { %1202 = vmatmul.mubr.bf16.gmra.mxu0 %v739_v36  ;;  %1275 = vmatmul.mubr.bf16.gmra.mxu1 %v741_v34 }
 0x105   : > { %1996 = vmatprep.subr.bf16.mxu0 %v2221_v38 }
 0x106   : > { %1997 = vmatpush3.bf16.msra.mxu0 %v2222_v39 }
 0x107   : > { %1998 = vmatprep.subr.bf16.mxu0 %v2223_v40 }
 0x10a   : > { %1999 = vmatpush3.bf16.msra.mxu0 %v2224_v41 }
 0x1ac   : > { %v1173_v48 = vpop.f32.mrf.mxu0  ;;  %v1246_v49 = vpop.f32.mrf.mxu1 }
 0x1ad   : > { %v1174_v53 = vadd.f32 %v1173_v48, %v2746_v47 }
 0x1ae   : > { %v1175_v50 = vpop.f32.mrf.mxu0  ;;  %v1248_v51 = vpop.f32.mrf.mxu1 }
 0x1af   : > { %v1176_v52 = vadd.f32 %v1175_v50, %v2742_v46  ;;  %v1247_v26 = vadd.f32 %v1246_v49, %v1174_v53 }
 0x1b0   : > { %v1177_v54 = vpop.f32.mrf.mxu0  ;;  %v1250_v55 = vpop.f32.mrf.mxu1 }
 0x1b1   : > { %v1178_v56 = vadd.f32 %v1177_v54, %v2746_v47  ;;  %v1249_v24 = vadd.f32 %v1248_v51, %v1176_v52  ;;  %v1285_v5 = vmax.f32 %v1247_v26, 0.0 }
 0x1b2   : > { %v1179_v57 = vpop.f32.mrf.mxu0  ;;  %v1252_v58 = vpop.f32.mrf.mxu1 }
 0x1b3   : > { %v1251_v59 = vadd.f32 %v1250_v55, %v1178_v56  ;;  %v1180_v23 = vadd.f32 %v1179_v57, %v2742_v46  ;;  %v1286_v2 = vmax.f32 %v1249_v24, 0.0 }
 0x1b4   : > { %v1183_v60 = vpop.f32.mrf.mxu0  ;;  %v1256_v61 = vpop.f32.mrf.mxu1 }
 0x1b5   : > { %v1253_v62 = vadd.f32 %v1252_v58, %v1180_v23  ;;  %v1287_v63 = vmax.f32 %v1251_v59, 0.0  ;;  %v1184_v6 = vadd.f32 %v1183_v60, %v2746_v47 }
 0x1b6   : > { %v1185_v0 = vpop.f32.mrf.mxu0  ;;  %v1258_v1 = vpop.f32.mrf.mxu1 }
 0x1b7   : > { %v1288_v3 = vmax.f32 %v1253_v62, 0.0  ;;  %v1186_v4 = vadd.f32 %v1185_v0, %v2742_v46  ;;  %v1301_v11 = vpack.c.bf16 %v1287_v63, %v1285_v5  ;;  %v1257_v17 = vadd.f32 %v1256_v61, %v1184_v6 }
 0x1b8   : > { %v1187_v7 = vpop.f32.mrf.mxu0  ;;  %v1260_v8 = vpop.f32.mrf.mxu1 }
 0x1b9   : > { %v1302_v9 = vpack.c.bf16 %v1288_v3, %v1286_v2  ;;  %v1188_v10 = vadd.f32 %v1187_v7, %v2746_v47  ;;  %v1259_v14 = vadd.f32 %v1258_v1, %v1186_v4  ;;  %v1289_v30 = vmax.f32 %v1257_v17, 0.0  ;;  %v2230_v7 = vld [vmem:[%s2883_s7 + $0x10] sm:$0xff]  }
 0x1ba   : > { %v1189_v12 = vpop.f32.mrf.mxu0  ;;  %v1262_v13 = vpop.f32.mrf.mxu1 }
 0x1bb   : > { %v1261_v15 = vadd.f32 %v1260_v8, %v1188_v10  ;;  %v1190_v16 = vadd.f32 %v1189_v12, %v2742_v46  ;;  %1476 = vmatprep.mubr.bf16.mxu0 %v1302_v9  ;;  %v1290_v27 = vmax.f32 %v1259_v14, 0.0  ;;  %v2231_v8 = vld [vmem:[%s2883_s7 + $0x8] sm:$0xff]   ;;  %v2232_v9 = vld [vmem:[%s2883_s7] sm:$0xff]  }
 0x1bc   : > { %v1193_v18 = vpop.f32.mrf.mxu0  ;;  %v1266_v19 = vpop.f32.mrf.mxu1  ;;  %1477 = vmatmul.mubr.bf16.vlgmr.msra.gmra.mxu0 %v1301_v11 }
 0x1bd   : > { %v1263_v20 = vadd.f32 %v1262_v13, %v1190_v16  ;;  %v1291_v21 = vmax.f32 %v1261_v15, 0.0  ;;  %v1194_v35 = vadd.f32 %v1193_v18, %v2746_v47  ;;  %v1954_v13 = vld [vmem:[%s2882_s6] ss:$0 sm:$0xff] }
 0x1be   : > { %v1195_v22 = vpop.f32.mrf.mxu0  ;;  %v1268_v25 = vpop.f32.mrf.mxu1 }
 0x1bf   : > { %v1292_v28 = vmax.f32 %v1263_v20, 0.0  ;;  %v1196_v29 = vadd.f32 %v1195_v22, %v2742_v46  ;;  %v1303_v32 = vpack.c.bf16 %v1291_v21, %v1289_v30  ;;  %v1267_v42 = vadd.f32 %v1266_v19, %v1194_v35 }
 0x1c0   : > { %v1197_v33 = vpop.f32.mrf.mxu0  ;;  %v1270_v36 = vpop.f32.mrf.mxu1 }
 0x1c1   : > { %v1304_v34 = vpack.c.bf16 %v1292_v28, %v1290_v27  ;;  %v1198_v31 = vadd.f32 %v1197_v33, %v2746_v47  ;;  %v1269_v39 = vadd.f32 %v1268_v25, %v1196_v29  ;;  %v1293_v54 = vmax.f32 %v1267_v42, 0.0 }
 0x1c2   : > { %v1199_v37 = vpop.f32.mrf.mxu0  ;;  %v1272_v38 = vpop.f32.mrf.mxu1 }
 0x1c3   : > { %v1271_v40 = vadd.f32 %v1270_v36, %v1198_v31  ;;  %v1200_v41 = vadd.f32 %v1199_v37, %v2742_v46  ;;  %1484 = vmatprep.mubr.bf16.mxu0 %v1304_v34  ;;  %v1294_v51 = vmax.f32 %v1269_v39, 0.0 }
 0x1c4   : > { %v1203_v43 = vpop.f32.mrf.mxu0  ;;  %v1276_v44 = vpop.f32.mrf.mxu1  ;;  %1485 = vmatmul.mubr.bf16.gmra.mxu0 %v1303_v32 }
 0x1c5   : > { %v1273_v45 = vadd.f32 %v1272_v38, %v1200_v41  ;;  %v1295_v48 = vmax.f32 %v1271_v40, 0.0  ;;  %v1204_v55 = vadd.f32 %v1203_v43, %v2746_v47 }
 0x1c6   : > { %v1205_v49 = vpop.f32.mrf.mxu0  ;;  %v1278_v50 = vpop.f32.mrf.mxu1 }
 0x1c7   : > { %v1296_v52 = vmax.f32 %v1273_v45, 0.0  ;;  %v1206_v53 = vadd.f32 %v1205_v49, %v2742_v46  ;;  %v1305_v59 = vpack.c.bf16 %v1295_v48, %v1293_v54  ;;  %v1277_v62 = vadd.f32 %v1276_v44, %v1204_v55 }
 0x1c8   : > { %v1207_v56 = vpop.f32.mrf.mxu0  ;;  %v1280_v57 = vpop.f32.mrf.mxu1 }
 0x1c9   : > { %v1306_v58 = vpack.c.bf16 %v1296_v52, %v1294_v51  ;;  %v1208_v24 = vadd.f32 %v1207_v56, %v2746_v47  ;;  %v1279_v26 = vadd.f32 %v1278_v50, %v1206_v53  ;;  %v1297_v4 = vmax.f32 %v1277_v62, 0.0  ;;  %v2228_v47 = vld [vmem:[%s2883_s7 + $0x20] sm:$0xff]  }
 0x1ca   : > { %v1209_v23 = vpop.f32.mrf.mxu0  ;;  %v1282_v63 = vpop.f32.mrf.mxu1  ;;  %2042 = vmatprep.subr.bf16.mxu1 %v2228_v47 }
 0x1cb   : > { %v1281_v60 = vadd.f32 %v1280_v57, %v1208_v24  ;;  %v1210_v61 = vadd.f32 %v1209_v23, %v2742_v46  ;;  %1492 = vmatprep.mubr.bf16.mxu0 %v1306_v58  ;;  %v1298_v2 = vmax.f32 %v1279_v26, 0.0  ;;  %2043 = vmatpush3.bf16.msra.mxu1 %v2228_v47  ;;  %v2229_v46 = vld [vmem:[%s2883_s7 + $0x18] sm:$0xff]  }
 0x1cc   : > { %1493 = vmatmul.mubr.bf16.gmra.mxu0 %v1305_v59  ;;  %2044 = vmatprep.subr.bf16.mxu1 %v2229_v46  ;;  %v1971_v59 = vld [vmem:[%s2884_s8] ss:$0 sm:$0xff] }
 0x1cd   : > { %v1283_v0 = vadd.f32 %v1282_v63, %v1210_v61  ;;  %v1299_v1 = vmax.f32 %v1281_v60, 0.0 }
 0x1cf   : > { %v1300_v3 = vmax.f32 %v1283_v0, 0.0  ;;  %v1307_v6 = vpack.c.bf16 %v1299_v1, %v1297_v4  ;;  %2045 = vmatpush3.bf16.msra.mxu1 %v2229_v46 }
 0x1d0   : > { %2046 = vmatprep.subr.bf16.mxu1 %v2230_v7 }
 0x1d1   : > { %v1308_v5 = vpack.c.bf16 %v1300_v3, %v1298_v2 }
 0x1d3   : > { %1500 = vmatprep.mubr.bf16.mxu0 %v1308_v5  ;;  %2047 = vmatpush3.bf16.msra.mxu1 %v2230_v7 }
 0x1d4   : > { %1501 = vmatmul.mubr.bf16.gmra.mxu0 %v1307_v6  ;;  %2048 = vmatprep.subr.bf16.mxu1 %v2231_v8 }
 0x1d7   : > { %2049 = vmatpush3.bf16.msra.mxu1 %v2231_v8 }
 0x1d8   : > { %2050 = vmatprep.subr.bf16.mxu1 %v2232_v9 }
 0x1db   : > { %2051 = vmatpush3.bf16.msra.mxu1 %v2232_v9 }
 0x27c   : > { %v2000_v10 = vpop.f32.mrf.mxu0 }
 0x27e   : > { %v2001_v11 = vpop.f32.mrf.mxu0 }
 0x27f   : > { %v2002_v12 = vadd.f32 %v2001_v11, %v2000_v10 }
 0x280   : > { %v2003_v14 = vpop.f32.mrf.mxu0 }
 0x281   : > { %v1479_v16 = vadd.f32 %v2002_v12, %v1954_v13 }
 0x282   : > { %v2004_v15 = vpop.f32.mrf.mxu0 }
 0x283   : > { %v2005_v17 = vadd.f32 %v2004_v15, %v2003_v14  ;;  %v1509_v21 = vmax.f32 %v1479_v16, 0.0 }
 0x284   : > { %v2006_v18 = vpop.f32.mrf.mxu0 }
 0x285   : > { %v1482_v19 = vadd.f32 %v2005_v17, %v1954_v13 }
 0x286   : > { %v2007_v20 = vpop.f32.mrf.mxu0 }
 0x287   : > { %v1510_v22 = vmax.f32 %v1482_v19, 0.0  ;;  %v2008_v25 = vadd.f32 %v2007_v20, %v2006_v18 }
 0x288   : > { %v2009_v27 = vpop.f32.mrf.mxu0 }
 0x289   : > { %v1517_v28 = vpack.c.bf16 %v1510_v22, %v1509_v21  ;;  %v1487_v30 = vadd.f32 %v2008_v25, %v1954_v13 }
 0x28a   : > { %v2010_v29 = vpop.f32.mrf.mxu0 }
 0x28b   : > { %v2011_v35 = vadd.f32 %v2010_v29, %v2009_v27  ;;  %2052 = vmatprep.mubr.bf16.mxu1 %v1517_v28  ;;  %v1511_v31 = vmax.f32 %v1487_v30, 0.0 }
 0x28c   : > { %v2012_v33 = vpop.f32.mrf.mxu0 }
 0x28d   : > { %v1490_v36 = vadd.f32 %v2011_v35, %v1954_v13 }
 0x28e   : > { %v2013_v34 = vpop.f32.mrf.mxu0 }
 0x28f   : > { %v1512_v32 = vmax.f32 %v1490_v36, 0.0  ;;  %v2014_v37 = vadd.f32 %v2013_v34, %v2012_v33 }
 0x290   : > { %v2015_v38 = vpop.f32.mrf.mxu0 }
 0x291   : > { %v1518_v39 = vpack.c.bf16 %v1512_v32, %v1511_v31  ;;  %v1495_v41 = vadd.f32 %v2014_v37, %v1954_v13 }
 0x292   : > { %v2016_v40 = vpop.f32.mrf.mxu0 }
 0x293   : > { %v2017_v42 = vadd.f32 %v2016_v40, %v2015_v38  ;;  %2053 = vmatmul.mubr.bf16.vlgmr.msra.gmra.mxu1 %v1518_v39  ;;  %v1513_v48 = vmax.f32 %v1495_v41, 0.0 }
 0x294   : > { %v2018_v43 = vpop.f32.mrf.mxu0 }
 0x295   : > { %v1498_v44 = vadd.f32 %v2017_v42, %v1954_v13 }
 0x296   : > { %v2019_v45 = vpop.f32.mrf.mxu0 }
 0x297   : > { %v1514_v49 = vmax.f32 %v1498_v44, 0.0  ;;  %v2020_v50 = vadd.f32 %v2019_v45, %v2018_v43 }
 0x298   : > { %v2021_v51 = vpop.f32.mrf.mxu0 }
 0x299   : > { %v1519_v52 = vpack.c.bf16 %v1514_v49, %v1513_v48  ;;  %v1503_v54 = vadd.f32 %v2020_v50, %v1954_v13 }
 0x29a   : > { %v2022_v53 = vpop.f32.mrf.mxu0 }
 0x29b   : > { %v2023_v55 = vadd.f32 %v2022_v53, %v2021_v51  ;;  %2056 = vmatprep.mubr.bf16.mxu1 %v1519_v52  ;;  %v1515_v57 = vmax.f32 %v1503_v54, 0.0 }
 0x29d   : > { %v1506_v56 = vadd.f32 %v2023_v55, %v1954_v13 }
 0x29f   : > { %v1516_v58 = vmax.f32 %v1506_v56, 0.0 }
 0x2a1   : > { %v1520_v24 = vpack.c.bf16 %v1516_v58, %v1515_v57 }
 0x2a3   : > { %2057 = vmatmul.mubr.bf16.gmra.mxu1 %v1520_v24 }
 0x353   : > { %v2054_v23 = vpop.f32.mrf.mxu1 }
 0x354   : > { %v2785_v26 = vadd.f32 %v2054_v23, %v1971_v59 }
 0x355   : > { %v1626_v60 = vpop.f32.mrf.mxu1 }
 0x356   : > { %v2787_v61 = vadd.f32 %v1971_v59, %v1626_v60  ;;  %1661 = vmax.xlane.f32.xlu1 %v2785_v26 }
 0x357   : > { %v2055_v62 = vpop.f32.mrf.mxu1 }
 0x358   : > { %v2790_v63 = vadd.f32 %v2055_v62, %v1971_v59  ;;  %1657 = vmax.xlane.f32.xlu0 %v2787_v61 }
 0x359   : > { %v1629_v0 = vpop.f32.mrf.mxu1 }
 0x35a   : > { %v2793_v1 = vadd.f32 %v1971_v59, %v1629_v0  ;;  %1663 = vmax.xlane.f32.xlu1 %v2790_v63 }
 0x35c   : > { %1659 = vmax.xlane.f32.xlu0 %v2793_v1 }
 0x363   : > { %v2058_v2 = vpop.f32.mrf.mxu1 }
 0x364   : > { %v2800_v47 = vadd.f32 %v2058_v2, %v1971_v59 }
 0x365   : > { %v1642_v3 = vpop.f32.mrf.mxu1 }
 0x366   : > { %v2797_v4 = vadd.f32 %v1971_v59, %v1642_v3 }
 0x367   : > { %v2059_v5 = vpop.f32.mrf.mxu1 }
 0x368   : > { %1665 = vmax.xlane.f32.xlu0 %v2797_v4  ;;  %v2806_v7 = vadd.f32 %v2059_v5, %v1971_v59 }
 0x369   : > { %v1645_v6 = vpop.f32.mrf.mxu1 }
 0x36a   : > { %v2802_v46 = vadd.f32 %v1971_v59, %v1645_v6 }
 0x36c   : > { %1667 = vmax.xlane.f32.xlu1 %v2802_v46  ;;  %1669 = vmax.xlane.f32.xlu0 %v2800_v47 }
 0x370   : > { %1671 = vmax.xlane.f32.xlu1 %v2806_v7 }
 0x3df   : > { %v1662_v8 = vpop.xlane.xlu1 %1661 }
 0x3e0   : > { %v1675_v9 = vsub.f32 %v2785_v26, %v1662_v8 }
 0x3e1   : > { %v2810_v10 = vpop.xlane.xlu0 %1657 }
 0x3e2   : > { %v1685_v11 = vmul.f32 1.442695, %v1675_v9  ;;  %v1673_v12 = vsub.f32 %v2787_v61, %v2810_v10 }
 0x3e3   : > { %v2814_v13 = vpop.xlane.xlu1 %1663 }
 0x3e4   : > { %2233 = vpow2.f32 %v1685_v11  ;;  %v1681_v14 = vmul.f32 1.442695, %v1673_v12  ;;  %v1676_v15 = vsub.f32 %v2790_v63, %v2814_v13 }
 0x3e5   : > { %v2818_v16 = vpop.xlane.xlu0 %1659 }
 0x3e6   : > { %v1687_v17 = vmul.f32 1.442695, %v1676_v15  ;;  %v1674_v18 = vsub.f32 %v2793_v1, %v2818_v16  ;;  %2235 = vpow2.f32 %v1681_v14 }
 0x3e8   : > { %2237 = vpow2.f32 %v1687_v17  ;;  %v1683_v19 = vmul.f32 1.442695, %v1674_v18 }
 0x3ea   : > { %2239 = vpow2.f32 %v1683_v19 }
 0x3f1   : > { %v2234_v20 = vpop.eup %2233  ;;  %v2822_v21 = vpop.xlane.xlu0 %1665 }
 0x3f2   : > { %v1677_v22 = vsub.f32 %v2797_v4, %v2822_v21  ;;  %1701 = vadd.xlane.f32.xlu0 %v2234_v20 }
 0x3f3   : > { %v2236_v25 = vpop.eup %2235 }
 0x3f4   : > { %v1689_v27 = vmul.f32 1.442695, %v1677_v22 }
 0x3f5   : > { %v2238_v28 = vpop.eup %2237  ;;  %v2826_v29 = vpop.xlane.xlu1 %1667 }
 0x3f6   : > { %v2828_v30 = vpop.xlane.xlu0 %1669  ;;  %2241 = vpow2.f32 %v1689_v27  ;;  %v1678_v35 = vsub.f32 %v2802_v46, %v2826_v29  ;;  %1703 = vadd.xlane.f32.xlu1 %v2238_v28  ;;  %1697 = vadd.xlane.f32.xlu0 %v2236_v25 }
 0x3f7   : > { %v1679_v33 = vsub.f32 %v2800_v47, %v2828_v30  ;;  %v2240_v31 = vpop.eup %2239 }
 0x3f8   : > { %v1691_v36 = vmul.f32 1.442695, %v1678_v35 }
 0x3f9   : > { %v1693_v34 = vmul.f32 1.442695, %v1679_v33  ;;  %v2834_v32 = vpop.xlane.xlu1 %1671 }
 0x3fa   : > { %2243 = vpow2.f32 %v1691_v36  ;;  %v1680_v37 = vsub.f32 %v2806_v7, %v2834_v32  ;;  %1699 = vadd.xlane.f32.xlu1 %v2240_v31 }
 0x3fb   : > { %2245 = vpow2.f32 %v1693_v34 }
 0x3fc   : > { %v1695_v38 = vmul.f32 1.442695, %v1680_v37 }
 0x3fe   : > { %2247 = vpow2.f32 %v1695_v38 }
 0x403   : > { %v2242_v39 = vpop.eup %2241 }
 0x404   : > { %1705 = vadd.xlane.f32.xlu0 %v2242_v39 }
 0x407   : > { %v2244_v40 = vpop.eup %2243 }
 0x408   : > { %v2246_v41 = vpop.eup %2245  ;;  %1707 = vadd.xlane.f32.xlu1 %v2244_v40 }
 0x409   : > { %1709 = vadd.xlane.f32.xlu0 %v2246_v41 }
 0x40b   : > { %v2248_v42 = vpop.eup %2247 }
 0x40c   : > { %1711 = vadd.xlane.f32.xlu1 %v2248_v42 }
 0x47b   : > { %v1702_v43 = vpop.xlane.xlu0 %1701 }
 0x47c   : > { %2249 = vlog2.f32 %v1702_v43 }
 0x47f   : > { %v1704_v44 = vpop.xlane.xlu1 %1703  ;;  %v1698_v45 = vpop.xlane.xlu0 %1697 }
 0x480   : > { %2251 = vlog2.f32 %v1704_v44 }
 0x481   : > { %2253 = vlog2.f32 %v1698_v45 }
 0x483   : > { %v1700_v48 = vpop.xlane.xlu1 %1699 }
 0x484   : > { %2255 = vlog2.f32 %v1700_v48 }
 0x489   : > { %v2250_v49 = vpop.eup %2249 }
 0x48a   : > { %v1718_v50 = vmul.f32 0.6931472, %v2250_v49 }
 0x48c   : > { %v1731_v51 = vadd.f32 %v1718_v50, %v1662_v8 }
 0x48d   : > { %v2252_v52 = vpop.eup %2251  ;;  %v1706_v53 = vpop.xlane.xlu0 %1705 }
 0x48e   : > { %v2254_v54 = vpop.eup %2253  ;;  %v1739_v55 = vsub.f32 %v2785_v26, %v1731_v51  ;;  %v1720_v56 = vmul.f32 0.6931472, %v2252_v52  ;;  %2257 = vlog2.f32 %v1706_v53 }
 0x48f   : > { %v1714_v57 = vmul.f32 0.6931472, %v2254_v54 }
 0x490   : > { %1747 = vst [vmem:[%s2842_s20 + $0x10] sm:$0xff] %v1739_v55  ;;  %v1732_v58 = vadd.f32 %v1720_v56, %v2814_v13 }
 0x491   : > { %v2256_v24 = vpop.eup %2255  ;;  %v1729_v59 = vadd.f32 %v1714_v57, %v2810_v10  ;;  %v1708_v23 = vpop.xlane.xlu1 %1707 }
 0x492   : > { %v1740_v60 = vsub.f32 %v2790_v63, %v1732_v58  ;;  %v1716_v62 = vmul.f32 0.6931472, %v2256_v24  ;;  %2259 = vlog2.f32 %v1708_v23  ;;  %v1710_v0 = vpop.xlane.xlu0 %1709 }
 0x493   : > { %v1737_v2 = vsub.f32 %v2787_v61, %v1729_v59  ;;  %2261 = vlog2.f32 %v1710_v0 }
 0x494   : > { %1748 = vst [vmem:[%s2842_s20 + $0x18] sm:$0xff] %v1740_v60  ;;  %v1730_v26 = vadd.f32 %v1716_v62, %v2818_v16 }
 0x495   : > { %1745 = vst [vmem:[%s2842_s20] sm:$0xff] %v1737_v2  ;;  %v1712_v3 = vpop.xlane.xlu1 %1711 }
 0x496   : > { %v1738_v5 = vsub.f32 %v2793_v1, %v1730_v26  ;;  %2263 = vlog2.f32 %v1712_v3 }
 0x498   : > { %1746 = vst [vmem:[%s2842_s20 + $0x8] sm:$0xff] %v1738_v5 }
 0x49b   : > { %v2258_v6 = vpop.eup %2257 }
 0x49c   : > { %v1722_v8 = vmul.f32 0.6931472, %v2258_v6 }
 0x49e   : > { %v1733_v63 = vadd.f32 %v1722_v8, %v2822_v21 }
 0x49f   : > { %v2260_v9 = vpop.eup %2259 }
 0x4a0   : > { %v2262_v61 = vpop.eup %2261  ;;  %v1741_v10 = vsub.f32 %v2797_v4, %v1733_v63  ;;  %v1724_v11 = vmul.f32 0.6931472, %v2260_v9 }
 0x4a1   : > { %v1726_v12 = vmul.f32 0.6931472, %v2262_v61 }
 0x4a2   : > { %1749 = vst [vmem:[%s2842_s20 + $0x20] sm:$0xff] %v1741_v10  ;;  %v1734_v13 = vadd.f32 %v1724_v11, %v2826_v29 }
 0x4a3   : > { %v2264_v14 = vpop.eup %2263  ;;  %v1735_v1 = vadd.f32 %v1726_v12, %v2828_v30 }
 0x4a4   : > { %v1742_v15 = vsub.f32 %v2802_v46, %v1734_v13  ;;  %v1728_v16 = vmul.f32 0.6931472, %v2264_v14 }
 0x4a5   : > { %v1743_v17 = vsub.f32 %v2800_v47, %v1735_v1 }
 0x4a6   : > { %1750 = vst [vmem:[%s2842_s20 + $0x28] sm:$0xff] %v1742_v15  ;;  %v1736_v18 = vadd.f32 %v1728_v16, %v2834_v32 }
 0x4a7   : > { %1751 = vst [vmem:[%s2842_s20 + $0x30] sm:$0xff] %v1743_v17 }
 0x4a8   : > { %v1744_v19 = vsub.f32 %v2806_v7, %v1736_v18 }
 0x4aa   : > { %1752 = vst [vmem:[%s2842_s20 + $0x38] sm:$0xff] %v1744_v19 }
 0x4ab PF: > { %s19_s11 = sadd.s32 1, %s2287_s11   ;;  %s2886_s30 = smov %s2283_s10 }
 0x4ac   : > { %p16_p5 = scmp.ge.s32.totalorder %s19_s11, 4   ;;  %s2887_s10 = smov %s2889_s12 }
 0x4ae   :  { %18 = sbr.rel (!%p16_p5) target bundleno = 2 (0x2), region = 89 }

</bundles_post_ra>
